<compile_context>
chip_gen: v7x
topology: tpu7x:2x2x1
jax: 0.10.0
libtpu: 0.0.40
codegen_flags: <defaults>
</compile_context>

<pallas_src>
import functools

import jax
import jax.numpy as jnp
from jax.experimental import pallas as pl
from jax.experimental.pallas import tpu as pltpu


def _conv3x3_kernel(x_ref, w_ref, b_ref, o_ref, *, Cout, Ho, Wo, KH, KW):
    # x_ref: (H, W, TN)          VMEM tile, batch on the lane axis
    # w_ref: (Cout*KH*KW,)       SMEM (flattened filters, co*KH*KW + kh*KW + kw)
    # b_ref: (Cout,)             SMEM
    # o_ref: (Cout, Ho, Wo, TN)  VMEM tile
    x = x_ref[...]                                          # (H, W, TN)

    # 9 shifted taps, shared by all output channels.  kh is a major-dim offset
    # (free), kw is a sublane shift; the lane (batch) axis is never shifted.
    taps = [x[kh:kh + Ho, kw:kw + Wo, :]
            for kh in range(KH) for kw in range(KW)]

    nk = KH * KW
    # Hoisted scalar reads from SMEM (one sld each).
    w = [w_ref[i] for i in range(Cout * nk)]
    b = [b_ref[co] for co in range(Cout)]

    chans = []
    for co in range(Cout):                                  # static unroll (Cout=3)
        terms = [taps[k] * w[co * nk + k] for k in range(nk)]
        terms[0] = terms[0] + b[co]                         # fold bias into first MAC
        # Pairwise tree sum (shorter dep chain than a serial 9-add chain).
        while len(terms) > 1:
            nxt = [terms[i] + terms[i + 1] for i in range(0, len(terms) - 1, 2)]
            if len(terms) % 2:
                nxt.append(terms[-1])
            terms = nxt
        chans.append(terms[0])

    # Single contiguous store per grid step.
    o_ref[...] = jnp.stack(chans, axis=0).astype(o_ref.dtype)


def conv2d_pallas(x, w, b, *, tn=None):
    """Valid 2D convolution (stride 1, no padding); in_channels must be 1."""
    N, Cin, H, W = x.shape
    Cout, Cin_w, KH, KW = w.shape
    assert Cin == 1 and Cin_w == 1, "James.conv1 has in_channels=1"
    Ho, Wo = H - KH + 1, W - KW + 1

    x = x.astype(jnp.float32)
    w_flat = w.reshape(Cout * KH * KW).astype(jnp.float32)
    b = b.astype(jnp.float32)

    # Lane-dense relayout: batch last.  (N,1,H,W) -> (H, W, N)
    x_nl = jnp.transpose(x[:, 0, :, :], (1, 2, 0))

    if tn is None:
        # Bytes per image-column (one lane) of f32 input + output.
        per_lane_bytes = 4 * (H * W + Cout * Ho * Wo)
        budget = 8 << 20  # double-buffered in+out; safe under 16 MiB scoped (v5e)
        tn = max(128, (budget // (2 * per_lane_bytes)) // 128 * 128)
        tn = min(tn, 2048)
        # Don't over-pad tiny batches.
        tn = min(tn, pl.cdiv(N, 128) * 128)
        # Prefer >=2 grid steps so the "parallel" batch axis can shard across
        # both TensorCores (v7x megacore).
        if pl.cdiv(N, tn) < 2 and N > 128:
            tn = max(128, pl.cdiv(pl.cdiv(N, 2), 128) * 128)

    n_pad = pl.cdiv(N, tn) * tn
    if n_pad != N:
        x_nl = jnp.pad(x_nl, ((0, 0), (0, 0), (0, n_pad - N)))

    kernel = functools.partial(
        _conv3x3_kernel, Cout=Cout, Ho=Ho, Wo=Wo, KH=KH, KW=KW)

    out = pl.pallas_call(
        kernel,
        out_shape=jax.ShapeDtypeStruct((Cout, Ho, Wo, n_pad), jnp.float32),
        grid=(n_pad // tn,),
        in_specs=[
            pl.BlockSpec((H, W, tn), lambda n: (0, 0, n)),
            pl.BlockSpec(memory_space=pltpu.SMEM),
            pl.BlockSpec(memory_space=pltpu.SMEM),
        ],
        out_specs=pl.BlockSpec((Cout, Ho, Wo, tn), lambda n: (0, 0, 0, n)),
        compiler_params=pltpu.CompilerParams(
            dimension_semantics=("parallel",)),
    )(x_nl, w_flat, b)

    # (Cout, Ho, Wo, n_pad) -> (N, Cout, Ho, Wo)
    return jnp.transpose(out, (3, 0, 1, 2))[:N]


def init_james_params(key):
    """Deterministic init matching Conv2d(1, 3, 3) parameter shapes."""
    kw_key, kb_key = jax.random.split(key)
    fan_in = 1 * 3 * 3
    bound = 1.0 / jnp.sqrt(fan_in)  # PyTorch default uniform bound
    weight = jax.random.uniform(kw_key, (3, 1, 3, 3), jnp.float32, -bound, bound)
    bias = jax.random.uniform(kb_key, (3,), jnp.float32, -bound, bound)
    return weight, bias


def james_forward(x, weight, bias):
    return conv2d_pallas(x, weight, bias)


if __name__ == "__main__":
    key = jax.random.PRNGKey(0)
    k_x, k_p = jax.random.split(key)

    # Small NCHW input consistent with Conv2d(in_channels=1, ...)
    x = jax.random.normal(k_x, (2, 1, 16, 16), dtype=jnp.float32)
    weight, bias = init_james_params(k_p)

    out = james_forward(x, weight, bias)
    out = jax.block_until_ready(out)

    # Sanity check against XLA's reference convolution.
    ref = jax.lax.conv_general_dilated(
        x, weight, window_strides=(1, 1), padding="VALID",
        dimension_numbers=("NCHW", "OIHW", "NCHW")) + bias[None, :, None, None]
    assert out.shape == (2, 3, 14, 14), out.shape
    assert jnp.allclose(out, ref, atol=1e-5, rtol=1e-5), "mismatch vs reference"

    print("KERNEL_OK")
</pallas_src>

<mosaic_0001>
module attributes {stable_mosaic.version = 11 : i64} {
  func.func @_conv3x3_kernel(%arg0: i32, %arg1: memref<16x16x128xf32, #tpu.memory_space<vmem>>, %arg2: memref<27xf32, #tpu.memory_space<smem>>, %arg3: memref<3xf32, #tpu.memory_space<smem>>, %arg4: memref<3x14x14x128xf32, #tpu.memory_space<vmem>>) attributes {dimension_semantics = [#tpu.dimension_semantics<parallel>], iteration_bounds = array<i64: 1>, scalar_prefetch = 0 : i64, scratch_operands = 0 : i64, tpu.core_type = #tpu.core_type<tc>, window_params = [{transform_indices = @transform_0, window_bounds = array<i64: 16, 16, 128>}, {transform_indices = @transform_1, window_bounds = array<i64: 27>}, {transform_indices = @transform_2, window_bounds = array<i64: 3>}, {transform_indices = @transform_3, window_bounds = array<i64: 3, 14, 14, 128>}]} {
    %c0 = arith.constant 0 : index
    %c0_0 = arith.constant 0 : index
    %c0_1 = arith.constant 0 : index
    %0 = vector.load %arg1[%c0, %c0_0, %c0_1] : memref<16x16x128xf32, #tpu.memory_space<vmem>>, vector<16x16x128xf32>
    %1 = vector.extract_strided_slice %0 {offsets = [0, 0, 0], sizes = [14, 14, 128], strides = [1, 1, 1]} : vector<16x16x128xf32> to vector<14x14x128xf32>
    %2 = vector.extract_strided_slice %0 {offsets = [0, 1, 0], sizes = [14, 14, 128], strides = [1, 1, 1]} : vector<16x16x128xf32> to vector<14x14x128xf32>
    %3 = vector.extract_strided_slice %0 {offsets = [0, 2, 0], sizes = [14, 14, 128], strides = [1, 1, 1]} : vector<16x16x128xf32> to vector<14x14x128xf32>
    %4 = vector.extract_strided_slice %0 {offsets = [1, 0, 0], sizes = [14, 14, 128], strides = [1, 1, 1]} : vector<16x16x128xf32> to vector<14x14x128xf32>
    %5 = vector.extract_strided_slice %0 {offsets = [1, 1, 0], sizes = [14, 14, 128], strides = [1, 1, 1]} : vector<16x16x128xf32> to vector<14x14x128xf32>
    %6 = vector.extract_strided_slice %0 {offsets = [1, 2, 0], sizes = [14, 14, 128], strides = [1, 1, 1]} : vector<16x16x128xf32> to vector<14x14x128xf32>
    %7 = vector.extract_strided_slice %0 {offsets = [2, 0, 0], sizes = [14, 14, 128], strides = [1, 1, 1]} : vector<16x16x128xf32> to vector<14x14x128xf32>
    %8 = vector.extract_strided_slice %0 {offsets = [2, 1, 0], sizes = [14, 14, 128], strides = [1, 1, 1]} : vector<16x16x128xf32> to vector<14x14x128xf32>
    %9 = vector.extract_strided_slice %0 {offsets = [2, 2, 0], sizes = [14, 14, 128], strides = [1, 1, 1]} : vector<16x16x128xf32> to vector<14x14x128xf32>
    %c0_2 = arith.constant 0 : index
    %10 = memref.load %arg2[%c0_2] : memref<27xf32, #tpu.memory_space<smem>>
    %c1 = arith.constant 1 : index
    %11 = memref.load %arg2[%c1] : memref<27xf32, #tpu.memory_space<smem>>
    %c2 = arith.constant 2 : index
    %12 = memref.load %arg2[%c2] : memref<27xf32, #tpu.memory_space<smem>>
    %c3 = arith.constant 3 : index
    %13 = memref.load %arg2[%c3] : memref<27xf32, #tpu.memory_space<smem>>
    %c4 = arith.constant 4 : index
    %14 = memref.load %arg2[%c4] : memref<27xf32, #tpu.memory_space<smem>>
    %c5 = arith.constant 5 : index
    %15 = memref.load %arg2[%c5] : memref<27xf32, #tpu.memory_space<smem>>
    %c6 = arith.constant 6 : index
    %16 = memref.load %arg2[%c6] : memref<27xf32, #tpu.memory_space<smem>>
    %c7 = arith.constant 7 : index
    %17 = memref.load %arg2[%c7] : memref<27xf32, #tpu.memory_space<smem>>
    %c8 = arith.constant 8 : index
    %18 = memref.load %arg2[%c8] : memref<27xf32, #tpu.memory_space<smem>>
    %c9 = arith.constant 9 : index
    %19 = memref.load %arg2[%c9] : memref<27xf32, #tpu.memory_space<smem>>
    %c10 = arith.constant 10 : index
    %20 = memref.load %arg2[%c10] : memref<27xf32, #tpu.memory_space<smem>>
    %c11 = arith.constant 11 : index
    %21 = memref.load %arg2[%c11] : memref<27xf32, #tpu.memory_space<smem>>
    %c12 = arith.constant 12 : index
    %22 = memref.load %arg2[%c12] : memref<27xf32, #tpu.memory_space<smem>>
    %c13 = arith.constant 13 : index
    %23 = memref.load %arg2[%c13] : memref<27xf32, #tpu.memory_space<smem>>
    %c14 = arith.constant 14 : index
    %24 = memref.load %arg2[%c14] : memref<27xf32, #tpu.memory_space<smem>>
    %c15 = arith.constant 15 : index
    %25 = memref.load %arg2[%c15] : memref<27xf32, #tpu.memory_space<smem>>
    %c16 = arith.constant 16 : index
    %26 = memref.load %arg2[%c16] : memref<27xf32, #tpu.memory_space<smem>>
    %c17 = arith.constant 17 : index
    %27 = memref.load %arg2[%c17] : memref<27xf32, #tpu.memory_space<smem>>
    %c18 = arith.constant 18 : index
    %28 = memref.load %arg2[%c18] : memref<27xf32, #tpu.memory_space<smem>>
    %c19 = arith.constant 19 : index
    %29 = memref.load %arg2[%c19] : memref<27xf32, #tpu.memory_space<smem>>
    %c20 = arith.constant 20 : index
    %30 = memref.load %arg2[%c20] : memref<27xf32, #tpu.memory_space<smem>>
    %c21 = arith.constant 21 : index
    %31 = memref.load %arg2[%c21] : memref<27xf32, #tpu.memory_space<smem>>
    %c22 = arith.constant 22 : index
    %32 = memref.load %arg2[%c22] : memref<27xf32, #tpu.memory_space<smem>>
    %c23 = arith.constant 23 : index
    %33 = memref.load %arg2[%c23] : memref<27xf32, #tpu.memory_space<smem>>
    %c24 = arith.constant 24 : index
    %34 = memref.load %arg2[%c24] : memref<27xf32, #tpu.memory_space<smem>>
    %c25 = arith.constant 25 : index
    %35 = memref.load %arg2[%c25] : memref<27xf32, #tpu.memory_space<smem>>
    %c26 = arith.constant 26 : index
    %36 = memref.load %arg2[%c26] : memref<27xf32, #tpu.memory_space<smem>>
    %c0_3 = arith.constant 0 : index
    %37 = memref.load %arg3[%c0_3] : memref<3xf32, #tpu.memory_space<smem>>
    %c1_4 = arith.constant 1 : index
    %38 = memref.load %arg3[%c1_4] : memref<3xf32, #tpu.memory_space<smem>>
    %c2_5 = arith.constant 2 : index
    %39 = memref.load %arg3[%c2_5] : memref<3xf32, #tpu.memory_space<smem>>
    %40 = vector.broadcast %10 : f32 to vector<14x14x128xf32>
    %41 = arith.mulf %1, %40 : vector<14x14x128xf32>
    %42 = vector.broadcast %11 : f32 to vector<14x14x128xf32>
    %43 = arith.mulf %2, %42 : vector<14x14x128xf32>
    %44 = vector.broadcast %12 : f32 to vector<14x14x128xf32>
    %45 = arith.mulf %3, %44 : vector<14x14x128xf32>
    %46 = vector.broadcast %13 : f32 to vector<14x14x128xf32>
    %47 = arith.mulf %4, %46 : vector<14x14x128xf32>
    %48 = vector.broadcast %14 : f32 to vector<14x14x128xf32>
    %49 = arith.mulf %5, %48 : vector<14x14x128xf32>
    %50 = vector.broadcast %15 : f32 to vector<14x14x128xf32>
    %51 = arith.mulf %6, %50 : vector<14x14x128xf32>
    %52 = vector.broadcast %16 : f32 to vector<14x14x128xf32>
    %53 = arith.mulf %7, %52 : vector<14x14x128xf32>
    %54 = vector.broadcast %17 : f32 to vector<14x14x128xf32>
    %55 = arith.mulf %8, %54 : vector<14x14x128xf32>
    %56 = vector.broadcast %18 : f32 to vector<14x14x128xf32>
    %57 = arith.mulf %9, %56 : vector<14x14x128xf32>
    %58 = vector.broadcast %37 : f32 to vector<14x14x128xf32>
    %59 = arith.addf %41, %58 : vector<14x14x128xf32>
    %60 = arith.addf %59, %43 : vector<14x14x128xf32>
    %61 = arith.addf %45, %47 : vector<14x14x128xf32>
    %62 = arith.addf %49, %51 : vector<14x14x128xf32>
    %63 = arith.addf %53, %55 : vector<14x14x128xf32>
    %64 = arith.addf %60, %61 : vector<14x14x128xf32>
    %65 = arith.addf %62, %63 : vector<14x14x128xf32>
    %66 = arith.addf %64, %65 : vector<14x14x128xf32>
    %67 = arith.addf %66, %57 : vector<14x14x128xf32>
    %68 = vector.broadcast %19 : f32 to vector<14x14x128xf32>
    %69 = arith.mulf %1, %68 : vector<14x14x128xf32>
    %70 = vector.broadcast %20 : f32 to vector<14x14x128xf32>
    %71 = arith.mulf %2, %70 : vector<14x14x128xf32>
    %72 = vector.broadcast %21 : f32 to vector<14x14x128xf32>
    %73 = arith.mulf %3, %72 : vector<14x14x128xf32>
    %74 = vector.broadcast %22 : f32 to vector<14x14x128xf32>
    %75 = arith.mulf %4, %74 : vector<14x14x128xf32>
    %76 = vector.broadcast %23 : f32 to vector<14x14x128xf32>
    %77 = arith.mulf %5, %76 : vector<14x14x128xf32>
    %78 = vector.broadcast %24 : f32 to vector<14x14x128xf32>
    %79 = arith.mulf %6, %78 : vector<14x14x128xf32>
    %80 = vector.broadcast %25 : f32 to vector<14x14x128xf32>
    %81 = arith.mulf %7, %80 : vector<14x14x128xf32>
    %82 = vector.broadcast %26 : f32 to vector<14x14x128xf32>
    %83 = arith.mulf %8, %82 : vector<14x14x128xf32>
    %84 = vector.broadcast %27 : f32 to vector<14x14x128xf32>
    %85 = arith.mulf %9, %84 : vector<14x14x128xf32>
    %86 = vector.broadcast %38 : f32 to vector<14x14x128xf32>
    %87 = arith.addf %69, %86 : vector<14x14x128xf32>
    %88 = arith.addf %87, %71 : vector<14x14x128xf32>
    %89 = arith.addf %73, %75 : vector<14x14x128xf32>
    %90 = arith.addf %77, %79 : vector<14x14x128xf32>
    %91 = arith.addf %81, %83 : vector<14x14x128xf32>
    %92 = arith.addf %88, %89 : vector<14x14x128xf32>
    %93 = arith.addf %90, %91 : vector<14x14x128xf32>
    %94 = arith.addf %92, %93 : vector<14x14x128xf32>
    %95 = arith.addf %94, %85 : vector<14x14x128xf32>
    %96 = vector.broadcast %28 : f32 to vector<14x14x128xf32>
    %97 = arith.mulf %1, %96 : vector<14x14x128xf32>
    %98 = vector.broadcast %29 : f32 to vector<14x14x128xf32>
    %99 = arith.mulf %2, %98 : vector<14x14x128xf32>
    %100 = vector.broadcast %30 : f32 to vector<14x14x128xf32>
    %101 = arith.mulf %3, %100 : vector<14x14x128xf32>
    %102 = vector.broadcast %31 : f32 to vector<14x14x128xf32>
    %103 = arith.mulf %4, %102 : vector<14x14x128xf32>
    %104 = vector.broadcast %32 : f32 to vector<14x14x128xf32>
    %105 = arith.mulf %5, %104 : vector<14x14x128xf32>
    %106 = vector.broadcast %33 : f32 to vector<14x14x128xf32>
    %107 = arith.mulf %6, %106 : vector<14x14x128xf32>
    %108 = vector.broadcast %34 : f32 to vector<14x14x128xf32>
    %109 = arith.mulf %7, %108 : vector<14x14x128xf32>
    %110 = vector.broadcast %35 : f32 to vector<14x14x128xf32>
    %111 = arith.mulf %8, %110 : vector<14x14x128xf32>
    %112 = vector.broadcast %36 : f32 to vector<14x14x128xf32>
    %113 = arith.mulf %9, %112 : vector<14x14x128xf32>
    %114 = vector.broadcast %39 : f32 to vector<14x14x128xf32>
    %115 = arith.addf %97, %114 : vector<14x14x128xf32>
    %116 = arith.addf %115, %99 : vector<14x14x128xf32>
    %117 = arith.addf %101, %103 : vector<14x14x128xf32>
    %118 = arith.addf %105, %107 : vector<14x14x128xf32>
    %119 = arith.addf %109, %111 : vector<14x14x128xf32>
    %120 = arith.addf %116, %117 : vector<14x14x128xf32>
    %121 = arith.addf %118, %119 : vector<14x14x128xf32>
    %122 = arith.addf %120, %121 : vector<14x14x128xf32>
    %123 = arith.addf %122, %113 : vector<14x14x128xf32>
    %124 = vector.shape_cast %67 : vector<14x14x128xf32> to vector<1x14x14x128xf32>
    %125 = vector.shape_cast %95 : vector<14x14x128xf32> to vector<1x14x14x128xf32>
    %126 = vector.shape_cast %123 : vector<14x14x128xf32> to vector<1x14x14x128xf32>
    %127 = tpu.concatenate %124, %125, %126 in 0 : vector<1x14x14x128xf32>, vector<1x14x14x128xf32>, vector<1x14x14x128xf32> -> vector<3x14x14x128xf32>
    %c0_6 = arith.constant 0 : index
    %c0_7 = arith.constant 0 : index
    %c0_8 = arith.constant 0 : index
    %c0_9 = arith.constant 0 : index
    %128 = vector.load %arg4[%c0_6, %c0_7, %c0_8, %c0_9] : memref<3x14x14x128xf32, #tpu.memory_space<vmem>>, vector<3x14x14x128xf32>
    tpu.vector_store %arg4[%c0_6, %c0_7, %c0_8, %c0_9], %127 {strides = array<i32>} : memref<3x14x14x128xf32, #tpu.memory_space<vmem>>, vector<3x14x14x128xf32>,
    return
  }
  func.func @transform_0(%arg0: i32) -> (i32, i32, i32) {
    %c0_i32 = arith.constant 0 : i32
    %c0_i32_0 = arith.constant 0 : i32
    %c0_i32_1 = arith.constant 0 : i32
    return %c0_i32, %c0_i32_0, %arg0 : i32, i32, i32
  }
  func.func @transform_1(%arg0: i32) -> i32 {
    %c0_i32 = arith.constant 0 : i32
    %c0_i32_0 = arith.constant 0 : i32
    return %c0_i32 : i32
  }
  func.func @transform_2(%arg0: i32) -> i32 {
    %c0_i32 = arith.constant 0 : i32
    %c0_i32_0 = arith.constant 0 : i32
    return %c0_i32 : i32
  }
  func.func @transform_3(%arg0: i32) -> (i32, i32, i32, i32) {
    %c0_i32 = arith.constant 0 : i32
    %c0_i32_0 = arith.constant 0 : i32
    %c0_i32_1 = arith.constant 0 : i32
    %c0_i32_2 = arith.constant 0 : i32
    return %c0_i32, %c0_i32_0, %c0_i32_1, %arg0 : i32, i32, i32, i32
  }
}

</mosaic_0001>

<bundles_post_ra>
// kernel: tpu_custom_call.1
= control target key start
LH: loop header
LB: loop body
LE: loop exit
PB: predicated region body
PF: predicated region fallthrough
CT: control target
= control target key end

     0   :  { %8 = vsyncpa [#allocation3], 0  ;;  %s6761_s0 = inlined_call_operand.hbm [shape: f32[16,16,128], index: 0, kind: input, shape index: {}]   ;;  %s6762_s1 = inlined_call_operand.vmem [shape: f32[27], index: 1, kind: input, shape index: {}]   ;;  %s6763_s2 = inlined_call_operand.vmem [shape: f32[3], index: 2, kind: input, shape index: {}]   ;;  %s6764_s3 = inlined_call_operand.hbm [shape: f32[3,14,14,128], index: 3, kind: output, shape index: {}]  }
   0x1   :  { %9 = vsyncpa [#allocation5], 0 }
   0x2   :  { %10 = vsyncpa [#allocation8], 0 }
   0x3   :  { %11 = vsyncpa [#allocation4], 0  ;;  %s4291_s12 = smov [#allocation2]   ;;  %s30_s16 = sshll.u32 %s6762_s1, 4  ;;  %s31_s16 = int_to_ptr.vmem [resolvable:$true] %s30_s16 }
   0x4   :  { %s17_s13 = sshll.u32 %s4291_s12, 4  ;;  %s4215_s19 = scalar_lea.hbm %s6761_s0, 4096  ;;  %s18_s13 = int_to_ptr.vmem [resolvable:$true] %s17_s13 }
   0x5   :  { %p4216_p0 = scmp.ne.s32.totalorder %s6761_s0, %s4215_s19  ;;  %p4219_p1 = scmp.lt.u32.totalorder %s4215_s19, %s6761_s0 }
   0x7   :  { %p4221_p2 = pnand %p4219_p1, %p4216_p0 }
   0x9   :  { %4224 = shalt.err (!%p4221_p2)
}
   0xa   :  { %s4225_s24 = scalar_lea.vmem %s18_s13, 4096  ;;  %p4230_p4 = scmp.lt.s32.totalorder %s18_s13, %s18_s13 }
   0xb   :  { %p4226_p3 = scmp.ne.s32.totalorder %s18_s13, %s4225_s24  ;;  %p4231_p5 = scmp.lt.s32.totalorder %s4225_s24, %s4225_s24 }
   0xd   :  { %p4232_p6 = por %p4231_p5, %p4230_p4 }
   0xf   :  { %p4233_p7 = pnand %p4232_p6, %p4226_p3 }
  0x11   :  { %4236 = shalt.err (!%p4233_p7)
}
  0x12   :  { %s4292_s1 = smov 128   ;;  %s4293_s25 = smov 8  }
  0x13   :  { %23 = dma.hbm_to_vmem [thread:$0]  %s6761_s0, 4096, %s18_s13, [#allocation3], %s4292_s1, %s4292_s1, %s4293_s25  }
  0x14   :  { %s4237_s28 = scalar_lea.vmem %s31_s16, 16  ;;  %p4242_p9 = scmp.lt.s32.totalorder %s31_s16, %s31_s16 }
  0x15   :  { %p4238_p8 = scmp.ne.s32.totalorder %s31_s16, %s4237_s28  ;;  %p4243_p10 = scmp.lt.s32.totalorder %s4237_s28, %s4237_s28 }
  0x17   :  { %p4244_p11 = por %p4243_p10, %p4242_p9 }
  0x19   :  { %p4245_p12 = pnand %p4244_p11, %p4238_p8 }
  0x1b   :  { %4248 = shalt.err (!%p4245_p12)
}
  0x1c   :  { %s4294_s29 = smov [#allocation6]   ;;  %s40_s5 = sshll.u32 %s6763_s2, 4  ;;  %s41_s5 = int_to_ptr.vmem [resolvable:$true] %s40_s5 }
  0x1d   :  { %33 = dma.vmem_to_smem %s31_s16, 16, %s4294_s29, [#allocation5]  }
  0x1e   :  { %s4249_s6 = scalar_lea.vmem %s41_s5, 16  ;;  %p4254_p0 = scmp.lt.s32.totalorder %s41_s5, %s41_s5 }
  0x1f   :  { %p4250_p13 = scmp.ne.s32.totalorder %s41_s5, %s4249_s6  ;;  %p4255_p1 = scmp.lt.s32.totalorder %s4249_s6, %s4249_s6 }
  0x21   :  { %p4256_p2 = por %p4255_p1, %p4254_p0 }
  0x23   :  { %p4257_p3 = pnand %p4256_p2, %p4250_p13 }
  0x25   :  { %4260 = shalt.err (!%p4257_p3)
}
  0x26   :  { %s4295_s0 = smov [#allocation7]  }
  0x27   :  { %43 = dma.vmem_to_smem %s41_s5, 16, %s4295_s0, [#allocation8]  }
  0x28   :  { %4283 = dma.done.wait [#allocation3], 4096  }
  0x29   :  { %4284 = vsyncadd [#allocation3], 4294963200 }
  0x2a   :  { %4285 = dma.done.wait [#allocation5], 16  }
  0x2b   :  { %4286 = vsyncadd [#allocation5], 4294967280 }
  0x2c   :  { %4287 = dma.done.wait [#allocation8], 16  }
  0x2d   :  { %4288 = vsyncadd [#allocation8], 4294967280 }
  0x2e   :  { %53 = sfence }
  0x2f   :  { %s86_s7 = sld [smem:[#allocation6]]  ;;  %s4117_s8 = sld [smem:[#allocation6 + $0x1]]  ;;  %v54_v0 = vld [vmem:[#allocation2] sm:$0xff]  ;;  %v55_v1 = vld [vmem:[#allocation2 + $0x8] sm:$0xff]  ;;  %v4342_v2 = vld [vmem:[#allocation2 + $0x10] sm:$0xff]  ;;  %vm434_vm0 = vcmask 1046528  }
  0x30   :  { %s4118_s2 = sld [smem:[#allocation6 + $0x2]]  ;;  %s4119_s9 = sld [smem:[#allocation6 + $0x3]]  ;;  %v4344_v3 = vld [vmem:[#allocation2 + $0x18] sm:$0xff]  ;;  %vm561_vm1 = vcmask 1041408   ;;  %v4362_v13 = vld [vmem:[#allocation2 + $0x20] sm:$0xff]  ;;  %v4364_v14 = vld [vmem:[#allocation2 + $0x28] sm:$0xff] }
  0x31   :  { %s4120_s10 = sld [smem:[#allocation6 + $0x4]]  ;;  %s4121_s11 = sld [smem:[#allocation6 + $0x5]]  ;;  %vm940_vm2 = vcmask 1045504   ;;  %vm1067_vm3 = vcmask 1040384  }
  0x32   :  { %s4122_s12 = sld [smem:[#allocation6 + $0x6]]  ;;  %s4123_s13 = sld [smem:[#allocation6 + $0x7]] }
  0x33   :  { %s4338_s14 = sld [smem:[#allocation6 + $0x8]]  ;;  %s5121_s16 = sld [smem:[#allocation6 + $0x9]] }
  0x34   :  { %s4340_s15 = sld [smem:[#allocation7]]  ;;  %s5123_s17 = sld [smem:[#allocation6 + $0xa]] }
  0x35   :  { %v4346_v4 = vstv %s86_s7  ;;  %v4349_v6 = vstv %s4117_s8  ;;  %s5129_s18 = sld [smem:[#allocation6 + $0xb]]  ;;  %s5132_s19 = sld [smem:[#allocation6 + $0xc]] }
  0x36   :  { %v117_v5 = vmul.f32 %v4346_v4, %v54_v0  ;;  %v118_v7 = vmul.f32 %v4346_v4, %v55_v1  ;;  %v4354_v8 = vmul.f32 %v4346_v4, %v4342_v2  ;;  %v146_v9 = vmul.f32 %v4349_v6, %v54_v0  ;;  %s5134_s20 = sld [smem:[#allocation6 + $0xd]]  ;;  %s5137_s21 = sld [smem:[#allocation6 + $0xe]] }
  0x37   :  { %v147_v10 = vmul.f32 %v4349_v6, %v55_v1  ;;  %v4358_v11 = vstv %s4118_s2  ;;  %v4360_v12 = vstv %s4119_s9  ;;  %v4372_v19 = vstv %s4120_s10  ;;  %s5139_s22 = sld [smem:[#allocation6 + $0x10]]  ;;  %s5144_s23 = sld [smem:[#allocation6 + $0xf]] }
  0x38   :  { %v175_v15 = vmul.f32 %v4358_v11, %v54_v0  ;;  %v176_v16 = vmul.f32 %v4358_v11, %v55_v1  ;;  %v204_v17 = vmul.f32 %v4360_v12, %v4342_v2  ;;  %v205_v18 = vmul.f32 %v4360_v12, %v4344_v3  ;;  %s5156_s24 = sld [smem:[#allocation6 + $0x11]]  ;;  %s5927_s27 = sld [smem:[#allocation6 + $0x12]] }
  0x39   :  { %v4374_v20 = vstv %s4121_s11  ;;  %v4376_v21 = vstv %s4122_s12  ;;  %v4378_v22 = vstv %s4123_s13  ;;  %v233_v23 = vmul.f32 %v4372_v19, %v4342_v2  ;;  %s5160_s26 = sld [smem:[#allocation7 + $0x1]]  ;;  %s5929_s28 = sld [smem:[#allocation6 + $0x13]] }
  0x3a   :  { %v234_v24 = vmul.f32 %v4372_v19, %v4344_v3  ;;  %v262_v25 = vmul.f32 %v4374_v20, %v4342_v2  ;;  %v263_v26 = vmul.f32 %v4374_v20, %v4344_v3  ;;  %v291_v27 = vmul.f32 %v4376_v21, %v4362_v13  ;;  %s5938_s29 = sld [smem:[#allocation6 + $0x14]]  ;;  %s5942_s30 = sld [smem:[#allocation6 + $0x15]] }
  0x3b   :  { %v292_v28 = vmul.f32 %v4376_v21, %v4364_v14  ;;  %v320_v29 = vmul.f32 %v4378_v22, %v4362_v13  ;;  %v321_v30 = vmul.f32 %v4378_v22, %v4364_v14  ;;  %v4397_v31 = vstv %s4338_s14  ;;  %s5946_s4 = sld [smem:[#allocation6 + $0x16]]  ;;  %s5948_s5 = sld [smem:[#allocation6 + $0x17]] }
  0x3c   :  { %v4400_v32 = vstv %s4340_s15  ;;  %v435_v33 = vrot.slane %v146_v9, 1  ;;  %v436_v34 = vrot.slane %v147_v10, 1  ;;  %v349_v35 = vmul.f32 %v4397_v31, %v4362_v13  ;;  %s5950_s6 = sld [smem:[#allocation6 + $0x18]]  ;;  %s5963_s0 = sld [smem:[#allocation6 + $0x19]] }
  0x3d   :  { %v4406_v36 = vmul.f32 %v4397_v31, %v4364_v14  ;;  %v378_v37 = vadd.f32 %v4400_v32, %v117_v5  ;;  %v562_v38 = vrot.slane %v204_v17, 6  ;;  %v563_v40 = vrot.slane %v205_v18, 6  ;;  %s5965_s7 = sld [smem:[#allocation6 + $0x1a]]  ;;  %s4296_s2 = smov [#allocation9]  }
  0x3e   :  { %v437_v39 = vsel %vm434_vm0, %v435_v33, %v436_v34  ;;  %v688_v41 = vrot.slane %v262_v25, 1  ;;  %v689_v42 = vrot.slane %v263_v26, 1  ;;  %v814_v45 = vrot.slane %v320_v29, 1  ;;  %v4434_v25 = vld [vmem:[#allocation2 + $0x38] sm:$0xff]  ;;  %s5970_s8 = sld [smem:[#allocation7 + $0x2]]  ;;  %s4103_s9 = sshll.u32 %s4296_s2, 4  ;;  %s4104_s9 = int_to_ptr.vmem [resolvable:$true] %s4103_s9 }
  0x3f   :  { %v505_v43 = vadd.f32 %v437_v39, %v378_v37  ;;  %v632_v44 = vadd.f32 %v562_v38, %v175_v15  ;;  %v815_v46 = vrot.slane %v321_v30, 1  ;;  %v564_v47 = vsel %vm561_vm1, %v562_v38, %v563_v40  ;;  %s4261_s10 = scalar_lea.vmem %s4104_s9, 10752  ;;  %p4266_p5 = scmp.lt.s32.totalorder %s4104_s9, %s4104_s9 }
  0x40   :  { %v690_v48 = vsel %vm434_vm0, %v688_v41, %v689_v42  ;;  %v759_v49 = vadd.f32 %v689_v42, %v234_v24  ;;  %v1320_v50 = vrot.slane %v349_v35, 2  ;;  %v633_v51 = vadd.f32 %v564_v47, %v176_v16  ;;  %v4432_v24 = vld [vmem:[#allocation2 + $0x30] sm:$0xff]  ;;  %p4262_p4 = scmp.ne.s32.totalorder %s4104_s9, %s4261_s10  ;;  %p4267_p6 = scmp.lt.s32.totalorder %s4261_s10, %s4261_s10 }
  0x41   :  { %v758_v52 = vadd.f32 %v690_v48, %v233_v23  ;;  %v816_v53 = vsel %vm434_vm0, %v814_v45, %v815_v46  ;;  %v885_v54 = vadd.f32 %v815_v46, %v292_v28  ;;  %v941_v56 = vrot.slane %v632_v44, 2 }
  0x42   :  { %v884_v55 = vadd.f32 %v816_v53, %v291_v27  ;;  %v1321_v57 = vrot.slane %v4406_v36, 2  ;;  %v379_v58 = vadd.f32 %v4400_v32, %v118_v7  ;;  %v942_v59 = vrot.slane %v633_v51, 2  ;;  %p4268_p7 = por %p4267_p6, %p4266_p5 }
  0x43   :  { %v1069_v60 = vrot.slane %v885_v54, 7  ;;  %v148_v61 = vmul.f32 %v4349_v6, %v4342_v2  ;;  %v4419_v62 = vmul.f32 %v4349_v6, %v4344_v3  ;;  %v177_v5 = vmul.f32 %v4358_v11, %v4342_v2 }
  0x44   :  { %v1068_v63 = vrot.slane %v884_v55, 7  ;;  %v1322_v0 = vsel %vm940_vm2, %v1320_v50, %v1321_v57  ;;  %v506_v1 = vadd.f32 %v436_v34, %v379_v58  ;;  %v943_v9 = vsel %vm940_vm2, %v941_v56, %v942_v59  ;;  %p4269_p8 = pnand %p4268_p7, %p4262_p4 }
  0x45   :  { %v178_v7 = vmul.f32 %v4358_v11, %v4344_v3  ;;  %v206_v10 = vmul.f32 %v4360_v12, %v4362_v13  ;;  %v207_v15 = vmul.f32 %v4360_v12, %v4364_v14  ;;  %v1011_v16 = vadd.f32 %v943_v9, %v505_v43 }
  0x46   :  { %v1070_v17 = vsel %vm1067_vm3, %v1068_v63, %v1069_v60  ;;  %v1138_v18 = vadd.f32 %v1068_v63, %v758_v52  ;;  %v1012_v23 = vadd.f32 %v942_v59, %v506_v1  ;;  %v235_v26 = vmul.f32 %v4372_v19, %v4362_v13 }
  0x47   :  { %v1139_v2 = vadd.f32 %v1070_v17, %v759_v49  ;;  %v236_v27 = vmul.f32 %v4372_v19, %v4364_v14  ;;  %v264_v28 = vmul.f32 %v4374_v20, %v4362_v13  ;;  %v265_v30 = vmul.f32 %v4374_v20, %v4364_v14 }
  0x48   :  { %v1194_v29 = vrot.slane %v1138_v18, 1  ;;  %v293_v33 = vmul.f32 %v4376_v21, %v4432_v24  ;;  %v294_v34 = vmul.f32 %v4376_v21, %v4434_v25  ;;  %v322_v36 = vmul.f32 %v4378_v22, %v4432_v24 }
  0x49   :  { %v1195_v35 = vrot.slane %v1139_v2, 1  ;;  %v323_v37 = vmul.f32 %v4378_v22, %v4434_v25  ;;  %v351_v38 = vmul.f32 %v4397_v31, %v4432_v24  ;;  %v4456_v39 = vmul.f32 %v4397_v31, %v4434_v25 }
  0x4a   :  { %v380_v40 = vadd.f32 %v4400_v32, %v4354_v8  ;;  %v438_v41 = vrot.slane %v148_v61, 1  ;;  %v439_v42 = vrot.slane %v4419_v62, 1  ;;  %v565_v45 = vrot.slane %v206_v10, 6 }
  0x4b   :  { %v1196_v43 = vsel %vm434_vm0, %v1194_v29, %v1195_v35  ;;  %v1265_v44 = vadd.f32 %v1195_v35, %v1012_v23  ;;  %v566_v46 = vrot.slane %v207_v15, 6  ;;  %v691_v49 = vrot.slane %v264_v28, 1  ;;  %v4482_v29 = vld [vmem:[#allocation2 + $0x40] sm:$0xff] }
  0x4c   :  { %v1264_v47 = vadd.f32 %v1196_v43, %v1011_v16  ;;  %v440_v48 = vsel %vm434_vm0, %v438_v41, %v439_v42  ;;  %v692_v50 = vrot.slane %v265_v30, 1  ;;  %v634_v54 = vadd.f32 %v565_v45, %v177_v5 }
  0x4d   :  { %v1391_v51 = vadd.f32 %v1321_v57, %v1265_v44  ;;  %v507_v52 = vadd.f32 %v440_v48, %v380_v40  ;;  %v567_v53 = vsel %vm561_vm1, %v565_v45, %v566_v46  ;;  %v817_v60 = vrot.slane %v322_v36, 1 }
  0x4e   :  { %v1390_v55 = vadd.f32 %v1322_v0, %v1264_v47  ;;  %v635_v8 = vadd.f32 %v567_v53, %v178_v7  ;;  %v693_v56 = vsel %vm434_vm0, %v691_v49, %v692_v50  ;;  %v761_v58 = vadd.f32 %v692_v50, %v236_v27 }
  0x4f   :  { %4015 = vst [vmem:[#allocation9 + $0x8] sm:$0x3f] %v1391_v51  ;;  %v760_v59 = vadd.f32 %v693_v56, %v235_v26  ;;  %v818_v61 = vrot.slane %v323_v37, 1  ;;  %v944_v62 = vrot.slane %v634_v54, 2  ;;  %v1323_v1 = vrot.slane %v351_v38, 2 }
  0x50   :  { %4014 = vst [vmem:[#allocation9] sm:$0xff] %v1390_v55  ;;  %v945_v63 = vrot.slane %v635_v8, 2  ;;  %v1324_v9 = vrot.slane %v4456_v39, 2  ;;  %v120_v57 = vmul.f32 %v4346_v4, %v4344_v3  ;;  %v121_v7 = vmul.f32 %v4346_v4, %v4362_v13 }
  0x51   :  { %v819_v5 = vsel %vm434_vm0, %v817_v60, %v818_v61  ;;  %v887_v0 = vadd.f32 %v818_v61, %v294_v34  ;;  %v150_v10 = vmul.f32 %v4349_v6, %v4362_v13  ;;  %v4478_v3 = vmul.f32 %v4349_v6, %v4364_v14  ;;  %v4488_v34 = vld [vmem:[#allocation2 + $0x48] sm:$0xff] }
  0x52   :  { %v886_v15 = vadd.f32 %v819_v5, %v293_v33  ;;  %v946_v16 = vsel %vm940_vm2, %v944_v62, %v945_v63  ;;  %v1325_v17 = vsel %vm940_vm2, %v1323_v1, %v1324_v9  ;;  %v381_v18 = vadd.f32 %v4400_v32, %v120_v57 }
  0x53   :  { %v1013_v23 = vadd.f32 %v946_v16, %v507_v52  ;;  %v1072_v2 = vrot.slane %v887_v0, 7  ;;  %v179_v26 = vmul.f32 %v4358_v11, %v4362_v13  ;;  %v180_v30 = vmul.f32 %v4358_v11, %v4364_v14 }
  0x54   :  { %v1071_v27 = vrot.slane %v886_v15, 7  ;;  %v508_v28 = vadd.f32 %v439_v42, %v381_v18  ;;  %v208_v33 = vmul.f32 %v4360_v12, %v4432_v24  ;;  %v209_v35 = vmul.f32 %v4360_v12, %v4434_v25 }
  0x55   :  { %v237_v36 = vmul.f32 %v4372_v19, %v4432_v24  ;;  %v238_v13 = vmul.f32 %v4372_v19, %v4434_v25  ;;  %v266_v37 = vmul.f32 %v4374_v20, %v4432_v24  ;;  %v267_v41 = vmul.f32 %v4374_v20, %v4434_v25 }
  0x56   :  { %v1073_v38 = vsel %vm1067_vm3, %v1071_v27, %v1072_v2  ;;  %v1140_v39 = vadd.f32 %v1071_v27, %v760_v59  ;;  %v1014_v40 = vadd.f32 %v945_v63, %v508_v28  ;;  %v295_v43 = vmul.f32 %v4376_v21, %v4482_v29 }
  0x57   :  { %v1141_v42 = vadd.f32 %v1073_v38, %v761_v58  ;;  %v296_v44 = vmul.f32 %v4376_v21, %v4488_v34  ;;  %v324_v45 = vmul.f32 %v4378_v22, %v4482_v29  ;;  %v325_v47 = vmul.f32 %v4378_v22, %v4488_v34 }
  0x58   :  { %v1197_v46 = vrot.slane %v1140_v39, 1  ;;  %v353_v48 = vmul.f32 %v4397_v31, %v4482_v29  ;;  %v4513_v49 = vmul.f32 %v4397_v31, %v4488_v34  ;;  %v382_v51 = vadd.f32 %v4400_v32, %v121_v7 }
  0x59   :  { %v1198_v50 = vrot.slane %v1141_v42, 1  ;;  %v441_v52 = vrot.slane %v150_v10, 1  ;;  %v442_v53 = vrot.slane %v4478_v3, 1  ;;  %v568_v54 = vrot.slane %v208_v33, 6  ;;  %v4538_v42 = vld [vmem:[#allocation2 + $0x50] sm:$0xff] }
  0x5a   :  { %v569_v55 = vrot.slane %v209_v35, 6  ;;  %v694_v8 = vrot.slane %v266_v37, 1  ;;  %v695_v56 = vrot.slane %v267_v41, 1  ;;  %v820_v61 = vrot.slane %v324_v45, 1  ;;  %v4544_v45 = vld [vmem:[#allocation2 + $0x58] sm:$0xff] }
  0x5b   :  { %v1199_v58 = vsel %vm434_vm0, %v1197_v46, %v1198_v50  ;;  %v1267_v59 = vadd.f32 %v1198_v50, %v1014_v40  ;;  %v443_v60 = vsel %vm434_vm0, %v441_v52, %v442_v53  ;;  %v636_v57 = vadd.f32 %v568_v54, %v179_v26 }
  0x5c   :  { %v1266_v62 = vadd.f32 %v1199_v58, %v1013_v23  ;;  %v509_v63 = vadd.f32 %v443_v60, %v382_v51  ;;  %v570_v1 = vsel %vm561_vm1, %v568_v54, %v569_v55  ;;  %v696_v7 = vsel %vm434_vm0, %v694_v8, %v695_v56 }
  0x5d   :  { %v1393_v5 = vadd.f32 %v1324_v9, %v1267_v59  ;;  %v637_v0 = vadd.f32 %v570_v1, %v180_v30  ;;  %v763_v10 = vadd.f32 %v695_v56, %v238_v13  ;;  %v762_v16 = vadd.f32 %v696_v7, %v237_v36 }
  0x5e   :  { %v1392_v15 = vadd.f32 %v1325_v17, %v1266_v62  ;;  %v821_v18 = vrot.slane %v325_v47, 1  ;;  %v947_v2 = vrot.slane %v636_v57, 2  ;;  %v1326_v27 = vrot.slane %v353_v48, 2 }
  0x5f   :  { %4017 = vst [vmem:[#allocation9 + $0x18] sm:$0x3f] %v1393_v5  ;;  %v948_v3 = vrot.slane %v637_v0, 2  ;;  %v1327_v28 = vrot.slane %v4513_v49, 2  ;;  %v122_v23 = vmul.f32 %v4346_v4, %v4364_v14  ;;  %v123_v30 = vmul.f32 %v4346_v4, %v4432_v24 }
  0x60   :  { %4016 = vst [vmem:[#allocation9 + $0x10] sm:$0xff] %v1392_v15  ;;  %v822_v26 = vsel %vm434_vm0, %v820_v61, %v821_v18  ;;  %v889_v9 = vadd.f32 %v821_v18, %v296_v44  ;;  %v152_v17 = vmul.f32 %v4349_v6, %v4432_v24  ;;  %v4534_v14 = vmul.f32 %v4349_v6, %v4434_v25 }
  0x61   :  { %v888_v33 = vadd.f32 %v822_v26, %v295_v43  ;;  %v949_v35 = vsel %vm940_vm2, %v947_v2, %v948_v3  ;;  %v1328_v36 = vsel %vm940_vm2, %v1326_v27, %v1327_v28  ;;  %v383_v13 = vadd.f32 %v4400_v32, %v122_v23 }
  0x62   :  { %v1015_v37 = vadd.f32 %v949_v35, %v509_v63  ;;  %v1075_v38 = vrot.slane %v889_v9, 7  ;;  %v181_v39 = vmul.f32 %v4358_v11, %v4432_v24  ;;  %v182_v43 = vmul.f32 %v4358_v11, %v4434_v25 }
  0x63   :  { %v1074_v40 = vrot.slane %v888_v33, 7  ;;  %v510_v41 = vadd.f32 %v442_v53, %v383_v13  ;;  %v210_v44 = vmul.f32 %v4360_v12, %v4482_v29  ;;  %v211_v46 = vmul.f32 %v4360_v12, %v4488_v34 }
  0x64   :  { %v239_v47 = vmul.f32 %v4372_v19, %v4482_v29  ;;  %v240_v24 = vmul.f32 %v4372_v19, %v4488_v34  ;;  %v268_v48 = vmul.f32 %v4374_v20, %v4482_v29  ;;  %v269_v52 = vmul.f32 %v4374_v20, %v4488_v34 }
  0x65   :  { %v1076_v49 = vsel %vm1067_vm3, %v1074_v40, %v1075_v38  ;;  %v1142_v50 = vadd.f32 %v1074_v40, %v762_v16  ;;  %v1016_v51 = vadd.f32 %v948_v3, %v510_v41  ;;  %v297_v54 = vmul.f32 %v4376_v21, %v4538_v42 }
  0x66   :  { %v1143_v53 = vadd.f32 %v1076_v49, %v763_v10  ;;  %v298_v55 = vmul.f32 %v4376_v21, %v4544_v45  ;;  %v326_v8 = vmul.f32 %v4378_v22, %v4538_v42  ;;  %v327_v58 = vmul.f32 %v4378_v22, %v4544_v45 }
  0x67   :  { %v1200_v56 = vrot.slane %v1142_v50, 1  ;;  %v355_v59 = vmul.f32 %v4397_v31, %v4538_v42  ;;  %v4569_v60 = vmul.f32 %v4397_v31, %v4544_v45  ;;  %v384_v62 = vadd.f32 %v4400_v32, %v123_v30 }
  0x68   :  { %v1201_v61 = vrot.slane %v1143_v53, 1  ;;  %v444_v63 = vrot.slane %v152_v17, 1  ;;  %v445_v1 = vrot.slane %v4534_v14, 1  ;;  %v571_v57 = vrot.slane %v210_v44, 6  ;;  %v4594_v53 = vld [vmem:[#allocation2 + $0x60] sm:$0xff] }
  0x69   :  { %v572_v5 = vrot.slane %v211_v46, 6  ;;  %v697_v0 = vrot.slane %v268_v48, 1  ;;  %v698_v7 = vrot.slane %v269_v52, 1  ;;  %v823_v18 = vrot.slane %v326_v8, 1  ;;  %v4600_v8 = vld [vmem:[#allocation2 + $0x68] sm:$0xff] }
  0x6a   :  { %v1202_v10 = vsel %vm434_vm0, %v1200_v56, %v1201_v61  ;;  %v1269_v15 = vadd.f32 %v1201_v61, %v1016_v51  ;;  %v446_v16 = vsel %vm434_vm0, %v444_v63, %v445_v1  ;;  %v638_v23 = vadd.f32 %v571_v57, %v181_v39 }
  0x6b   :  { %v1268_v2 = vadd.f32 %v1202_v10, %v1015_v37  ;;  %v511_v3 = vadd.f32 %v446_v16, %v384_v62  ;;  %v573_v27 = vsel %vm561_vm1, %v571_v57, %v572_v5  ;;  %v699_v30 = vsel %vm434_vm0, %v697_v0, %v698_v7 }
  0x6c   :  { %v1395_v26 = vadd.f32 %v1327_v28, %v1269_v15  ;;  %v639_v9 = vadd.f32 %v573_v27, %v182_v43  ;;  %v765_v17 = vadd.f32 %v698_v7, %v240_v24  ;;  %v764_v35 = vadd.f32 %v699_v30, %v239_v47 }
  0x6d   :  { %v1394_v33 = vadd.f32 %v1328_v36, %v1268_v2  ;;  %v824_v13 = vrot.slane %v327_v58, 1  ;;  %v950_v38 = vrot.slane %v638_v23, 2  ;;  %v1329_v40 = vrot.slane %v355_v59, 2 }
  0x6e   :  { %4019 = vst [vmem:[#allocation9 + $0x28] sm:$0x3f] %v1395_v26  ;;  %v951_v14 = vrot.slane %v639_v9, 2  ;;  %v1330_v41 = vrot.slane %v4569_v60, 2  ;;  %v124_v37 = vmul.f32 %v4346_v4, %v4434_v25  ;;  %v125_v43 = vmul.f32 %v4346_v4, %v4482_v29 }
  0x6f   :  { %4018 = vst [vmem:[#allocation9 + $0x20] sm:$0xff] %v1394_v33  ;;  %v825_v39 = vsel %vm434_vm0, %v823_v18, %v824_v13  ;;  %v891_v28 = vadd.f32 %v824_v13, %v298_v55  ;;  %v154_v36 = vmul.f32 %v4349_v6, %v4482_v29  ;;  %v4590_v25 = vmul.f32 %v4349_v6, %v4488_v34 }
  0x70   :  { %v890_v44 = vadd.f32 %v825_v39, %v297_v54  ;;  %v952_v46 = vsel %vm940_vm2, %v950_v38, %v951_v14  ;;  %v1331_v47 = vsel %vm940_vm2, %v1329_v40, %v1330_v41  ;;  %v385_v24 = vadd.f32 %v4400_v32, %v124_v37 }
  0x71   :  { %v1017_v48 = vadd.f32 %v952_v46, %v511_v3  ;;  %v1078_v49 = vrot.slane %v891_v28, 7  ;;  %v183_v50 = vmul.f32 %v4358_v11, %v4482_v29  ;;  %v184_v54 = vmul.f32 %v4358_v11, %v4488_v34 }
  0x72   :  { %v1077_v51 = vrot.slane %v890_v44, 7  ;;  %v512_v52 = vadd.f32 %v445_v1, %v385_v24  ;;  %v212_v55 = vmul.f32 %v4360_v12, %v4538_v42  ;;  %v213_v56 = vmul.f32 %v4360_v12, %v4544_v45 }
  0x73   :  { %v241_v58 = vmul.f32 %v4372_v19, %v4538_v42  ;;  %v242_v29 = vmul.f32 %v4372_v19, %v4544_v45  ;;  %v270_v59 = vmul.f32 %v4374_v20, %v4538_v42  ;;  %v271_v63 = vmul.f32 %v4374_v20, %v4544_v45 }
  0x74   :  { %v1079_v60 = vsel %vm1067_vm3, %v1077_v51, %v1078_v49  ;;  %v1144_v61 = vadd.f32 %v1077_v51, %v764_v35  ;;  %v1018_v62 = vadd.f32 %v951_v14, %v512_v52  ;;  %v299_v57 = vmul.f32 %v4376_v21, %v4594_v53 }
  0x75   :  { %v1145_v1 = vadd.f32 %v1079_v60, %v765_v17  ;;  %v300_v5 = vmul.f32 %v4376_v21, %v4600_v8  ;;  %v328_v0 = vmul.f32 %v4378_v22, %v4594_v53  ;;  %v329_v10 = vmul.f32 %v4378_v22, %v4600_v8 }
  0x76   :  { %v1203_v7 = vrot.slane %v1144_v61, 1  ;;  %v357_v15 = vmul.f32 %v4397_v31, %v4594_v53  ;;  %v4625_v16 = vmul.f32 %v4397_v31, %v4600_v8  ;;  %v386_v2 = vadd.f32 %v4400_v32, %v125_v43 }
  0x77   :  { %v1204_v18 = vrot.slane %v1145_v1, 1  ;;  %v447_v3 = vrot.slane %v154_v36, 1  ;;  %v448_v27 = vrot.slane %v4590_v25, 1  ;;  %v574_v23 = vrot.slane %v212_v55, 6  ;;  %v4650_v1 = vld [vmem:[#allocation2 + $0x70] sm:$0xff] }
  0x78   :  { %v575_v26 = vrot.slane %v213_v56, 6  ;;  %v700_v9 = vrot.slane %v270_v59, 1  ;;  %v701_v30 = vrot.slane %v271_v63, 1  ;;  %v826_v13 = vrot.slane %v328_v0, 1  ;;  %v4656_v0 = vld [vmem:[#allocation2 + $0x78] sm:$0xff] }
  0x79   :  { %v1205_v17 = vsel %vm434_vm0, %v1203_v7, %v1204_v18  ;;  %v1271_v33 = vadd.f32 %v1204_v18, %v1018_v62  ;;  %v449_v35 = vsel %vm434_vm0, %v447_v3, %v448_v27  ;;  %v640_v37 = vadd.f32 %v574_v23, %v183_v50 }
  0x7a   :  { %v1270_v38 = vadd.f32 %v1205_v17, %v1017_v48  ;;  %v513_v14 = vadd.f32 %v449_v35, %v386_v2  ;;  %v576_v40 = vsel %vm561_vm1, %v574_v23, %v575_v26  ;;  %v702_v43 = vsel %vm434_vm0, %v700_v9, %v701_v30 }
  0x7b   :  { %v1397_v39 = vadd.f32 %v1330_v41, %v1271_v33  ;;  %v641_v28 = vadd.f32 %v576_v40, %v184_v54  ;;  %v767_v36 = vadd.f32 %v701_v30, %v242_v29  ;;  %v766_v46 = vadd.f32 %v702_v43, %v241_v58 }
  0x7c   :  { %v1396_v44 = vadd.f32 %v1331_v47, %v1270_v38  ;;  %v827_v24 = vrot.slane %v329_v10, 1  ;;  %v953_v49 = vrot.slane %v640_v37, 2  ;;  %v1332_v51 = vrot.slane %v357_v15, 2 }
  0x7d   :  { %4021 = vst [vmem:[#allocation9 + $0x38] sm:$0x3f] %v1397_v39  ;;  %v954_v25 = vrot.slane %v641_v28, 2  ;;  %v1333_v52 = vrot.slane %v4625_v16, 2  ;;  %v126_v48 = vmul.f32 %v4346_v4, %v4488_v34  ;;  %v127_v54 = vmul.f32 %v4346_v4, %v4538_v42 }
  0x7e   :  { %4020 = vst [vmem:[#allocation9 + $0x30] sm:$0xff] %v1396_v44  ;;  %v828_v50 = vsel %vm434_vm0, %v826_v13, %v827_v24  ;;  %v893_v41 = vadd.f32 %v827_v24, %v300_v5  ;;  %v156_v47 = vmul.f32 %v4349_v6, %v4538_v42  ;;  %v4646_v34 = vmul.f32 %v4349_v6, %v4544_v45 }
  0x7f   :  { %v892_v55 = vadd.f32 %v828_v50, %v299_v57  ;;  %v955_v56 = vsel %vm940_vm2, %v953_v49, %v954_v25  ;;  %v1334_v58 = vsel %vm940_vm2, %v1332_v51, %v1333_v52  ;;  %v387_v29 = vadd.f32 %v4400_v32, %v126_v48 }
  0x80   :  { %v1019_v59 = vadd.f32 %v955_v56, %v513_v14  ;;  %v1081_v60 = vrot.slane %v893_v41, 7  ;;  %v185_v61 = vmul.f32 %v4358_v11, %v4538_v42  ;;  %v186_v57 = vmul.f32 %v4358_v11, %v4544_v45 }
  0x81   :  { %v1080_v62 = vrot.slane %v892_v55, 7  ;;  %v514_v63 = vadd.f32 %v448_v27, %v387_v29  ;;  %v214_v5 = vmul.f32 %v4360_v12, %v4594_v53  ;;  %v215_v7 = vmul.f32 %v4360_v12, %v4600_v8 }
  0x82   :  { %v243_v10 = vmul.f32 %v4372_v19, %v4594_v53  ;;  %v244_v42 = vmul.f32 %v4372_v19, %v4600_v8  ;;  %v272_v15 = vmul.f32 %v4374_v20, %v4594_v53  ;;  %v273_v3 = vmul.f32 %v4374_v20, %v4600_v8 }
  0x83   :  { %v1082_v16 = vsel %vm1067_vm3, %v1080_v62, %v1081_v60  ;;  %v1146_v18 = vadd.f32 %v1080_v62, %v766_v46  ;;  %v1020_v2 = vadd.f32 %v954_v25, %v514_v63  ;;  %v301_v23 = vmul.f32 %v4376_v21, %v4650_v1 }
  0x84   :  { %v1147_v27 = vadd.f32 %v1082_v16, %v767_v36  ;;  %v302_v26 = vmul.f32 %v4376_v21, %v4656_v0  ;;  %v330_v9 = vmul.f32 %v4378_v22, %v4650_v1  ;;  %v331_v17 = vmul.f32 %v4378_v22, %v4656_v0 }
  0x85   :  { %v1206_v30 = vrot.slane %v1146_v18, 1  ;;  %v359_v33 = vmul.f32 %v4397_v31, %v4650_v1  ;;  %v4681_v35 = vmul.f32 %v4397_v31, %v4656_v0  ;;  %v388_v38 = vadd.f32 %v4400_v32, %v127_v54 }
  0x86   :  { %v1207_v13 = vrot.slane %v1147_v27, 1  ;;  %v450_v14 = vrot.slane %v156_v47, 1  ;;  %v451_v40 = vrot.slane %v4646_v34, 1  ;;  %v577_v37 = vrot.slane %v214_v5, 6  ;;  %v4706_v27 = vld [vmem:[#allocation2 + $0x80] sm:$0xff] }
  0x87   :  { %v578_v39 = vrot.slane %v215_v7, 6  ;;  %v703_v28 = vrot.slane %v272_v15, 1  ;;  %v704_v43 = vrot.slane %v273_v3, 1  ;;  %v829_v24 = vrot.slane %v330_v9, 1  ;;  %v4712_v9 = vld [vmem:[#allocation2 + $0x88] sm:$0xff] }
  0x88   :  { %v1208_v36 = vsel %vm434_vm0, %v1206_v30, %v1207_v13  ;;  %v1273_v44 = vadd.f32 %v1207_v13, %v1020_v2  ;;  %v452_v46 = vsel %vm434_vm0, %v450_v14, %v451_v40  ;;  %v642_v48 = vadd.f32 %v577_v37, %v185_v61 }
  0x89   :  { %v1272_v49 = vadd.f32 %v1208_v36, %v1019_v59  ;;  %v515_v25 = vadd.f32 %v452_v46, %v388_v38  ;;  %v579_v51 = vsel %vm561_vm1, %v577_v37, %v578_v39  ;;  %v705_v54 = vsel %vm434_vm0, %v703_v28, %v704_v43 }
  0x8a   :  { %v1399_v50 = vadd.f32 %v1333_v52, %v1273_v44  ;;  %v643_v41 = vadd.f32 %v579_v51, %v186_v57  ;;  %v769_v47 = vadd.f32 %v704_v43, %v244_v42  ;;  %v768_v56 = vadd.f32 %v705_v54, %v243_v10 }
  0x8b   :  { %v1398_v55 = vadd.f32 %v1334_v58, %v1272_v49  ;;  %v830_v29 = vrot.slane %v331_v17, 1  ;;  %v956_v60 = vrot.slane %v642_v48, 2  ;;  %v1335_v62 = vrot.slane %v359_v33, 2 }
  0x8c   :  { %4023 = vst [vmem:[#allocation9 + $0x48] sm:$0x3f] %v1399_v50  ;;  %v957_v34 = vrot.slane %v643_v41, 2  ;;  %v1336_v63 = vrot.slane %v4681_v35, 2  ;;  %v128_v59 = vmul.f32 %v4346_v4, %v4544_v45  ;;  %v129_v57 = vmul.f32 %v4346_v4, %v4594_v53 }
  0x8d   :  { %4022 = vst [vmem:[#allocation9 + $0x40] sm:$0xff] %v1398_v55  ;;  %v831_v61 = vsel %vm434_vm0, %v829_v24, %v830_v29  ;;  %v895_v52 = vadd.f32 %v830_v29, %v302_v26  ;;  %v158_v58 = vmul.f32 %v4349_v6, %v4594_v53  ;;  %v4702_v45 = vmul.f32 %v4349_v6, %v4600_v8 }
  0x8e   :  { %v894_v5 = vadd.f32 %v831_v61, %v301_v23  ;;  %v958_v7 = vsel %vm940_vm2, %v956_v60, %v957_v34  ;;  %v1337_v10 = vsel %vm940_vm2, %v1335_v62, %v1336_v63  ;;  %v389_v42 = vadd.f32 %v4400_v32, %v128_v59 }
  0x8f   :  { %v1021_v15 = vadd.f32 %v958_v7, %v515_v25  ;;  %v1084_v16 = vrot.slane %v895_v52, 7  ;;  %v187_v18 = vmul.f32 %v4358_v11, %v4594_v53  ;;  %v188_v23 = vmul.f32 %v4358_v11, %v4600_v8 }
  0x90   :  { %v1083_v2 = vrot.slane %v894_v5, 7  ;;  %v516_v3 = vadd.f32 %v451_v40, %v389_v42  ;;  %v216_v26 = vmul.f32 %v4360_v12, %v4650_v1  ;;  %v217_v30 = vmul.f32 %v4360_v12, %v4656_v0 }
  0x91   :  { %v245_v17 = vmul.f32 %v4372_v19, %v4650_v1  ;;  %v246_v53 = vmul.f32 %v4372_v19, %v4656_v0  ;;  %v274_v33 = vmul.f32 %v4374_v20, %v4650_v1  ;;  %v275_v14 = vmul.f32 %v4374_v20, %v4656_v0 }
  0x92   :  { %v1085_v35 = vsel %vm1067_vm3, %v1083_v2, %v1084_v16  ;;  %v1148_v13 = vadd.f32 %v1083_v2, %v768_v56  ;;  %v1022_v38 = vadd.f32 %v957_v34, %v516_v3  ;;  %v303_v37 = vmul.f32 %v4376_v21, %v4706_v27 }
  0x93   :  { %v1149_v40 = vadd.f32 %v1085_v35, %v769_v47  ;;  %v304_v39 = vmul.f32 %v4376_v21, %v4712_v9  ;;  %v332_v28 = vmul.f32 %v4378_v22, %v4706_v27  ;;  %v333_v36 = vmul.f32 %v4378_v22, %v4712_v9 }
  0x94   :  { %v1209_v43 = vrot.slane %v1148_v13, 1  ;;  %v361_v44 = vmul.f32 %v4397_v31, %v4706_v27  ;;  %v4737_v46 = vmul.f32 %v4397_v31, %v4712_v9  ;;  %v390_v49 = vadd.f32 %v4400_v32, %v129_v57 }
  0x95   :  { %v1210_v24 = vrot.slane %v1149_v40, 1  ;;  %v453_v25 = vrot.slane %v158_v58, 1  ;;  %v454_v51 = vrot.slane %v4702_v45, 1  ;;  %v580_v48 = vrot.slane %v216_v26, 6  ;;  %v4762_v40 = vld [vmem:[#allocation2 + $0x90] sm:$0xff] }
  0x96   :  { %v581_v50 = vrot.slane %v217_v30, 6  ;;  %v706_v41 = vrot.slane %v274_v33, 1  ;;  %v707_v54 = vrot.slane %v275_v14, 1  ;;  %v832_v29 = vrot.slane %v332_v28, 1  ;;  %v4768_v28 = vld [vmem:[#allocation2 + $0x98] sm:$0xff] }
  0x97   :  { %v1211_v47 = vsel %vm434_vm0, %v1209_v43, %v1210_v24  ;;  %v1275_v55 = vadd.f32 %v1210_v24, %v1022_v38  ;;  %v455_v56 = vsel %vm434_vm0, %v453_v25, %v454_v51  ;;  %v644_v59 = vadd.f32 %v580_v48, %v187_v18 }
  0x98   :  { %v1274_v60 = vadd.f32 %v1211_v47, %v1021_v15  ;;  %v517_v34 = vadd.f32 %v455_v56, %v390_v49  ;;  %v582_v62 = vsel %vm561_vm1, %v580_v48, %v581_v50  ;;  %v708_v57 = vsel %vm434_vm0, %v706_v41, %v707_v54 }
  0x99   :  { %v1401_v61 = vadd.f32 %v1336_v63, %v1275_v55  ;;  %v645_v52 = vadd.f32 %v582_v62, %v188_v23  ;;  %v771_v58 = vadd.f32 %v707_v54, %v246_v53  ;;  %v770_v7 = vadd.f32 %v708_v57, %v245_v17 }
  0x9a   :  { %v1400_v5 = vadd.f32 %v1337_v10, %v1274_v60  ;;  %v833_v42 = vrot.slane %v333_v36, 1  ;;  %v959_v16 = vrot.slane %v644_v59, 2  ;;  %v1338_v2 = vrot.slane %v361_v44, 2 }
  0x9b   :  { %4025 = vst [vmem:[#allocation9 + $0x58] sm:$0x3f] %v1401_v61  ;;  %v960_v45 = vrot.slane %v645_v52, 2  ;;  %v1339_v3 = vrot.slane %v4737_v46, 2  ;;  %v130_v15 = vmul.f32 %v4346_v4, %v4600_v8  ;;  %v131_v23 = vmul.f32 %v4346_v4, %v4650_v1 }
  0x9c   :  { %4024 = vst [vmem:[#allocation9 + $0x50] sm:$0xff] %v1400_v5  ;;  %v834_v18 = vsel %vm434_vm0, %v832_v29, %v833_v42  ;;  %v897_v63 = vadd.f32 %v833_v42, %v304_v39  ;;  %v160_v10 = vmul.f32 %v4349_v6, %v4650_v1  ;;  %v4758_v8 = vmul.f32 %v4349_v6, %v4656_v0 }
  0x9d   :  { %v896_v26 = vadd.f32 %v834_v18, %v303_v37  ;;  %v961_v30 = vsel %vm940_vm2, %v959_v16, %v960_v45  ;;  %v1340_v17 = vsel %vm940_vm2, %v1338_v2, %v1339_v3  ;;  %v391_v53 = vadd.f32 %v4400_v32, %v130_v15 }
  0x9e   :  { %v1023_v33 = vadd.f32 %v961_v30, %v517_v34  ;;  %v1087_v35 = vrot.slane %v897_v63, 7  ;;  %v189_v13 = vmul.f32 %v4358_v11, %v4650_v1  ;;  %v190_v37 = vmul.f32 %v4358_v11, %v4656_v0 }
  0x9f   :  { %v1086_v38 = vrot.slane %v896_v26, 7  ;;  %v518_v14 = vadd.f32 %v454_v51, %v391_v53  ;;  %v218_v39 = vmul.f32 %v4360_v12, %v4706_v27  ;;  %v219_v43 = vmul.f32 %v4360_v12, %v4712_v9 }
  0xa0   :  { %v247_v36 = vmul.f32 %v4372_v19, %v4706_v27  ;;  %v248_v1 = vmul.f32 %v4372_v19, %v4712_v9  ;;  %v276_v44 = vmul.f32 %v4374_v20, %v4706_v27  ;;  %v277_v25 = vmul.f32 %v4374_v20, %v4712_v9 }
  0xa1   :  { %v1088_v46 = vsel %vm1067_vm3, %v1086_v38, %v1087_v35  ;;  %v1150_v24 = vadd.f32 %v1086_v38, %v770_v7  ;;  %v1024_v49 = vadd.f32 %v960_v45, %v518_v14  ;;  %v305_v48 = vmul.f32 %v4376_v21, %v4762_v40 }
  0xa2   :  { %v1151_v51 = vadd.f32 %v1088_v46, %v771_v58  ;;  %v306_v50 = vmul.f32 %v4376_v21, %v4768_v28  ;;  %v334_v41 = vmul.f32 %v4378_v22, %v4762_v40  ;;  %v335_v47 = vmul.f32 %v4378_v22, %v4768_v28 }
  0xa3   :  { %v1212_v54 = vrot.slane %v1150_v24, 1  ;;  %v363_v55 = vmul.f32 %v4397_v31, %v4762_v40  ;;  %v4793_v56 = vmul.f32 %v4397_v31, %v4768_v28  ;;  %v392_v60 = vadd.f32 %v4400_v32, %v131_v23 }
  0xa4   :  { %v1213_v29 = vrot.slane %v1151_v51, 1  ;;  %v456_v34 = vrot.slane %v160_v10, 1  ;;  %v457_v62 = vrot.slane %v4758_v8, 1  ;;  %v583_v59 = vrot.slane %v218_v39, 6  ;;  %v4818_v51 = vld [vmem:[#allocation2 + $0xa0] sm:$0xff] }
  0xa5   :  { %v584_v61 = vrot.slane %v219_v43, 6  ;;  %v709_v52 = vrot.slane %v276_v44, 1  ;;  %v710_v57 = vrot.slane %v277_v25, 1  ;;  %v835_v42 = vrot.slane %v334_v41, 1  ;;  %v4824_v41 = vld [vmem:[#allocation2 + $0xa8] sm:$0xff] }
  0xa6   :  { %v1214_v58 = vsel %vm434_vm0, %v1212_v54, %v1213_v29  ;;  %v1277_v5 = vadd.f32 %v1213_v29, %v1024_v49  ;;  %v458_v7 = vsel %vm434_vm0, %v456_v34, %v457_v62  ;;  %v646_v15 = vadd.f32 %v583_v59, %v189_v13 }
  0xa7   :  { %v1276_v16 = vadd.f32 %v1214_v58, %v1023_v33  ;;  %v519_v45 = vadd.f32 %v458_v7, %v392_v60  ;;  %v585_v2 = vsel %vm561_vm1, %v583_v59, %v584_v61  ;;  %v711_v23 = vsel %vm434_vm0, %v709_v52, %v710_v57 }
  0xa8   :  { %v1403_v18 = vadd.f32 %v1339_v3, %v1277_v5  ;;  %v647_v63 = vadd.f32 %v585_v2, %v190_v37  ;;  %v773_v10 = vadd.f32 %v710_v57, %v248_v1  ;;  %v772_v30 = vadd.f32 %v711_v23, %v247_v36 }
  0xa9   :  { %v1402_v26 = vadd.f32 %v1340_v17, %v1276_v16  ;;  %v836_v53 = vrot.slane %v335_v47, 1  ;;  %v962_v35 = vrot.slane %v646_v15, 2  ;;  %v1341_v38 = vrot.slane %v363_v55, 2 }
  0xaa   :  { %4027 = vst [vmem:[#allocation9 + $0x68] sm:$0x3f] %v1403_v18  ;;  %v963_v8 = vrot.slane %v647_v63, 2  ;;  %v1342_v14 = vrot.slane %v4793_v56, 2  ;;  %v132_v33 = vmul.f32 %v4346_v4, %v4656_v0  ;;  %v133_v37 = vmul.f32 %v4346_v4, %v4706_v27 }
  0xab   :  { %4026 = vst [vmem:[#allocation9 + $0x60] sm:$0xff] %v1402_v26  ;;  %v837_v13 = vsel %vm434_vm0, %v835_v42, %v836_v53  ;;  %v899_v3 = vadd.f32 %v836_v53, %v306_v50  ;;  %v162_v17 = vmul.f32 %v4349_v6, %v4706_v27  ;;  %v4814_v0 = vmul.f32 %v4349_v6, %v4712_v9 }
  0xac   :  { %v898_v39 = vadd.f32 %v837_v13, %v305_v48  ;;  %v964_v43 = vsel %vm940_vm2, %v962_v35, %v963_v8  ;;  %v1343_v36 = vsel %vm940_vm2, %v1341_v38, %v1342_v14  ;;  %v393_v1 = vadd.f32 %v4400_v32, %v132_v33 }
  0xad   :  { %v1025_v44 = vadd.f32 %v964_v43, %v519_v45  ;;  %v1090_v46 = vrot.slane %v899_v3, 7  ;;  %v191_v24 = vmul.f32 %v4358_v11, %v4706_v27  ;;  %v192_v48 = vmul.f32 %v4358_v11, %v4712_v9 }
  0xae   :  { %v1089_v49 = vrot.slane %v898_v39, 7  ;;  %v520_v25 = vadd.f32 %v457_v62, %v393_v1  ;;  %v220_v50 = vmul.f32 %v4360_v12, %v4762_v40  ;;  %v221_v54 = vmul.f32 %v4360_v12, %v4768_v28 }
  0xaf   :  { %v249_v47 = vmul.f32 %v4372_v19, %v4762_v40  ;;  %v250_v27 = vmul.f32 %v4372_v19, %v4768_v28  ;;  %v278_v55 = vmul.f32 %v4374_v20, %v4762_v40  ;;  %v279_v34 = vmul.f32 %v4374_v20, %v4768_v28 }
  0xb0   :  { %v1091_v56 = vsel %vm1067_vm3, %v1089_v49, %v1090_v46  ;;  %v1152_v29 = vadd.f32 %v1089_v49, %v772_v30  ;;  %v1026_v60 = vadd.f32 %v963_v8, %v520_v25  ;;  %v307_v59 = vmul.f32 %v4376_v21, %v4818_v51 }
  0xb1   :  { %v1153_v62 = vadd.f32 %v1091_v56, %v773_v10  ;;  %v308_v61 = vmul.f32 %v4376_v21, %v4824_v41  ;;  %v336_v52 = vmul.f32 %v4378_v22, %v4818_v51  ;;  %v337_v58 = vmul.f32 %v4378_v22, %v4824_v41 }
  0xb2   :  { %v1215_v57 = vrot.slane %v1152_v29, 1  ;;  %v365_v5 = vmul.f32 %v4397_v31, %v4818_v51  ;;  %v4849_v7 = vmul.f32 %v4397_v31, %v4824_v41  ;;  %v394_v16 = vadd.f32 %v4400_v32, %v133_v37 }
  0xb3   :  { %v1216_v42 = vrot.slane %v1153_v62, 1  ;;  %v459_v45 = vrot.slane %v162_v17, 1  ;;  %v460_v2 = vrot.slane %v4814_v0, 1  ;;  %v586_v15 = vrot.slane %v220_v50, 6  ;;  %v4874_v62 = vld [vmem:[#allocation2 + $0xb0] sm:$0xff] }
  0xb4   :  { %v587_v18 = vrot.slane %v221_v54, 6  ;;  %v712_v63 = vrot.slane %v278_v55, 1  ;;  %v713_v23 = vrot.slane %v279_v34, 1  ;;  %v838_v53 = vrot.slane %v336_v52, 1  ;;  %v4880_v52 = vld [vmem:[#allocation2 + $0xb8] sm:$0xff] }
  0xb5   :  { %v1217_v10 = vsel %vm434_vm0, %v1215_v57, %v1216_v42  ;;  %v1279_v26 = vadd.f32 %v1216_v42, %v1026_v60  ;;  %v461_v30 = vsel %vm434_vm0, %v459_v45, %v460_v2  ;;  %v648_v33 = vadd.f32 %v586_v15, %v191_v24 }
  0xb6   :  { %v1278_v35 = vadd.f32 %v1217_v10, %v1025_v44  ;;  %v521_v8 = vadd.f32 %v461_v30, %v394_v16  ;;  %v588_v38 = vsel %vm561_vm1, %v586_v15, %v587_v18  ;;  %v714_v37 = vsel %vm434_vm0, %v712_v63, %v713_v23 }
  0xb7   :  { %v1405_v13 = vadd.f32 %v1342_v14, %v1279_v26  ;;  %v649_v3 = vadd.f32 %v588_v38, %v192_v48  ;;  %v775_v17 = vadd.f32 %v713_v23, %v250_v27  ;;  %v774_v43 = vadd.f32 %v714_v37, %v249_v47 }
  0xb8   :  { %v1404_v39 = vadd.f32 %v1343_v36, %v1278_v35  ;;  %v839_v1 = vrot.slane %v337_v58, 1  ;;  %v965_v46 = vrot.slane %v648_v33, 2  ;;  %v1344_v49 = vrot.slane %v365_v5, 2 }
  0xb9   :  { %4029 = vst [vmem:[#allocation9 + $0x78] sm:$0x3f] %v1405_v13  ;;  %v966_v0 = vrot.slane %v649_v3, 2  ;;  %v1345_v25 = vrot.slane %v4849_v7, 2  ;;  %v134_v44 = vmul.f32 %v4346_v4, %v4712_v9  ;;  %v135_v48 = vmul.f32 %v4346_v4, %v4762_v40 }
  0xba   :  { %4028 = vst [vmem:[#allocation9 + $0x70] sm:$0xff] %v1404_v39  ;;  %v840_v24 = vsel %vm434_vm0, %v838_v53, %v839_v1  ;;  %v901_v14 = vadd.f32 %v839_v1, %v308_v61  ;;  %v164_v36 = vmul.f32 %v4349_v6, %v4762_v40  ;;  %v4870_v9 = vmul.f32 %v4349_v6, %v4768_v28 }
  0xbb   :  { %v900_v50 = vadd.f32 %v840_v24, %v307_v59  ;;  %v967_v54 = vsel %vm940_vm2, %v965_v46, %v966_v0  ;;  %v1346_v47 = vsel %vm940_vm2, %v1344_v49, %v1345_v25  ;;  %v395_v27 = vadd.f32 %v4400_v32, %v134_v44 }
  0xbc   :  { %v1027_v55 = vadd.f32 %v967_v54, %v521_v8  ;;  %v1093_v56 = vrot.slane %v901_v14, 7  ;;  %v193_v29 = vmul.f32 %v4358_v11, %v4762_v40  ;;  %v194_v59 = vmul.f32 %v4358_v11, %v4768_v28 }
  0xbd   :  { %v1092_v60 = vrot.slane %v900_v50, 7  ;;  %v522_v34 = vadd.f32 %v460_v2, %v395_v27  ;;  %v222_v61 = vmul.f32 %v4360_v12, %v4818_v51  ;;  %v223_v57 = vmul.f32 %v4360_v12, %v4824_v41 }
  0xbe   :  { %v251_v58 = vmul.f32 %v4372_v19, %v4818_v51  ;;  %v252_v40 = vmul.f32 %v4372_v19, %v4824_v41  ;;  %v280_v5 = vmul.f32 %v4374_v20, %v4818_v51  ;;  %v281_v45 = vmul.f32 %v4374_v20, %v4824_v41 }
  0xbf   :  { %v1094_v7 = vsel %vm1067_vm3, %v1092_v60, %v1093_v56  ;;  %v1154_v42 = vadd.f32 %v1092_v60, %v774_v43  ;;  %v1028_v16 = vadd.f32 %v966_v0, %v522_v34  ;;  %v309_v15 = vmul.f32 %v4376_v21, %v4874_v62 }
  0xc0   :  { %v1155_v2 = vadd.f32 %v1094_v7, %v775_v17  ;;  %v310_v18 = vmul.f32 %v4376_v21, %v4880_v52  ;;  %v338_v63 = vmul.f32 %v4378_v22, %v4874_v62  ;;  %v339_v10 = vmul.f32 %v4378_v22, %v4880_v52 }
  0xc1   :  { %v1218_v23 = vrot.slane %v1154_v42, 1  ;;  %v367_v26 = vmul.f32 %v4397_v31, %v4874_v62  ;;  %v4905_v30 = vmul.f32 %v4397_v31, %v4880_v52  ;;  %v396_v35 = vadd.f32 %v4400_v32, %v135_v48 }
  0xc2   :  { %v1219_v53 = vrot.slane %v1155_v2, 1  ;;  %v462_v8 = vrot.slane %v164_v36, 1  ;;  %v463_v38 = vrot.slane %v4870_v9, 1  ;;  %v589_v33 = vrot.slane %v222_v61, 6  ;;  %v4930_v2 = vld [vmem:[#allocation2 + $0xc0] sm:$0xff] }
  0xc3   :  { %v590_v13 = vrot.slane %v223_v57, 6  ;;  %v715_v3 = vrot.slane %v280_v5, 1  ;;  %v716_v37 = vrot.slane %v281_v45, 1  ;;  %v841_v1 = vrot.slane %v338_v63, 1  ;;  %v4936_v63 = vld [vmem:[#allocation2 + $0xc8] sm:$0xff] }
  0xc4   :  { %v1220_v17 = vsel %vm434_vm0, %v1218_v23, %v1219_v53  ;;  %v1281_v39 = vadd.f32 %v1219_v53, %v1028_v16  ;;  %v464_v43 = vsel %vm434_vm0, %v462_v8, %v463_v38  ;;  %v650_v44 = vadd.f32 %v589_v33, %v193_v29 }
  0xc5   :  { %v1280_v46 = vadd.f32 %v1220_v17, %v1027_v55  ;;  %v523_v0 = vadd.f32 %v464_v43, %v396_v35  ;;  %v591_v49 = vsel %vm561_vm1, %v589_v33, %v590_v13  ;;  %v717_v48 = vsel %vm434_vm0, %v715_v3, %v716_v37 }
  0xc6   :  { %v1407_v24 = vadd.f32 %v1345_v25, %v1281_v39  ;;  %v651_v14 = vadd.f32 %v591_v49, %v194_v59  ;;  %v777_v36 = vadd.f32 %v716_v37, %v252_v40  ;;  %v776_v54 = vadd.f32 %v717_v48, %v251_v58 }
  0xc7   :  { %v1406_v50 = vadd.f32 %v1346_v47, %v1280_v46  ;;  %v842_v27 = vrot.slane %v339_v10, 1  ;;  %v968_v56 = vrot.slane %v650_v44, 2  ;;  %v1347_v60 = vrot.slane %v367_v26, 2 }
  0xc8   :  { %4031 = vst [vmem:[#allocation9 + $0x88] sm:$0x3f] %v1407_v24  ;;  %v969_v9 = vrot.slane %v651_v14, 2  ;;  %v1348_v34 = vrot.slane %v4905_v30, 2  ;;  %v136_v55 = vmul.f32 %v4346_v4, %v4768_v28  ;;  %v137_v59 = vmul.f32 %v4346_v4, %v4818_v51 }
  0xc9   :  { %4030 = vst [vmem:[#allocation9 + $0x80] sm:$0xff] %v1406_v50  ;;  %v843_v29 = vsel %vm434_vm0, %v841_v1, %v842_v27  ;;  %v903_v25 = vadd.f32 %v842_v27, %v310_v18  ;;  %v166_v47 = vmul.f32 %v4349_v6, %v4818_v51  ;;  %v4926_v28 = vmul.f32 %v4349_v6, %v4824_v41 }
  0xca   :  { %v902_v61 = vadd.f32 %v843_v29, %v309_v15  ;;  %v970_v57 = vsel %vm940_vm2, %v968_v56, %v969_v9  ;;  %v1349_v58 = vsel %vm940_vm2, %v1347_v60, %v1348_v34  ;;  %v397_v40 = vadd.f32 %v4400_v32, %v136_v55 }
  0xcb   :  { %v1029_v5 = vadd.f32 %v970_v57, %v523_v0  ;;  %v1096_v7 = vrot.slane %v903_v25, 7  ;;  %v195_v42 = vmul.f32 %v4358_v11, %v4818_v51  ;;  %v196_v15 = vmul.f32 %v4358_v11, %v4824_v41 }
  0xcc   :  { %v1095_v16 = vrot.slane %v902_v61, 7  ;;  %v524_v45 = vadd.f32 %v463_v38, %v397_v40  ;;  %v224_v18 = vmul.f32 %v4360_v12, %v4874_v62  ;;  %v225_v23 = vmul.f32 %v4360_v12, %v4880_v52 }
  0xcd   :  { %v253_v10 = vmul.f32 %v4372_v19, %v4874_v62  ;;  %v254_v51 = vmul.f32 %v4372_v19, %v4880_v52  ;;  %v282_v26 = vmul.f32 %v4374_v20, %v4874_v62  ;;  %v283_v8 = vmul.f32 %v4374_v20, %v4880_v52 }
  0xce   :  { %v1097_v30 = vsel %vm1067_vm3, %v1095_v16, %v1096_v7  ;;  %v1156_v53 = vadd.f32 %v1095_v16, %v776_v54  ;;  %v1030_v35 = vadd.f32 %v969_v9, %v524_v45  ;;  %v311_v33 = vmul.f32 %v4376_v21, %v4930_v2 }
  0xcf   :  { %v1157_v38 = vadd.f32 %v1097_v30, %v777_v36  ;;  %v312_v13 = vmul.f32 %v4376_v21, %v4936_v63  ;;  %v340_v3 = vmul.f32 %v4378_v22, %v4930_v2  ;;  %v341_v17 = vmul.f32 %v4378_v22, %v4936_v63 }
  0xd0   :  { %v1221_v37 = vrot.slane %v1156_v53, 1  ;;  %v369_v39 = vmul.f32 %v4397_v31, %v4930_v2  ;;  %v4961_v43 = vmul.f32 %v4397_v31, %v4936_v63  ;;  %v398_v46 = vadd.f32 %v4400_v32, %v137_v59 }
  0xd1   :  { %v1222_v1 = vrot.slane %v1157_v38, 1  ;;  %v465_v0 = vrot.slane %v166_v47, 1  ;;  %v466_v49 = vrot.slane %v4926_v28, 1  ;;  %v592_v44 = vrot.slane %v224_v18, 6  ;;  %v4986_v38 = vld [vmem:[#allocation2 + $0xd0] sm:$0xff] }
  0xd2   :  { %v593_v24 = vrot.slane %v225_v23, 6  ;;  %v718_v14 = vrot.slane %v282_v26, 1  ;;  %v719_v48 = vrot.slane %v283_v8, 1  ;;  %v844_v27 = vrot.slane %v340_v3, 1  ;;  %v4992_v3 = vld [vmem:[#allocation2 + $0xd8] sm:$0xff] }
  0xd3   :  { %v1223_v36 = vsel %vm434_vm0, %v1221_v37, %v1222_v1  ;;  %v1283_v50 = vadd.f32 %v1222_v1, %v1030_v35  ;;  %v467_v54 = vsel %vm434_vm0, %v465_v0, %v466_v49  ;;  %v652_v55 = vadd.f32 %v592_v44, %v195_v42 }
  0xd4   :  { %v1282_v56 = vadd.f32 %v1223_v36, %v1029_v5  ;;  %v525_v9 = vadd.f32 %v467_v54, %v398_v46  ;;  %v594_v60 = vsel %vm561_vm1, %v592_v44, %v593_v24  ;;  %v720_v59 = vsel %vm434_vm0, %v718_v14, %v719_v48 }
  0xd5   :  { %v1409_v29 = vadd.f32 %v1348_v34, %v1283_v50  ;;  %v653_v25 = vadd.f32 %v594_v60, %v196_v15  ;;  %v779_v47 = vadd.f32 %v719_v48, %v254_v51  ;;  %v778_v57 = vadd.f32 %v720_v59, %v253_v10 }
  0xd6   :  { %v1408_v61 = vadd.f32 %v1349_v58, %v1282_v56  ;;  %v845_v40 = vrot.slane %v341_v17, 1  ;;  %v971_v7 = vrot.slane %v652_v55, 2  ;;  %v1350_v16 = vrot.slane %v369_v39, 2 }
  0xd7   :  { %4033 = vst [vmem:[#allocation9 + $0x98] sm:$0x3f] %v1409_v29  ;;  %v972_v28 = vrot.slane %v653_v25, 2  ;;  %v1351_v45 = vrot.slane %v4961_v43, 2  ;;  %v138_v5 = vmul.f32 %v4346_v4, %v4824_v41  ;;  %v139_v15 = vmul.f32 %v4346_v4, %v4874_v62 }
  0xd8   :  { %4032 = vst [vmem:[#allocation9 + $0x90] sm:$0xff] %v1408_v61  ;;  %v846_v42 = vsel %vm434_vm0, %v844_v27, %v845_v40  ;;  %v905_v34 = vadd.f32 %v845_v40, %v312_v13  ;;  %v168_v58 = vmul.f32 %v4349_v6, %v4874_v62  ;;  %v4982_v41 = vmul.f32 %v4349_v6, %v4880_v52 }
  0xd9   :  { %v904_v18 = vadd.f32 %v846_v42, %v311_v33  ;;  %v973_v23 = vsel %vm940_vm2, %v971_v7, %v972_v28  ;;  %v1352_v10 = vsel %vm940_vm2, %v1350_v16, %v1351_v45  ;;  %v399_v51 = vadd.f32 %v4400_v32, %v138_v5 }
  0xda   :  { %v1031_v26 = vadd.f32 %v973_v23, %v525_v9  ;;  %v1099_v30 = vrot.slane %v905_v34, 7  ;;  %v197_v53 = vmul.f32 %v4358_v11, %v4874_v62  ;;  %v198_v33 = vmul.f32 %v4358_v11, %v4880_v52 }
  0xdb   :  { %v1098_v35 = vrot.slane %v904_v18, 7  ;;  %v526_v8 = vadd.f32 %v466_v49, %v399_v51  ;;  %v226_v13 = vmul.f32 %v4360_v12, %v4930_v2  ;;  %v227_v37 = vmul.f32 %v4360_v12, %v4936_v63 }
  0xdc   :  { %v255_v17 = vmul.f32 %v4372_v19, %v4930_v2  ;;  %v256_v62 = vmul.f32 %v4372_v19, %v4936_v63  ;;  %v284_v39 = vmul.f32 %v4374_v20, %v4930_v2  ;;  %v285_v0 = vmul.f32 %v4374_v20, %v4936_v63 }
  0xdd   :  { %v1100_v43 = vsel %vm1067_vm3, %v1098_v35, %v1099_v30  ;;  %v1158_v1 = vadd.f32 %v1098_v35, %v778_v57  ;;  %v1032_v46 = vadd.f32 %v972_v28, %v526_v8  ;;  %v313_v44 = vmul.f32 %v4376_v21, %v4986_v38 }
  0xde   :  { %v1159_v49 = vadd.f32 %v1100_v43, %v779_v47  ;;  %v314_v24 = vmul.f32 %v4376_v21, %v4992_v3  ;;  %v342_v14 = vmul.f32 %v4378_v22, %v4986_v38  ;;  %v343_v36 = vmul.f32 %v4378_v22, %v4992_v3 }
  0xdf   :  { %v1224_v48 = vrot.slane %v1158_v1, 1  ;;  %v371_v50 = vmul.f32 %v4397_v31, %v4986_v38  ;;  %v5017_v54 = vmul.f32 %v4397_v31, %v4992_v3  ;;  %v400_v56 = vadd.f32 %v4400_v32, %v139_v15 }
  0xe0   :  { %v1225_v27 = vrot.slane %v1159_v49, 1  ;;  %v468_v9 = vrot.slane %v168_v58, 1  ;;  %v469_v60 = vrot.slane %v4982_v41, 1  ;;  %v595_v55 = vrot.slane %v226_v13, 6  ;;  %v5042_v49 = vld [vmem:[#allocation2 + $0xe0] sm:$0xff] }
  0xe1   :  { %v596_v29 = vrot.slane %v227_v37, 6  ;;  %v721_v25 = vrot.slane %v284_v39, 1  ;;  %v722_v59 = vrot.slane %v285_v0, 1  ;;  %v847_v40 = vrot.slane %v342_v14, 1  ;;  %v5048_v14 = vld [vmem:[#allocation2 + $0xe8] sm:$0xff] }
  0xe2   :  { %v1226_v47 = vsel %vm434_vm0, %v1224_v48, %v1225_v27  ;;  %v1285_v61 = vadd.f32 %v1225_v27, %v1032_v46  ;;  %v470_v57 = vsel %vm434_vm0, %v468_v9, %v469_v60  ;;  %v654_v5 = vadd.f32 %v595_v55, %v197_v53 }
  0xe3   :  { %v1284_v7 = vadd.f32 %v1226_v47, %v1031_v26  ;;  %v527_v28 = vadd.f32 %v470_v57, %v400_v56  ;;  %v597_v16 = vsel %vm561_vm1, %v595_v55, %v596_v29  ;;  %v723_v15 = vsel %vm434_vm0, %v721_v25, %v722_v59 }
  0xe4   :  { %v1411_v42 = vadd.f32 %v1351_v45, %v1285_v61  ;;  %v655_v34 = vadd.f32 %v597_v16, %v198_v33  ;;  %v781_v58 = vadd.f32 %v722_v59, %v256_v62  ;;  %v780_v23 = vadd.f32 %v723_v15, %v255_v17 }
  0xe5   :  { %v1410_v18 = vadd.f32 %v1352_v10, %v1284_v7  ;;  %v848_v51 = vrot.slane %v343_v36, 1  ;;  %v974_v30 = vrot.slane %v654_v5, 2  ;;  %v1353_v35 = vrot.slane %v371_v50, 2 }
  0xe6   :  { %4035 = vst [vmem:[#allocation9 + $0xa8] sm:$0x3f] %v1411_v42  ;;  %v975_v41 = vrot.slane %v655_v34, 2  ;;  %v1354_v8 = vrot.slane %v5017_v54, 2  ;;  %v140_v26 = vmul.f32 %v4346_v4, %v4880_v52  ;;  %v141_v33 = vmul.f32 %v4346_v4, %v4930_v2 }
  0xe7   :  { %4034 = vst [vmem:[#allocation9 + $0xa0] sm:$0xff] %v1410_v18  ;;  %v849_v53 = vsel %vm434_vm0, %v847_v40, %v848_v51  ;;  %v907_v45 = vadd.f32 %v848_v51, %v314_v24  ;;  %v170_v10 = vmul.f32 %v4349_v6, %v4930_v2  ;;  %v5038_v52 = vmul.f32 %v4349_v6, %v4936_v63 }
  0xe8   :  { %v906_v13 = vadd.f32 %v849_v53, %v313_v44  ;;  %v976_v37 = vsel %vm940_vm2, %v974_v30, %v975_v41  ;;  %v1355_v17 = vsel %vm940_vm2, %v1353_v35, %v1354_v8  ;;  %v401_v62 = vadd.f32 %v4400_v32, %v140_v26 }
  0xe9   :  { %v1033_v39 = vadd.f32 %v976_v37, %v527_v28  ;;  %v1102_v43 = vrot.slane %v907_v45, 7  ;;  %v199_v1 = vmul.f32 %v4358_v11, %v4930_v2  ;;  %v200_v44 = vmul.f32 %v4358_v11, %v4936_v63 }
  0xea   :  { %v1101_v46 = vrot.slane %v906_v13, 7  ;;  %v528_v0 = vadd.f32 %v469_v60, %v401_v62  ;;  %v228_v24 = vmul.f32 %v4360_v12, %v4986_v38  ;;  %v229_v48 = vmul.f32 %v4360_v12, %v4992_v3 }
  0xeb   :  { %v257_v36 = vmul.f32 %v4372_v19, %v4986_v38  ;;  %v258_v2 = vmul.f32 %v4372_v19, %v4992_v3  ;;  %v286_v50 = vmul.f32 %v4374_v20, %v4986_v38  ;;  %v287_v9 = vmul.f32 %v4374_v20, %v4992_v3 }
  0xec   :  { %v1103_v54 = vsel %vm1067_vm3, %v1101_v46, %v1102_v43  ;;  %v1160_v27 = vadd.f32 %v1101_v46, %v780_v23  ;;  %v1034_v56 = vadd.f32 %v975_v41, %v528_v0  ;;  %v315_v55 = vmul.f32 %v4376_v21, %v5042_v49 }
  0xed   :  { %v1161_v60 = vadd.f32 %v1103_v54, %v781_v58  ;;  %v316_v29 = vmul.f32 %v4376_v21, %v5048_v14  ;;  %v344_v25 = vmul.f32 %v4378_v22, %v5042_v49  ;;  %v345_v47 = vmul.f32 %v4378_v22, %v5048_v14 }
  0xee   :  { %v1227_v59 = vrot.slane %v1160_v27, 1  ;;  %v373_v61 = vmul.f32 %v4397_v31, %v5042_v49  ;;  %v5073_v57 = vmul.f32 %v4397_v31, %v5048_v14  ;;  %v402_v7 = vadd.f32 %v4400_v32, %v141_v33 }
  0xef   :  { %v1228_v40 = vrot.slane %v1161_v60, 1  ;;  %v471_v28 = vrot.slane %v170_v10, 1  ;;  %v472_v16 = vrot.slane %v5038_v52, 1  ;;  %v598_v5 = vrot.slane %v228_v24, 6  ;;  %v84_v60 = vld [vmem:[#allocation2 + $0xf0] sm:$0xff] }
  0xf0   :  { %v599_v42 = vrot.slane %v229_v48, 6  ;;  %v724_v34 = vrot.slane %v286_v50, 1  ;;  %v725_v15 = vrot.slane %v287_v9, 1  ;;  %v850_v51 = vrot.slane %v344_v25, 1  ;;  %v85_v25 = vld [vmem:[#allocation2 + $0xf8] sm:$0xff] }
  0xf1   :  { %v1229_v58 = vsel %vm434_vm0, %v1227_v59, %v1228_v40  ;;  %v1287_v18 = vadd.f32 %v1228_v40, %v1034_v56  ;;  %v473_v23 = vsel %vm434_vm0, %v471_v28, %v472_v16  ;;  %v656_v26 = vadd.f32 %v598_v5, %v199_v1 }
  0xf2   :  { %v1286_v30 = vadd.f32 %v1229_v58, %v1033_v39  ;;  %v529_v41 = vadd.f32 %v473_v23, %v402_v7  ;;  %v600_v35 = vsel %vm561_vm1, %v598_v5, %v599_v42  ;;  %v726_v33 = vsel %vm434_vm0, %v724_v34, %v725_v15 }
  0xf3   :  { %v1413_v53 = vadd.f32 %v1354_v8, %v1287_v18  ;;  %v657_v45 = vadd.f32 %v600_v35, %v200_v44  ;;  %v783_v10 = vadd.f32 %v725_v15, %v258_v2  ;;  %v782_v37 = vadd.f32 %v726_v33, %v257_v36 }
  0xf4   :  { %v1412_v13 = vadd.f32 %v1355_v17, %v1286_v30  ;;  %v851_v62 = vrot.slane %v345_v47, 1  ;;  %v977_v43 = vrot.slane %v656_v26, 2  ;;  %v1356_v46 = vrot.slane %v373_v61, 2 }
  0xf5   :  { %4037 = vst [vmem:[#allocation9 + $0xb8] sm:$0x3f] %v1413_v53  ;;  %v978_v52 = vrot.slane %v657_v45, 2  ;;  %v1357_v0 = vrot.slane %v5073_v57, 2  ;;  %v142_v39 = vmul.f32 %v4346_v4, %v4936_v63  ;;  %v143_v44 = vmul.f32 %v4346_v4, %v4986_v38 }
  0xf6   :  { %4036 = vst [vmem:[#allocation9 + $0xb0] sm:$0xff] %v1412_v13  ;;  %v852_v1 = vsel %vm434_vm0, %v850_v51, %v851_v62  ;;  %v909_v8 = vadd.f32 %v851_v62, %v316_v29  ;;  %v172_v17 = vmul.f32 %v4349_v6, %v4986_v38  ;;  %v5094_v63 = vmul.f32 %v4349_v6, %v4992_v3 }
  0xf7   :  { %v908_v24 = vadd.f32 %v852_v1, %v315_v55  ;;  %v979_v48 = vsel %vm940_vm2, %v977_v43, %v978_v52  ;;  %v1358_v36 = vsel %vm940_vm2, %v1356_v46, %v1357_v0  ;;  %v403_v2 = vadd.f32 %v4400_v32, %v142_v39 }
  0xf8   :  { %v1035_v50 = vadd.f32 %v979_v48, %v529_v41  ;;  %v1105_v54 = vrot.slane %v909_v8, 7  ;;  %v201_v27 = vmul.f32 %v4358_v11, %v4986_v38  ;;  %v202_v55 = vmul.f32 %v4358_v11, %v4992_v3 }
  0xf9   :  { %v1104_v56 = vrot.slane %v908_v24, 7  ;;  %v530_v9 = vadd.f32 %v472_v16, %v403_v2  ;;  %v230_v29 = vmul.f32 %v4360_v12, %v5042_v49  ;;  %v231_v59 = vmul.f32 %v4360_v12, %v5048_v14 }
  0xfa   :  { %v259_v6 = vmul.f32 %v4372_v19, %v5042_v49  ;;  %v260_v47 = vmul.f32 %v4372_v19, %v5048_v14  ;;  %v288_v38 = vmul.f32 %v4374_v20, %v5042_v49  ;;  %v289_v40 = vmul.f32 %v4374_v20, %v5048_v14 }
  0xfb   :  { %v1106_v61 = vsel %vm1067_vm3, %v1104_v56, %v1105_v54  ;;  %v1162_v57 = vadd.f32 %v1104_v56, %v782_v37  ;;  %v1036_v11 = vadd.f32 %v978_v52, %v530_v9  ;;  %v317_v28 = vmul.f32 %v4376_v21, %v84_v60  ;;  %v4151_v54 = vld [vmem:[#allocation2] sm:$0xff] }
  0xfc   :  { %v1163_v7 = vadd.f32 %v1106_v61, %v783_v10  ;;  %v318_v12 = vmul.f32 %v4376_v21, %v85_v25  ;;  %v346_v16 = vmul.f32 %v4378_v22, %v84_v60  ;;  %v347_v19 = vmul.f32 %v4378_v22, %v85_v25 }
  0xfd   :  { %v1230_v5 = vrot.slane %v1162_v57, 1  ;;  %v375_v42 = vmul.f32 %v4397_v31, %v84_v60  ;;  %v5119_v49 = vmul.f32 %v4397_v31, %v85_v25  ;;  %v404_v14 = vadd.f32 %v4400_v32, %v143_v44  ;;  %v5162_v60 = vld [vmem:[#allocation2 + $0x8] sm:$0xff]  ;;  %v5181_v57 = vld [vmem:[#allocation2 + $0x10] sm:$0xff] }
  0xfe   :  { %v1231_v20 = vrot.slane %v1163_v7, 1  ;;  %v474_v34 = vrot.slane %v172_v17, 1  ;;  %v475_v21 = vrot.slane %v5094_v63, 1  ;;  %v601_v15 = vrot.slane %v230_v29, 6  ;;  %v5185_v7 = vld [vmem:[#allocation2 + $0x18] sm:$0xff] }
  0xff   :  { %v602_v58 = vrot.slane %v231_v59, 6  ;;  %v727_v18 = vrot.slane %v288_v38, 1  ;;  %v728_v23 = vrot.slane %v289_v40, 1  ;;  %v853_v30 = vrot.slane %v346_v16, 1 }
 0x100   :  { %v1232_v22 = vsel %vm434_vm0, %v1230_v5, %v1231_v20  ;;  %v1289_v51 = vadd.f32 %v1231_v20, %v1036_v11  ;;  %v476_v31 = vsel %vm434_vm0, %v474_v34, %v475_v21  ;;  %v658_v53 = vadd.f32 %v601_v15, %v201_v27 }
 0x101   :  { %v1288_v41 = vadd.f32 %v1232_v22, %v1035_v50  ;;  %v531_v35 = vadd.f32 %v476_v31, %v404_v14  ;;  %v603_v26 = vsel %vm561_vm1, %v601_v15, %v602_v58  ;;  %v729_v10 = vsel %vm434_vm0, %v727_v18, %v728_v23  ;;  %v5210_v58 = vld [vmem:[#allocation2 + $0x28] sm:$0xff] }
 0x102   :  { %v1415_v45 = vadd.f32 %v1357_v0, %v1289_v51  ;;  %v659_v33 = vadd.f32 %v603_v26, %v202_v55  ;;  %v785_v13 = vadd.f32 %v728_v23, %v260_v47  ;;  %v784_v62 = vadd.f32 %v729_v10, %v259_v6 }
 0x103   :  { %v1414_v37 = vadd.f32 %v1358_v36, %v1288_v41  ;;  %v854_v43 = vrot.slane %v347_v19, 1  ;;  %v980_v52 = vrot.slane %v658_v53, 2  ;;  %v1359_v39 = vrot.slane %v375_v42, 2 }
 0x104   :  { %4039 = vst [vmem:[#allocation9 + $0xc8] sm:$0x3f] %v1415_v45  ;;  %v981_v46 = vrot.slane %v659_v33, 2  ;;  %v1360_v1 = vrot.slane %v5119_v49, 2  ;;  %v144_v0 = vmul.f32 %v4346_v4, %v4992_v3  ;;  %v5148_v17 = vstv %s5121_s16 }
 0x105   :  { %4038 = vst [vmem:[#allocation9 + $0xc0] sm:$0xff] %v1414_v37  ;;  %v855_v8 = vsel %vm434_vm0, %v853_v30, %v854_v43  ;;  %v911_v44 = vadd.f32 %v854_v43, %v318_v12  ;;  %v5151_v24 = vstv %s5123_s17  ;;  %v1419_v63 = vmul.f32 %v4151_v54, %v5148_v17 }
 0x106   :  { %v910_v48 = vadd.f32 %v855_v8, %v317_v28  ;;  %v982_v36 = vsel %vm940_vm2, %v980_v52, %v981_v46  ;;  %v1361_v2 = vsel %vm940_vm2, %v1359_v39, %v1360_v1  ;;  %v405_v50 = vadd.f32 %v4400_v32, %v144_v0 }
 0x107   :  { %v1037_v4 = vadd.f32 %v982_v36, %v531_v35  ;;  %v1108_v3 = vrot.slane %v911_v44, 7  ;;  %v1448_v27 = vmul.f32 %v4151_v54, %v5151_v24  ;;  %v5166_v55 = vmul.f32 %v5162_v60, %v5151_v24 }
 0x108   :  { %v1107_v56 = vrot.slane %v910_v48, 7  ;;  %v532_v9 = vadd.f32 %v475_v21, %v405_v50  ;;  %v5169_v32 = vstv %s5129_s18  ;;  %v5175_v59 = vstv %s5132_s19  ;;  %v5206_v21 = vld [vmem:[#allocation2 + $0x20] sm:$0xff] }
 0x109   :  { %v1477_v29 = vmul.f32 %v4151_v54, %v5169_v32  ;;  %v1478_v25 = vmul.f32 %v5162_v60, %v5169_v32  ;;  %v5178_v6 = vstv %s5134_s20  ;;  %v1506_v11 = vmul.f32 %v5181_v57, %v5175_v59 }
 0x10a   :  { %v1109_v47 = vsel %vm1067_vm3, %v1107_v56, %v1108_v3  ;;  %v1164_v38 = vadd.f32 %v1107_v56, %v784_v62  ;;  %v1038_v61 = vadd.f32 %v981_v46, %v532_v9  ;;  %v1507_v28 = vmul.f32 %v5185_v7, %v5175_v59 }
 0x10b   :  { %v1165_v40 = vadd.f32 %v1109_v47, %v785_v13  ;;  %v1535_v12 = vmul.f32 %v5181_v57, %v5178_v6  ;;  %v1536_v16 = vmul.f32 %v5185_v7, %v5178_v6  ;;  %v5194_v19 = vstv %s5137_s21 }
 0x10c   :  { %v1233_v5 = vrot.slane %v1164_v38, 1  ;;  %v5197_v42 = vstv %s5144_s23  ;;  %v5200_v49 = vstv %s5139_s22  ;;  %v1564_v14 = vmul.f32 %v5181_v57, %v5194_v19 }
 0x10d   :  { %v1234_v20 = vrot.slane %v1165_v40, 1  ;;  %v1565_v34 = vmul.f32 %v5185_v7, %v5194_v19  ;;  %v1593_v15 = vmul.f32 %v5206_v21, %v5197_v42  ;;  %v1594_v18 = vmul.f32 %v5210_v58, %v5197_v42 }
 0x10e   :  { %v1622_v23 = vmul.f32 %v5206_v21, %v5200_v49  ;;  %v1623_v22 = vmul.f32 %v5210_v58, %v5200_v49  ;;  %v5219_v51 = vstv %s5156_s24  ;;  %v5229_v53 = vstv %s5160_s26 }
 0x10f   :  { %v1235_v31 = vsel %vm434_vm0, %v1233_v5, %v1234_v20  ;;  %v1291_v30 = vadd.f32 %v1234_v20, %v1038_v61  ;;  %v1651_v41 = vmul.f32 %v5206_v21, %v5219_v51  ;;  %v5226_v35 = vmul.f32 %v5210_v58, %v5219_v51 }
 0x110   :  { %v1290_v26 = vadd.f32 %v1235_v31, %v1037_v4  ;;  %v1736_v45 = vrot.slane %v1448_v27, 1  ;;  %v1737_v33 = vrot.slane %v5166_v55, 1  ;;  %v1680_v13 = vadd.f32 %v5229_v53, %v1419_v63 }
 0x111   :  { %v1417_v10 = vadd.f32 %v1360_v1, %v1291_v30  ;;  %v1862_v37 = vrot.slane %v1506_v11, 6  ;;  %v1863_v62 = vrot.slane %v1507_v28, 6  ;;  %v1988_v46 = vrot.slane %v1564_v14, 1 }
 0x112   :  { %v1416_v43 = vadd.f32 %v1361_v2, %v1290_v26  ;;  %v1738_v52 = vsel %vm434_vm0, %v1736_v45, %v1737_v33  ;;  %v1989_v39 = vrot.slane %v1565_v34, 1  ;;  %v2114_v48 = vrot.slane %v1622_v23, 1 }
 0x113   :  { %4041 = vst [vmem:[#allocation9 + $0xd8] sm:$0x3f] %v1417_v10  ;;  %v1806_v0 = vadd.f32 %v1738_v52, %v1680_v13  ;;  %v1864_v8 = vsel %vm561_vm1, %v1862_v37, %v1863_v62  ;;  %v1932_v44 = vadd.f32 %v1862_v37, %v1477_v29  ;;  %v2115_v4 = vrot.slane %v1623_v22, 1 }
 0x114   :  { %4040 = vst [vmem:[#allocation9 + $0xd0] sm:$0xff] %v1416_v43  ;;  %v1933_v36 = vadd.f32 %v1864_v8, %v1478_v25  ;;  %v1990_v50 = vsel %vm434_vm0, %v1988_v46, %v1989_v39  ;;  %v2059_v1 = vadd.f32 %v1989_v39, %v1536_v16  ;;  %v2618_v63 = vrot.slane %v1651_v41, 2 }
 0x115   :  { %v2058_v3 = vadd.f32 %v1990_v50, %v1535_v12  ;;  %v2240_v54 = vrot.slane %v1932_v44, 2  ;;  %v2619_v2 = vrot.slane %v5226_v35, 2  ;;  %v2116_v27 = vsel %vm434_vm0, %v2114_v48, %v2115_v4  ;;  %v5268_v35 = vld [vmem:[#allocation2 + $0x30] sm:$0xff] }
 0x116   :  { %v2185_v56 = vadd.f32 %v2115_v4, %v1594_v18  ;;  %v2241_v9 = vrot.slane %v1933_v36, 2  ;;  %v1420_v55 = vmul.f32 %v5162_v60, %v5148_v17  ;;  %v2184_v29 = vadd.f32 %v2116_v27, %v1593_v15 }
 0x117   :  { %v2620_v47 = vsel %vm940_vm2, %v2618_v63, %v2619_v2  ;;  %v1421_v25 = vmul.f32 %v5181_v57, %v5148_v17  ;;  %v1450_v38 = vmul.f32 %v5181_v57, %v5151_v24  ;;  %v5249_v28 = vmul.f32 %v5185_v7, %v5151_v24 }
 0x118   :  { %v2242_v61 = vsel %vm940_vm2, %v2240_v54, %v2241_v9  ;;  %v2367_v11 = vrot.slane %v2185_v56, 7  ;;  %v1681_v40 = vadd.f32 %v5229_v53, %v1420_v55  ;;  %v2366_v60 = vrot.slane %v2184_v29, 7 }
 0x119   :  { %v2310_v12 = vadd.f32 %v2242_v61, %v1806_v0  ;;  %v1479_v16 = vmul.f32 %v5181_v57, %v5169_v32  ;;  %v1480_v5 = vmul.f32 %v5185_v7, %v5169_v32  ;;  %v1508_v14 = vmul.f32 %v5206_v21, %v5175_v59 }
 0x11a   :  { %v1807_v20 = vadd.f32 %v1737_v33, %v1681_v40  ;;  %v1509_v34 = vmul.f32 %v5210_v58, %v5175_v59  ;;  %v1537_v15 = vmul.f32 %v5206_v21, %v5178_v6  ;;  %v2368_v18 = vsel %vm1067_vm3, %v2366_v60, %v2367_v11  ;;  %v5272_v33 = vld [vmem:[#allocation2 + $0x38] sm:$0xff] }
 0x11b   :  { %v2436_v23 = vadd.f32 %v2366_v60, %v2058_v3  ;;  %v1538_v22 = vmul.f32 %v5210_v58, %v5178_v6  ;;  %v1566_v57 = vmul.f32 %v5206_v21, %v5194_v19  ;;  %v2437_v31 = vadd.f32 %v2368_v18, %v2059_v1 }
 0x11c   :  { %v2311_v30 = vadd.f32 %v2241_v9, %v1807_v20  ;;  %v1567_v41 = vmul.f32 %v5210_v58, %v5194_v19  ;;  %v1595_v26 = vmul.f32 %v5268_v35, %v5197_v42  ;;  %v1596_v10 = vmul.f32 %v5272_v33, %v5197_v42 }
 0x11d   :  { %v2492_v45 = vrot.slane %v2436_v23, 1  ;;  %v1624_v13 = vmul.f32 %v5268_v35, %v5200_v49  ;;  %v1625_v37 = vmul.f32 %v5272_v33, %v5200_v49  ;;  %v2493_v62 = vrot.slane %v2437_v31, 1 }
 0x11e   :  { %v1653_v43 = vmul.f32 %v5268_v35, %v5219_v51  ;;  %v5284_v52 = vmul.f32 %v5272_v33, %v5219_v51  ;;  %v1682_v46 = vadd.f32 %v5229_v53, %v1421_v25  ;;  %v1739_v39 = vrot.slane %v1450_v38, 1 }
 0x11f   :  { %v1740_v0 = vrot.slane %v5249_v28, 1  ;;  %v1865_v8 = vrot.slane %v1508_v14, 6  ;;  %v1866_v44 = vrot.slane %v1509_v34, 6  ;;  %v2494_v48 = vsel %vm434_vm0, %v2492_v45, %v2493_v62 }
 0x120   :  { %v2563_v36 = vadd.f32 %v2493_v62, %v2311_v30  ;;  %v1991_v50 = vrot.slane %v1566_v57, 1  ;;  %v1992_v1 = vrot.slane %v1567_v41, 1  ;;  %v2562_v4 = vadd.f32 %v2494_v48, %v2310_v12  ;;  %v5323_v62 = vld [vmem:[#allocation2 + $0x40] sm:$0xff] }
 0x121   :  { %v1741_v3 = vsel %vm434_vm0, %v1739_v39, %v1740_v0  ;;  %v1867_v54 = vsel %vm561_vm1, %v1865_v8, %v1866_v44  ;;  %v1934_v63 = vadd.f32 %v1865_v8, %v1479_v16  ;;  %v2117_v61 = vrot.slane %v1624_v13, 1 }
 0x122   :  { %v2689_v27 = vadd.f32 %v2619_v2, %v2563_v36  ;;  %v1808_v56 = vadd.f32 %v1741_v3, %v1682_v46  ;;  %v1935_v9 = vadd.f32 %v1867_v54, %v1480_v5  ;;  %v1993_v55 = vsel %vm434_vm0, %v1991_v50, %v1992_v1 }
 0x123   :  { %v2688_v29 = vadd.f32 %v2620_v47, %v2562_v4  ;;  %v2060_v25 = vadd.f32 %v1993_v55, %v1537_v15  ;;  %v2061_v38 = vadd.f32 %v1992_v1, %v1538_v22  ;;  %v2118_v11 = vrot.slane %v1625_v37, 1 }
 0x124   :  { %4043 = vst [vmem:[#allocation9 + $0xe8] sm:$0x3f] %v2689_v27  ;;  %v2243_v40 = vrot.slane %v1934_v63, 2  ;;  %v2244_v28 = vrot.slane %v1935_v9, 2  ;;  %v2621_v60 = vrot.slane %v1653_v43, 2  ;;  %v2622_v12 = vrot.slane %v5284_v52, 2 }
 0x125   :  { %4042 = vst [vmem:[#allocation9 + $0xe0] sm:$0xff] %v2688_v29  ;;  %v1422_v16 = vmul.f32 %v5185_v7, %v5148_v17  ;;  %v1423_v2 = vmul.f32 %v5206_v21, %v5148_v17  ;;  %v1452_v47 = vmul.f32 %v5206_v21, %v5151_v24  ;;  %v2119_v5 = vsel %vm434_vm0, %v2117_v61, %v2118_v11 }
 0x126   :  { %v2187_v20 = vadd.f32 %v2118_v11, %v1596_v10  ;;  %v2245_v14 = vsel %vm940_vm2, %v2243_v40, %v2244_v28  ;;  %v5303_v34 = vmul.f32 %v5210_v58, %v5151_v24  ;;  %v2186_v15 = vadd.f32 %v2119_v5, %v1595_v26 }
 0x127   :  { %v2312_v18 = vadd.f32 %v2245_v14, %v1808_v56  ;;  %v2623_v23 = vsel %vm940_vm2, %v2621_v60, %v2622_v12  ;;  %v1683_v7 = vadd.f32 %v5229_v53, %v1422_v16  ;;  %v1481_v57 = vmul.f32 %v5206_v21, %v5169_v32 }
 0x128   :  { %v2370_v22 = vrot.slane %v2187_v20, 7  ;;  %v1482_v31 = vmul.f32 %v5210_v58, %v5169_v32  ;;  %v1510_v30 = vmul.f32 %v5268_v35, %v5175_v59  ;;  %v2369_v41 = vrot.slane %v2186_v15, 7 }
 0x129   :  { %v1809_v45 = vadd.f32 %v1740_v0, %v1683_v7  ;;  %v1511_v26 = vmul.f32 %v5272_v33, %v5175_v59  ;;  %v1539_v10 = vmul.f32 %v5268_v35, %v5178_v6  ;;  %v1540_v13 = vmul.f32 %v5272_v33, %v5178_v6  ;;  %v5328_v0 = vld [vmem:[#allocation2 + $0x48] sm:$0xff] }
 0x12a   :  { %v1568_v21 = vmul.f32 %v5268_v35, %v5194_v19  ;;  %v1569_v37 = vmul.f32 %v5272_v33, %v5194_v19  ;;  %v1597_v43 = vmul.f32 %v5323_v62, %v5197_v42  ;;  %v2371_v52 = vsel %vm1067_vm3, %v2369_v41, %v2370_v22 }
 0x12b   :  { %v2438_v46 = vadd.f32 %v2369_v41, %v2060_v25  ;;  %v2313_v39 = vadd.f32 %v2244_v28, %v1809_v45  ;;  %v1598_v8 = vmul.f32 %v5328_v0, %v5197_v42  ;;  %v2439_v44 = vadd.f32 %v2371_v52, %v2061_v38 }
 0x12c   :  { %v1626_v48 = vmul.f32 %v5323_v62, %v5200_v49  ;;  %v1627_v36 = vmul.f32 %v5328_v0, %v5200_v49  ;;  %v1655_v50 = vmul.f32 %v5323_v62, %v5219_v51  ;;  %v5340_v4 = vmul.f32 %v5328_v0, %v5219_v51 }
 0x12d   :  { %v2495_v1 = vrot.slane %v2438_v46, 1  ;;  %v1684_v3 = vadd.f32 %v5229_v53, %v1423_v2  ;;  %v1742_v54 = vrot.slane %v1452_v47, 1  ;;  %v2496_v63 = vrot.slane %v2439_v44, 1 }
 0x12e   :  { %v1743_v27 = vrot.slane %v5303_v34, 1  ;;  %v1868_v56 = vrot.slane %v1510_v30, 6  ;;  %v1869_v9 = vrot.slane %v1511_v26, 6  ;;  %v1994_v55 = vrot.slane %v1568_v21, 1 }
 0x12f   :  { %v1995_v29 = vrot.slane %v1569_v37, 1  ;;  %v2120_v25 = vrot.slane %v1626_v48, 1  ;;  %v2121_v38 = vrot.slane %v1627_v36, 1  ;;  %v2497_v61 = vsel %vm434_vm0, %v2495_v1, %v2496_v63 }
 0x130   :  { %v2565_v11 = vadd.f32 %v2496_v63, %v2313_v39  ;;  %v1744_v40 = vsel %vm434_vm0, %v1742_v54, %v1743_v27  ;;  %v1870_v28 = vsel %vm561_vm1, %v1868_v56, %v1869_v9  ;;  %v2564_v60 = vadd.f32 %v2497_v61, %v2312_v18  ;;  %v5380_v9 = vld [vmem:[#allocation2 + $0x50] sm:$0xff] }
 0x131   :  { %v1810_v16 = vadd.f32 %v1744_v40, %v1684_v3  ;;  %v1936_v2 = vadd.f32 %v1868_v56, %v1481_v57  ;;  %v1937_v47 = vadd.f32 %v1870_v28, %v1482_v31  ;;  %v1996_v20 = vsel %vm434_vm0, %v1994_v55, %v1995_v29  ;;  %v5384_v55 = vld [vmem:[#allocation2 + $0x58] sm:$0xff] }
 0x132   :  { %v2691_v5 = vadd.f32 %v2622_v12, %v2565_v11  ;;  %v2063_v14 = vadd.f32 %v1995_v29, %v1540_v13  ;;  %v2122_v34 = vsel %vm434_vm0, %v2120_v25, %v2121_v38  ;;  %v2690_v15 = vadd.f32 %v2623_v23, %v2564_v60 }
 0x133   :  { %v2062_v7 = vadd.f32 %v1996_v20, %v1539_v10  ;;  %v2188_v22 = vadd.f32 %v2122_v34, %v1597_v43  ;;  %v2189_v30 = vadd.f32 %v2121_v38, %v1598_v8  ;;  %v2246_v41 = vrot.slane %v1936_v2, 2 }
 0x134   :  { %4045 = vst [vmem:[#allocation9 + $0xf8] sm:$0x3f] %v2691_v5  ;;  %v2247_v45 = vrot.slane %v1937_v47, 2  ;;  %v2624_v26 = vrot.slane %v1655_v50, 2  ;;  %v2625_v21 = vrot.slane %v5340_v4, 2  ;;  %4044 = vst [vmem:[#allocation9 + $0xf0] sm:$0xff] %v2690_v15  ;;  %v1424_v12 = vmul.f32 %v5210_v58, %v5148_v17 }
 0x135   :  { %v2372_v18 = vrot.slane %v2188_v22, 7  ;;  %v2373_v57 = vrot.slane %v2189_v30, 7  ;;  %v1425_v31 = vmul.f32 %v5268_v35, %v5148_v17  ;;  %v1454_v13 = vmul.f32 %v5268_v35, %v5151_v24 }
 0x136   :  { %v2248_v23 = vsel %vm940_vm2, %v2246_v41, %v2247_v45  ;;  %v2626_v10 = vsel %vm940_vm2, %v2624_v26, %v2625_v21  ;;  %v5360_v37 = vmul.f32 %v5272_v33, %v5151_v24  ;;  %v1685_v58 = vadd.f32 %v5229_v53, %v1424_v12 }
 0x137   :  { %v2314_v43 = vadd.f32 %v2248_v23, %v1810_v16  ;;  %v2374_v52 = vsel %vm1067_vm3, %v2372_v18, %v2373_v57  ;;  %v2440_v46 = vadd.f32 %v2372_v18, %v2062_v7  ;;  %v1483_v8 = vmul.f32 %v5268_v35, %v5169_v32 }
 0x138   :  { %v2441_v39 = vadd.f32 %v2374_v52, %v2063_v14  ;;  %v1484_v44 = vmul.f32 %v5272_v33, %v5169_v32  ;;  %v1512_v48 = vmul.f32 %v5323_v62, %v5175_v59  ;;  %v1811_v50 = vadd.f32 %v1743_v27, %v1685_v58 }
 0x139   :  { %v2498_v36 = vrot.slane %v2440_v46, 1  ;;  %v1513_v1 = vmul.f32 %v5328_v0, %v5175_v59  ;;  %v1541_v4 = vmul.f32 %v5323_v62, %v5178_v6  ;;  %v1542_v54 = vmul.f32 %v5328_v0, %v5178_v6 }
 0x13a   :  { %v2499_v3 = vrot.slane %v2441_v39, 1  ;;  %v1570_v35 = vmul.f32 %v5323_v62, %v5194_v19  ;;  %v1571_v63 = vmul.f32 %v5328_v0, %v5194_v19  ;;  %v2315_v56 = vadd.f32 %v2247_v45, %v1811_v50 }
 0x13b   :  { %v1599_v27 = vmul.f32 %v5380_v9, %v5197_v42  ;;  %v1600_v29 = vmul.f32 %v5384_v55, %v5197_v42  ;;  %v1628_v25 = vmul.f32 %v5380_v9, %v5200_v49  ;;  %v1629_v61 = vmul.f32 %v5384_v55, %v5200_v49 }
 0x13c   :  { %v2500_v38 = vsel %vm434_vm0, %v2498_v36, %v2499_v3  ;;  %v1657_v11 = vmul.f32 %v5380_v9, %v5219_v51  ;;  %v5397_v40 = vmul.f32 %v5384_v55, %v5219_v51  ;;  %v2567_v60 = vadd.f32 %v2499_v3, %v2315_v56 }
 0x13d   :  { %v2566_v28 = vadd.f32 %v2500_v38, %v2314_v43  ;;  %v1686_v16 = vadd.f32 %v5229_v53, %v1425_v31  ;;  %v1745_v2 = vrot.slane %v1454_v13, 1  ;;  %v1746_v47 = vrot.slane %v5360_v37, 1 }
 0x13e   :  { %v1871_v5 = vrot.slane %v1512_v48, 6  ;;  %v1872_v20 = vrot.slane %v1513_v1, 6  ;;  %v1997_v14 = vrot.slane %v1570_v35, 1  ;;  %v2693_v15 = vadd.f32 %v2625_v21, %v2567_v60 }
 0x13f   :  { %v2692_v34 = vadd.f32 %v2626_v10, %v2566_v28  ;;  %v1998_v7 = vrot.slane %v1571_v63, 1  ;;  %v2123_v22 = vrot.slane %v1628_v25, 1  ;;  %v1747_v30 = vsel %vm434_vm0, %v1745_v2, %v1746_v47  ;;  %v5436_v28 = vld [vmem:[#allocation2 + $0x60] sm:$0xff] }
 0x140   :  { %v1873_v41 = vsel %vm561_vm1, %v1871_v5, %v1872_v20  ;;  %v1938_v45 = vadd.f32 %v1871_v5, %v1483_v8  ;;  %v2124_v26 = vrot.slane %v1629_v61, 1  ;;  %4047 = vst [vmem:[#allocation9 + $0x108] sm:$0x3f] %v2693_v15  ;;  %v1812_v18 = vadd.f32 %v1747_v30, %v1686_v16 }
 0x141   :  { %4046 = vst [vmem:[#allocation9 + $0x100] sm:$0xff] %v2692_v34  ;;  %v1939_v57 = vadd.f32 %v1873_v41, %v1484_v44  ;;  %v1999_v12 = vsel %vm434_vm0, %v1997_v14, %v1998_v7  ;;  %v2065_v31 = vadd.f32 %v1998_v7, %v1542_v54  ;;  %v2627_v52 = vrot.slane %v1657_v11, 2 }
 0x142   :  { %v2064_v23 = vadd.f32 %v1999_v12, %v1541_v4  ;;  %v2125_v13 = vsel %vm434_vm0, %v2123_v22, %v2124_v26  ;;  %v2191_v10 = vadd.f32 %v2124_v26, %v1600_v29  ;;  %v2249_v21 = vrot.slane %v1938_v45, 2 }
 0x143   :  { %v2190_v37 = vadd.f32 %v2125_v13, %v1599_v27  ;;  %v2250_v43 = vrot.slane %v1939_v57, 2  ;;  %v2628_v46 = vrot.slane %v5397_v40, 2  ;;  %v1426_v39 = vmul.f32 %v5272_v33, %v5148_v17 }
 0x144   :  { %v2376_v58 = vrot.slane %v2191_v10, 7  ;;  %v1427_v8 = vmul.f32 %v5323_v62, %v5148_v17  ;;  %v1456_v44 = vmul.f32 %v5323_v62, %v5151_v24  ;;  %v5416_v1 = vmul.f32 %v5328_v0, %v5151_v24 }
 0x145   :  { %v2251_v48 = vsel %vm940_vm2, %v2249_v21, %v2250_v43  ;;  %v2375_v36 = vrot.slane %v2190_v37, 7  ;;  %v2629_v50 = vsel %vm940_vm2, %v2627_v52, %v2628_v46  ;;  %v1687_v3 = vadd.f32 %v5229_v53, %v1426_v39 }
 0x146   :  { %v2316_v4 = vadd.f32 %v2251_v48, %v1812_v18  ;;  %v1485_v33 = vmul.f32 %v5323_v62, %v5169_v32  ;;  %v1486_v54 = vmul.f32 %v5328_v0, %v5169_v32  ;;  %v1514_v56 = vmul.f32 %v5380_v9, %v5175_v59 }
 0x147   :  { %v2377_v35 = vsel %vm1067_vm3, %v2375_v36, %v2376_v58  ;;  %v2442_v63 = vadd.f32 %v2375_v36, %v2064_v23  ;;  %v1515_v27 = vmul.f32 %v5384_v55, %v5175_v59  ;;  %v1813_v25 = vadd.f32 %v1746_v47, %v1687_v3  ;;  %v5440_v47 = vld [vmem:[#allocation2 + $0x68] sm:$0xff] }
 0x148   :  { %v2443_v29 = vadd.f32 %v2377_v35, %v2065_v31  ;;  %v1543_v38 = vmul.f32 %v5380_v9, %v5178_v6  ;;  %v1544_v62 = vmul.f32 %v5384_v55, %v5178_v6  ;;  %v1572_v11 = vmul.f32 %v5380_v9, %v5194_v19 }
 0x149   :  { %v2501_v61 = vrot.slane %v2442_v63, 1  ;;  %v1573_v40 = vmul.f32 %v5384_v55, %v5194_v19  ;;  %v1601_v60 = vmul.f32 %v5436_v28, %v5197_v42  ;;  %v2317_v2 = vadd.f32 %v2250_v43, %v1813_v25 }
 0x14a   :  { %v2502_v16 = vrot.slane %v2443_v29, 1  ;;  %v1602_v5 = vmul.f32 %v5440_v47, %v5197_v42  ;;  %v1630_v20 = vmul.f32 %v5436_v28, %v5200_v49  ;;  %v1631_v14 = vmul.f32 %v5440_v47, %v5200_v49 }
 0x14b   :  { %v1659_v34 = vmul.f32 %v5436_v28, %v5219_v51  ;;  %v5452_v15 = vmul.f32 %v5440_v47, %v5219_v51  ;;  %v1688_v7 = vadd.f32 %v5229_v53, %v1427_v8  ;;  %v1748_v41 = vrot.slane %v1456_v44, 1 }
 0x14c   :  { %v2503_v22 = vsel %vm434_vm0, %v2501_v61, %v2502_v16  ;;  %v2569_v30 = vadd.f32 %v2502_v16, %v2317_v2  ;;  %v1749_v45 = vrot.slane %v5416_v1, 1  ;;  %v1874_v18 = vrot.slane %v1514_v56, 6 }
 0x14d   :  { %v2568_v26 = vadd.f32 %v2503_v22, %v2316_v4  ;;  %v1875_v57 = vrot.slane %v1515_v27, 6  ;;  %v2000_v12 = vrot.slane %v1572_v11, 1  ;;  %v2001_v13 = vrot.slane %v1573_v40, 1  ;;  %v5492_v22 = vld [vmem:[#allocation2 + $0x70] sm:$0xff] }
 0x14e   :  { %v2695_v31 = vadd.f32 %v2628_v46, %v2569_v30  ;;  %v1750_v23 = vsel %vm434_vm0, %v1748_v41, %v1749_v45  ;;  %v2126_v10 = vrot.slane %v1630_v20, 1  ;;  %v1940_v52 = vadd.f32 %v1874_v18, %v1485_v33 }
 0x14f   :  { %v2694_v21 = vadd.f32 %v2629_v50, %v2568_v26  ;;  %v1814_v37 = vadd.f32 %v1750_v23, %v1688_v7  ;;  %v1876_v43 = vsel %vm561_vm1, %v1874_v18, %v1875_v57  ;;  %v2002_v39 = vsel %vm434_vm0, %v2000_v12, %v2001_v13 }
 0x150   :  { %4049 = vst [vmem:[#allocation9 + $0x118] sm:$0x3f] %v2695_v31  ;;  %v1941_v58 = vadd.f32 %v1876_v43, %v1486_v54  ;;  %v2067_v8 = vadd.f32 %v2001_v13, %v1544_v62  ;;  %v2127_v44 = vrot.slane %v1631_v14, 1  ;;  %v2066_v48 = vadd.f32 %v2002_v39, %v1543_v38 }
 0x151   :  { %4048 = vst [vmem:[#allocation9 + $0x110] sm:$0xff] %v2694_v21  ;;  %v2252_v36 = vrot.slane %v1940_v52, 2  ;;  %v2630_v1 = vrot.slane %v1659_v34, 2  ;;  %v2631_v46 = vrot.slane %v5452_v15, 2  ;;  %v1428_v35 = vmul.f32 %v5328_v0, %v5148_v17 }
 0x152   :  { %v2128_v4 = vsel %vm434_vm0, %v2126_v10, %v2127_v44  ;;  %v2193_v3 = vadd.f32 %v2127_v44, %v1602_v5  ;;  %v2253_v50 = vrot.slane %v1941_v58, 2  ;;  %v1429_v63 = vmul.f32 %v5380_v9, %v5148_v17 }
 0x153   :  { %v2192_v33 = vadd.f32 %v2128_v4, %v1601_v60  ;;  %v2632_v54 = vsel %vm940_vm2, %v2630_v1, %v2631_v46  ;;  %v1458_v56 = vmul.f32 %v5380_v9, %v5151_v24  ;;  %v1689_v25 = vadd.f32 %v5229_v53, %v1428_v35 }
 0x154   :  { %v2254_v27 = vsel %vm940_vm2, %v2252_v36, %v2253_v50  ;;  %v2379_v29 = vrot.slane %v2193_v3, 7  ;;  %v5473_v38 = vmul.f32 %v5384_v55, %v5151_v24  ;;  %v1487_v61 = vmul.f32 %v5380_v9, %v5169_v32 }
 0x155   :  { %v2318_v62 = vadd.f32 %v2254_v27, %v1814_v37  ;;  %v2378_v0 = vrot.slane %v2192_v33, 7  ;;  %v1488_v11 = vmul.f32 %v5384_v55, %v5169_v32  ;;  %v1815_v40 = vadd.f32 %v1749_v45, %v1689_v25  ;;  %v5496_v45 = vld [vmem:[#allocation2 + $0x78] sm:$0xff] }
 0x156   :  { %v1516_v60 = vmul.f32 %v5436_v28, %v5175_v59  ;;  %v1517_v16 = vmul.f32 %v5440_v47, %v5175_v59  ;;  %v1545_v2 = vmul.f32 %v5436_v28, %v5178_v6  ;;  %v1546_v14 = vmul.f32 %v5440_v47, %v5178_v6 }
 0x157   :  { %v2380_v5 = vsel %vm1067_vm3, %v2378_v0, %v2379_v29  ;;  %v2444_v20 = vadd.f32 %v2378_v0, %v2066_v48  ;;  %v1574_v9 = vmul.f32 %v5436_v28, %v5194_v19  ;;  %v2319_v15 = vadd.f32 %v2253_v50, %v1815_v40 }
 0x158   :  { %v2445_v34 = vadd.f32 %v2380_v5, %v2067_v8  ;;  %v1575_v7 = vmul.f32 %v5440_v47, %v5194_v19  ;;  %v1603_v30 = vmul.f32 %v5492_v22, %v5197_v42  ;;  %v1604_v26 = vmul.f32 %v5496_v45, %v5197_v42 }
 0x159   :  { %v2504_v41 = vrot.slane %v2444_v20, 1  ;;  %v1632_v18 = vmul.f32 %v5492_v22, %v5200_v49  ;;  %v1633_v57 = vmul.f32 %v5496_v45, %v5200_v49  ;;  %v1661_v31 = vmul.f32 %v5492_v22, %v5219_v51 }
 0x15a   :  { %v2505_v12 = vrot.slane %v2445_v34, 1  ;;  %v5508_v23 = vmul.f32 %v5496_v45, %v5219_v51  ;;  %v1690_v13 = vadd.f32 %v5229_v53, %v1429_v63  ;;  %v1751_v10 = vrot.slane %v1458_v56, 1 }
 0x15b   :  { %v1752_v21 = vrot.slane %v5473_v38, 1  ;;  %v1877_v37 = vrot.slane %v1516_v60, 6  ;;  %v1878_v43 = vrot.slane %v1517_v16, 6  ;;  %v2003_v39 = vrot.slane %v1574_v9, 1 }
 0x15c   :  { %v2506_v52 = vsel %vm434_vm0, %v2504_v41, %v2505_v12  ;;  %v2571_v58 = vadd.f32 %v2505_v12, %v2319_v15  ;;  %v2004_v8 = vrot.slane %v1575_v7, 1  ;;  %v2129_v27 = vrot.slane %v1632_v18, 1  ;;  %v5547_v12 = vld [vmem:[#allocation2 + $0x80] sm:$0xff] }
 0x15d   :  { %v2570_v44 = vadd.f32 %v2506_v52, %v2318_v62  ;;  %v1753_v48 = vsel %vm434_vm0, %v1751_v10, %v1752_v21  ;;  %v1879_v36 = vsel %vm561_vm1, %v1877_v37, %v1878_v43  ;;  %v1942_v1 = vadd.f32 %v1877_v37, %v1487_v61 }
 0x15e   :  { %v2697_v4 = vadd.f32 %v2631_v46, %v2571_v58  ;;  %v1816_v3 = vadd.f32 %v1753_v48, %v1690_v13  ;;  %v1943_v50 = vadd.f32 %v1879_v36, %v1488_v11  ;;  %v2005_v35 = vsel %vm434_vm0, %v2003_v39, %v2004_v8 }
 0x15f   :  { %v2696_v33 = vadd.f32 %v2632_v54, %v2570_v44  ;;  %v2068_v63 = vadd.f32 %v2005_v35, %v1545_v2  ;;  %v2069_v56 = vadd.f32 %v2004_v8, %v1546_v14  ;;  %v2130_v29 = vrot.slane %v1633_v57, 1 }
 0x160   :  { %4051 = vst [vmem:[#allocation9 + $0x128] sm:$0x3f] %v2697_v4  ;;  %v2255_v25 = vrot.slane %v1942_v1, 2  ;;  %v2256_v38 = vrot.slane %v1943_v50, 2  ;;  %v2633_v0 = vrot.slane %v1661_v31, 2  ;;  %v2634_v62 = vrot.slane %v5508_v23, 2 }
 0x161   :  { %4050 = vst [vmem:[#allocation9 + $0x120] sm:$0xff] %v2696_v33  ;;  %v1430_v61 = vmul.f32 %v5384_v55, %v5148_v17  ;;  %v1431_v46 = vmul.f32 %v5436_v28, %v5148_v17  ;;  %v1460_v54 = vmul.f32 %v5436_v28, %v5151_v24  ;;  %v2131_v11 = vsel %vm434_vm0, %v2129_v27, %v2130_v29 }
 0x162   :  { %v2195_v40 = vadd.f32 %v2130_v29, %v1604_v26  ;;  %v2257_v60 = vsel %vm940_vm2, %v2255_v25, %v2256_v38  ;;  %v5527_v16 = vmul.f32 %v5440_v47, %v5151_v24  ;;  %v2194_v2 = vadd.f32 %v2131_v11, %v1603_v30 }
 0x163   :  { %v2320_v5 = vadd.f32 %v2257_v60, %v1816_v3  ;;  %v2635_v20 = vsel %vm940_vm2, %v2633_v0, %v2634_v62  ;;  %v1691_v55 = vadd.f32 %v5229_v53, %v1430_v61  ;;  %v1489_v9 = vmul.f32 %v5436_v28, %v5169_v32 }
 0x164   :  { %v2382_v14 = vrot.slane %v2195_v40, 7  ;;  %v1490_v34 = vmul.f32 %v5440_v47, %v5169_v32  ;;  %v1518_v15 = vmul.f32 %v5492_v22, %v5175_v59  ;;  %v2381_v7 = vrot.slane %v2194_v2, 7 }
 0x165   :  { %v1817_v41 = vadd.f32 %v1752_v21, %v1691_v55  ;;  %v1519_v30 = vmul.f32 %v5496_v45, %v5175_v59  ;;  %v1547_v26 = vmul.f32 %v5492_v22, %v5178_v6  ;;  %v1548_v18 = vmul.f32 %v5496_v45, %v5178_v6  ;;  %v5552_v21 = vld [vmem:[#allocation2 + $0x88] sm:$0xff] }
 0x166   :  { %v1576_v28 = vmul.f32 %v5492_v22, %v5194_v19  ;;  %v1577_v57 = vmul.f32 %v5496_v45, %v5194_v19  ;;  %v1605_v31 = vmul.f32 %v5547_v12, %v5197_v42  ;;  %v2383_v23 = vsel %vm1067_vm3, %v2381_v7, %v2382_v14 }
 0x167   :  { %v2446_v13 = vadd.f32 %v2381_v7, %v2068_v63  ;;  %v2321_v10 = vadd.f32 %v2256_v38, %v1817_v41  ;;  %v1606_v37 = vmul.f32 %v5552_v21, %v5197_v42  ;;  %v2447_v43 = vadd.f32 %v2383_v23, %v2069_v56 }
 0x168   :  { %v1634_v52 = vmul.f32 %v5547_v12, %v5200_v49  ;;  %v1635_v58 = vmul.f32 %v5552_v21, %v5200_v49  ;;  %v1663_v39 = vmul.f32 %v5547_v12, %v5219_v51  ;;  %v5564_v44 = vmul.f32 %v5552_v21, %v5219_v51 }
 0x169   :  { %v2507_v8 = vrot.slane %v2446_v13, 1  ;;  %v1692_v48 = vadd.f32 %v5229_v53, %v1431_v46  ;;  %v1754_v36 = vrot.slane %v1460_v54, 1  ;;  %v2508_v1 = vrot.slane %v2447_v43, 1 }
 0x16a   :  { %v1755_v4 = vrot.slane %v5527_v16, 1  ;;  %v1880_v3 = vrot.slane %v1518_v15, 6  ;;  %v1881_v50 = vrot.slane %v1519_v30, 6  ;;  %v2006_v35 = vrot.slane %v1576_v28, 1 }
 0x16b   :  { %v2007_v33 = vrot.slane %v1577_v57, 1  ;;  %v2132_v63 = vrot.slane %v1634_v52, 1  ;;  %v2133_v56 = vrot.slane %v1635_v58, 1  ;;  %v2509_v27 = vsel %vm434_vm0, %v2507_v8, %v2508_v1 }
 0x16c   :  { %v2573_v29 = vadd.f32 %v2508_v1, %v2321_v10  ;;  %v1756_v25 = vsel %vm434_vm0, %v1754_v36, %v1755_v4  ;;  %v1882_v38 = vsel %vm561_vm1, %v1880_v3, %v1881_v50  ;;  %v2572_v0 = vadd.f32 %v2509_v27, %v2320_v5  ;;  %v5604_v50 = vld [vmem:[#allocation2 + $0x90] sm:$0xff] }
 0x16d   :  { %v1818_v61 = vadd.f32 %v1756_v25, %v1692_v48  ;;  %v1944_v46 = vadd.f32 %v1880_v3, %v1489_v9  ;;  %v1945_v54 = vadd.f32 %v1882_v38, %v1490_v34  ;;  %v2008_v40 = vsel %vm434_vm0, %v2006_v35, %v2007_v33  ;;  %v5608_v35 = vld [vmem:[#allocation2 + $0x98] sm:$0xff] }
 0x16e   :  { %v2699_v11 = vadd.f32 %v2634_v62, %v2573_v29  ;;  %v2071_v60 = vadd.f32 %v2007_v33, %v1548_v18  ;;  %v2134_v16 = vsel %vm434_vm0, %v2132_v63, %v2133_v56  ;;  %v2698_v2 = vadd.f32 %v2635_v20, %v2572_v0 }
 0x16f   :  { %v2070_v55 = vadd.f32 %v2008_v40, %v1547_v26  ;;  %v2196_v14 = vadd.f32 %v2134_v16, %v1605_v31  ;;  %v2197_v15 = vadd.f32 %v2133_v56, %v1606_v37  ;;  %v2258_v7 = vrot.slane %v1944_v46, 2 }
 0x170   :  { %4053 = vst [vmem:[#allocation9 + $0x138] sm:$0x3f] %v2699_v11  ;;  %v2259_v41 = vrot.slane %v1945_v54, 2  ;;  %v2636_v30 = vrot.slane %v1663_v39, 2  ;;  %v2637_v28 = vrot.slane %v5564_v44, 2  ;;  %4052 = vst [vmem:[#allocation9 + $0x130] sm:$0xff] %v2698_v2  ;;  %v1432_v62 = vmul.f32 %v5440_v47, %v5148_v17 }
 0x171   :  { %v2384_v5 = vrot.slane %v2196_v14, 7  ;;  %v2385_v9 = vrot.slane %v2197_v15, 7  ;;  %v1433_v34 = vmul.f32 %v5492_v22, %v5148_v17  ;;  %v1462_v18 = vmul.f32 %v5492_v22, %v5151_v24 }
 0x172   :  { %v2260_v20 = vsel %vm940_vm2, %v2258_v7, %v2259_v41  ;;  %v2638_v26 = vsel %vm940_vm2, %v2636_v30, %v2637_v28  ;;  %v5584_v57 = vmul.f32 %v5496_v45, %v5151_v24  ;;  %v1693_v47 = vadd.f32 %v5229_v53, %v1432_v62 }
 0x173   :  { %v2322_v31 = vadd.f32 %v2260_v20, %v1818_v61  ;;  %v2386_v23 = vsel %vm1067_vm3, %v2384_v5, %v2385_v9  ;;  %v2448_v13 = vadd.f32 %v2384_v5, %v2070_v55  ;;  %v1491_v37 = vmul.f32 %v5492_v22, %v5169_v32 }
 0x174   :  { %v2449_v10 = vadd.f32 %v2386_v23, %v2071_v60  ;;  %v1492_v43 = vmul.f32 %v5496_v45, %v5169_v32  ;;  %v1520_v52 = vmul.f32 %v5547_v12, %v5175_v59  ;;  %v1819_v39 = vadd.f32 %v1755_v4, %v1693_v47 }
 0x175   :  { %v2510_v58 = vrot.slane %v2448_v13, 1  ;;  %v1521_v8 = vmul.f32 %v5552_v21, %v5175_v59  ;;  %v1549_v44 = vmul.f32 %v5547_v12, %v5178_v6  ;;  %v1550_v36 = vmul.f32 %v5552_v21, %v5178_v6 }
 0x176   :  { %v2511_v48 = vrot.slane %v2449_v10, 1  ;;  %v1578_v22 = vmul.f32 %v5547_v12, %v5194_v19  ;;  %v1579_v1 = vmul.f32 %v5552_v21, %v5194_v19  ;;  %v2323_v3 = vadd.f32 %v2259_v41, %v1819_v39 }
 0x177   :  { %v1607_v4 = vmul.f32 %v5604_v50, %v5197_v42  ;;  %v1608_v33 = vmul.f32 %v5608_v35, %v5197_v42  ;;  %v1636_v63 = vmul.f32 %v5604_v50, %v5200_v49  ;;  %v1637_v27 = vmul.f32 %v5608_v35, %v5200_v49 }
 0x178   :  { %v2512_v56 = vsel %vm434_vm0, %v2510_v58, %v2511_v48  ;;  %v1665_v29 = vmul.f32 %v5604_v50, %v5219_v51  ;;  %v5621_v25 = vmul.f32 %v5608_v35, %v5219_v51  ;;  %v2575_v0 = vadd.f32 %v2511_v48, %v2323_v3 }
 0x179   :  { %v2574_v38 = vadd.f32 %v2512_v56, %v2322_v31  ;;  %v1694_v61 = vadd.f32 %v5229_v53, %v1433_v34  ;;  %v1757_v46 = vrot.slane %v1462_v18, 1  ;;  %v1758_v54 = vrot.slane %v5584_v57, 1 }
 0x17a   :  { %v1883_v11 = vrot.slane %v1520_v52, 6  ;;  %v1884_v40 = vrot.slane %v1521_v8, 6  ;;  %v2009_v60 = vrot.slane %v1578_v22, 1  ;;  %v2701_v2 = vadd.f32 %v2637_v28, %v2575_v0 }
 0x17b   :  { %v2700_v16 = vadd.f32 %v2638_v26, %v2574_v38  ;;  %v2010_v55 = vrot.slane %v1579_v1, 1  ;;  %v2135_v14 = vrot.slane %v1636_v63, 1  ;;  %v1759_v15 = vsel %vm434_vm0, %v1757_v46, %v1758_v54  ;;  %v5660_v38 = vld [vmem:[#allocation2 + $0xa0] sm:$0xff] }
 0x17c   :  { %v1885_v7 = vsel %vm561_vm1, %v1883_v11, %v1884_v40  ;;  %v1946_v41 = vadd.f32 %v1883_v11, %v1491_v37  ;;  %v2136_v30 = vrot.slane %v1637_v27, 1  ;;  %4055 = vst [vmem:[#allocation9 + $0x148] sm:$0x3f] %v2701_v2  ;;  %v1820_v5 = vadd.f32 %v1759_v15, %v1694_v61 }
 0x17d   :  { %4054 = vst [vmem:[#allocation9 + $0x140] sm:$0xff] %v2700_v16  ;;  %v1947_v9 = vadd.f32 %v1885_v7, %v1492_v43  ;;  %v2011_v62 = vsel %vm434_vm0, %v2009_v60, %v2010_v55  ;;  %v2073_v34 = vadd.f32 %v2010_v55, %v1550_v36  ;;  %v2639_v23 = vrot.slane %v1665_v29, 2 }
 0x17e   :  { %v2072_v20 = vadd.f32 %v2011_v62, %v1549_v44  ;;  %v2137_v18 = vsel %vm434_vm0, %v2135_v14, %v2136_v30  ;;  %v2199_v26 = vadd.f32 %v2136_v30, %v1608_v33  ;;  %v2261_v28 = vrot.slane %v1946_v41, 2 }
 0x17f   :  { %v2198_v57 = vadd.f32 %v2137_v18, %v1607_v4  ;;  %v2262_v31 = vrot.slane %v1947_v9, 2  ;;  %v2640_v13 = vrot.slane %v5621_v25, 2  ;;  %v1434_v10 = vmul.f32 %v5496_v45, %v5148_v17 }
 0x180   :  { %v2388_v47 = vrot.slane %v2199_v26, 7  ;;  %v1435_v37 = vmul.f32 %v5547_v12, %v5148_v17  ;;  %v1464_v43 = vmul.f32 %v5547_v12, %v5151_v24  ;;  %v5640_v8 = vmul.f32 %v5552_v21, %v5151_v24 }
 0x181   :  { %v2263_v52 = vsel %vm940_vm2, %v2261_v28, %v2262_v31  ;;  %v2387_v58 = vrot.slane %v2198_v57, 7  ;;  %v2641_v39 = vsel %vm940_vm2, %v2639_v23, %v2640_v13  ;;  %v1695_v48 = vadd.f32 %v5229_v53, %v1434_v10 }
 0x182   :  { %v2324_v44 = vadd.f32 %v2263_v52, %v1820_v5  ;;  %v1493_v45 = vmul.f32 %v5547_v12, %v5169_v32  ;;  %v1494_v36 = vmul.f32 %v5552_v21, %v5169_v32  ;;  %v1522_v3 = vmul.f32 %v5604_v50, %v5175_v59 }
 0x183   :  { %v2389_v22 = vsel %vm1067_vm3, %v2387_v58, %v2388_v47  ;;  %v2450_v1 = vadd.f32 %v2387_v58, %v2072_v20  ;;  %v1523_v4 = vmul.f32 %v5608_v35, %v5175_v59  ;;  %v1821_v63 = vadd.f32 %v1758_v54, %v1695_v48  ;;  %v5664_v54 = vld [vmem:[#allocation2 + $0xa8] sm:$0xff] }
 0x184   :  { %v2451_v33 = vadd.f32 %v2389_v22, %v2073_v34  ;;  %v1551_v56 = vmul.f32 %v5604_v50, %v5178_v6  ;;  %v1552_v12 = vmul.f32 %v5608_v35, %v5178_v6  ;;  %v1580_v29 = vmul.f32 %v5604_v50, %v5194_v19 }
 0x185   :  { %v2513_v27 = vrot.slane %v2450_v1, 1  ;;  %v1581_v25 = vmul.f32 %v5608_v35, %v5194_v19  ;;  %v1609_v0 = vmul.f32 %v5660_v38, %v5197_v42  ;;  %v2325_v46 = vadd.f32 %v2262_v31, %v1821_v63 }
 0x186   :  { %v2514_v61 = vrot.slane %v2451_v33, 1  ;;  %v1610_v11 = vmul.f32 %v5664_v54, %v5197_v42  ;;  %v1638_v40 = vmul.f32 %v5660_v38, %v5200_v49  ;;  %v1639_v60 = vmul.f32 %v5664_v54, %v5200_v49 }
 0x187   :  { %v1667_v16 = vmul.f32 %v5660_v38, %v5219_v51  ;;  %v5676_v2 = vmul.f32 %v5664_v54, %v5219_v51  ;;  %v1696_v55 = vadd.f32 %v5229_v53, %v1435_v37  ;;  %v1760_v7 = vrot.slane %v1464_v43, 1 }
 0x188   :  { %v2515_v14 = vsel %vm434_vm0, %v2513_v27, %v2514_v61  ;;  %v2577_v15 = vadd.f32 %v2514_v61, %v2325_v46  ;;  %v1761_v41 = vrot.slane %v5640_v8, 1  ;;  %v1886_v5 = vrot.slane %v1522_v3, 6 }
 0x189   :  { %v2576_v30 = vadd.f32 %v2515_v14, %v2324_v44  ;;  %v1887_v9 = vrot.slane %v1523_v4, 6  ;;  %v2012_v62 = vrot.slane %v1580_v29, 1  ;;  %v2013_v18 = vrot.slane %v1581_v25, 1  ;;  %v5716_v14 = vld [vmem:[#allocation2 + $0xb0] sm:$0xff] }
 0x18a   :  { %v2703_v34 = vadd.f32 %v2640_v13, %v2577_v15  ;;  %v1762_v20 = vsel %vm434_vm0, %v1760_v7, %v1761_v41  ;;  %v2138_v26 = vrot.slane %v1638_v40, 1  ;;  %v1948_v23 = vadd.f32 %v1886_v5, %v1493_v45 }
 0x18b   :  { %v2702_v28 = vadd.f32 %v2641_v39, %v2576_v30  ;;  %v1822_v57 = vadd.f32 %v1762_v20, %v1696_v55  ;;  %v1888_v31 = vsel %vm561_vm1, %v1886_v5, %v1887_v9  ;;  %v2014_v10 = vsel %vm434_vm0, %v2012_v62, %v2013_v18 }
 0x18c   :  { %4057 = vst [vmem:[#allocation9 + $0x158] sm:$0x3f] %v2703_v34  ;;  %v1949_v47 = vadd.f32 %v1888_v31, %v1494_v36  ;;  %v2075_v37 = vadd.f32 %v2013_v18, %v1552_v12  ;;  %v2139_v43 = vrot.slane %v1639_v60, 1  ;;  %v2074_v52 = vadd.f32 %v2014_v10, %v1551_v56 }
 0x18d   :  { %4056 = vst [vmem:[#allocation9 + $0x150] sm:$0xff] %v2702_v28  ;;  %v2264_v58 = vrot.slane %v1948_v23, 2  ;;  %v2642_v8 = vrot.slane %v1667_v16, 2  ;;  %v2643_v13 = vrot.slane %v5676_v2, 2  ;;  %v1436_v22 = vmul.f32 %v5552_v21, %v5148_v17 }
 0x18e   :  { %v2140_v44 = vsel %vm434_vm0, %v2138_v26, %v2139_v43  ;;  %v2201_v48 = vadd.f32 %v2139_v43, %v1610_v11  ;;  %v2265_v39 = vrot.slane %v1949_v47, 2  ;;  %v1437_v1 = vmul.f32 %v5604_v50, %v5148_v17 }
 0x18f   :  { %v2200_v45 = vadd.f32 %v2140_v44, %v1609_v0  ;;  %v2644_v36 = vsel %vm940_vm2, %v2642_v8, %v2643_v13  ;;  %v1466_v3 = vmul.f32 %v5604_v50, %v5151_v24  ;;  %v1697_v63 = vadd.f32 %v5229_v53, %v1436_v22 }
 0x190   :  { %v2266_v4 = vsel %vm940_vm2, %v2264_v58, %v2265_v39  ;;  %v2391_v33 = vrot.slane %v2201_v48, 7  ;;  %v5697_v56 = vmul.f32 %v5608_v35, %v5151_v24  ;;  %v1495_v27 = vmul.f32 %v5604_v50, %v5169_v32 }
 0x191   :  { %v2326_v12 = vadd.f32 %v2266_v4, %v1822_v57  ;;  %v2390_v21 = vrot.slane %v2200_v45, 7  ;;  %v1496_v29 = vmul.f32 %v5608_v35, %v5169_v32  ;;  %v1823_v25 = vadd.f32 %v1761_v41, %v1697_v63  ;;  %v5720_v41 = vld [vmem:[#allocation2 + $0xb8] sm:$0xff] }
 0x192   :  { %v1524_v0 = vmul.f32 %v5660_v38, %v5175_v59  ;;  %v1525_v61 = vmul.f32 %v5664_v54, %v5175_v59  ;;  %v1553_v46 = vmul.f32 %v5660_v38, %v5178_v6  ;;  %v1554_v60 = vmul.f32 %v5664_v54, %v5178_v6 }
 0x193   :  { %v2392_v11 = vsel %vm1067_vm3, %v2390_v21, %v2391_v33  ;;  %v2452_v40 = vadd.f32 %v2390_v21, %v2074_v52  ;;  %v1582_v50 = vmul.f32 %v5660_v38, %v5194_v19  ;;  %v2327_v2 = vadd.f32 %v2265_v39, %v1823_v25 }
 0x194   :  { %v2453_v16 = vadd.f32 %v2392_v11, %v2075_v37  ;;  %v1583_v55 = vmul.f32 %v5664_v54, %v5194_v19  ;;  %v1611_v15 = vmul.f32 %v5716_v14, %v5197_v42  ;;  %v1612_v30 = vmul.f32 %v5720_v41, %v5197_v42 }
 0x195   :  { %v2516_v7 = vrot.slane %v2452_v40, 1  ;;  %v1640_v5 = vmul.f32 %v5716_v14, %v5200_v49  ;;  %v1641_v9 = vmul.f32 %v5720_v41, %v5200_v49  ;;  %v1669_v34 = vmul.f32 %v5716_v14, %v5219_v51 }
 0x196   :  { %v2517_v62 = vrot.slane %v2453_v16, 1  ;;  %v5732_v20 = vmul.f32 %v5720_v41, %v5219_v51  ;;  %v1698_v18 = vadd.f32 %v5229_v53, %v1437_v1  ;;  %v1763_v26 = vrot.slane %v1466_v3, 1 }
 0x197   :  { %v1764_v28 = vrot.slane %v5697_v56, 1  ;;  %v1889_v57 = vrot.slane %v1524_v0, 6  ;;  %v1890_v31 = vrot.slane %v1525_v61, 6  ;;  %v2015_v10 = vrot.slane %v1582_v50, 1 }
 0x198   :  { %v2518_v23 = vsel %vm434_vm0, %v2516_v7, %v2517_v62  ;;  %v2579_v47 = vadd.f32 %v2517_v62, %v2327_v2  ;;  %v2016_v37 = vrot.slane %v1583_v55, 1  ;;  %v2141_v4 = vrot.slane %v1640_v5, 1  ;;  %v5771_v62 = vld [vmem:[#allocation2 + $0xc0] sm:$0xff] }
 0x199   :  { %v2578_v43 = vadd.f32 %v2518_v23, %v2326_v12  ;;  %v1765_v52 = vsel %vm434_vm0, %v1763_v26, %v1764_v28  ;;  %v1891_v58 = vsel %vm561_vm1, %v1889_v57, %v1890_v31  ;;  %v1950_v8 = vadd.f32 %v1889_v57, %v1495_v27 }
 0x19a   :  { %v2705_v44 = vadd.f32 %v2643_v13, %v2579_v47  ;;  %v1824_v48 = vadd.f32 %v1765_v52, %v1698_v18  ;;  %v1951_v39 = vadd.f32 %v1891_v58, %v1496_v29  ;;  %v2017_v22 = vsel %vm434_vm0, %v2015_v10, %v2016_v37 }
 0x19b   :  { %v2704_v45 = vadd.f32 %v2644_v36, %v2578_v43  ;;  %v2076_v1 = vadd.f32 %v2017_v22, %v1553_v46  ;;  %v2077_v3 = vadd.f32 %v2016_v37, %v1554_v60  ;;  %v2142_v33 = vrot.slane %v1641_v9, 1 }
 0x19c   :  { %4059 = vst [vmem:[#allocation9 + $0x168] sm:$0x3f] %v2705_v44  ;;  %v2267_v63 = vrot.slane %v1950_v8, 2  ;;  %v2268_v56 = vrot.slane %v1951_v39, 2  ;;  %v2645_v21 = vrot.slane %v1669_v34, 2  ;;  %v2646_v12 = vrot.slane %v5732_v20, 2 }
 0x19d   :  { %4058 = vst [vmem:[#allocation9 + $0x160] sm:$0xff] %v2704_v45  ;;  %v1438_v27 = vmul.f32 %v5608_v35, %v5148_v17  ;;  %v1439_v13 = vmul.f32 %v5660_v38, %v5148_v17  ;;  %v1468_v36 = vmul.f32 %v5660_v38, %v5151_v24  ;;  %v2143_v29 = vsel %vm434_vm0, %v2141_v4, %v2142_v33 }
 0x19e   :  { %v2203_v25 = vadd.f32 %v2142_v33, %v1612_v30  ;;  %v2269_v0 = vsel %vm940_vm2, %v2267_v63, %v2268_v56  ;;  %v5751_v61 = vmul.f32 %v5664_v54, %v5151_v24  ;;  %v2202_v46 = vadd.f32 %v2143_v29, %v1611_v15 }
 0x19f   :  { %v2328_v11 = vadd.f32 %v2269_v0, %v1824_v48  ;;  %v2647_v40 = vsel %vm940_vm2, %v2645_v21, %v2646_v12  ;;  %v1699_v35 = vadd.f32 %v5229_v53, %v1438_v27  ;;  %v1497_v50 = vmul.f32 %v5660_v38, %v5169_v32 }
 0x1a0   :  { %v2394_v60 = vrot.slane %v2203_v25, 7  ;;  %v1498_v16 = vmul.f32 %v5664_v54, %v5169_v32  ;;  %v1526_v2 = vmul.f32 %v5716_v14, %v5175_v59  ;;  %v2393_v55 = vrot.slane %v2202_v46, 7 }
 0x1a1   :  { %v1825_v7 = vadd.f32 %v1764_v28, %v1699_v35  ;;  %v1527_v15 = vmul.f32 %v5720_v41, %v5175_v59  ;;  %v1555_v30 = vmul.f32 %v5716_v14, %v5178_v6  ;;  %v1556_v5 = vmul.f32 %v5720_v41, %v5178_v6  ;;  %v5776_v28 = vld [vmem:[#allocation2 + $0xc8] sm:$0xff] }
 0x1a2   :  { %v1584_v38 = vmul.f32 %v5716_v14, %v5194_v19  ;;  %v1585_v9 = vmul.f32 %v5720_v41, %v5194_v19  ;;  %v1613_v34 = vmul.f32 %v5771_v62, %v5197_v42  ;;  %v2395_v20 = vsel %vm1067_vm3, %v2393_v55, %v2394_v60 }
 0x1a3   :  { %v2454_v18 = vadd.f32 %v2393_v55, %v2076_v1  ;;  %v2329_v26 = vadd.f32 %v2268_v56, %v1825_v7  ;;  %v1614_v57 = vmul.f32 %v5776_v28, %v5197_v42  ;;  %v2455_v31 = vadd.f32 %v2395_v20, %v2077_v3 }
 0x1a4   :  { %v1642_v23 = vmul.f32 %v5771_v62, %v5200_v49  ;;  %v1643_v47 = vmul.f32 %v5776_v28, %v5200_v49  ;;  %v1671_v10 = vmul.f32 %v5771_v62, %v5219_v51  ;;  %v5788_v43 = vmul.f32 %v5776_v28, %v5219_v51 }
 0x1a5   :  { %v2519_v37 = vrot.slane %v2454_v18, 1  ;;  %v1700_v52 = vadd.f32 %v5229_v53, %v1439_v13  ;;  %v1766_v58 = vrot.slane %v1468_v36, 1  ;;  %v2520_v8 = vrot.slane %v2455_v31, 1 }
 0x1a6   :  { %v1767_v44 = vrot.slane %v5751_v61, 1  ;;  %v1892_v48 = vrot.slane %v1526_v2, 6  ;;  %v1893_v39 = vrot.slane %v1527_v15, 6  ;;  %v2018_v22 = vrot.slane %v1584_v38, 1 }
 0x1a7   :  { %v2019_v45 = vrot.slane %v1585_v9, 1  ;;  %v2144_v1 = vrot.slane %v1642_v23, 1  ;;  %v2145_v3 = vrot.slane %v1643_v47, 1  ;;  %v2521_v4 = vsel %vm434_vm0, %v2519_v37, %v2520_v8 }
 0x1a8   :  { %v2581_v33 = vadd.f32 %v2520_v8, %v2329_v26  ;;  %v1768_v63 = vsel %vm434_vm0, %v1766_v58, %v1767_v44  ;;  %v1894_v56 = vsel %vm561_vm1, %v1892_v48, %v1893_v39  ;;  %v2580_v21 = vadd.f32 %v2521_v4, %v2328_v11  ;;  %v5828_v39 = vld [vmem:[#allocation2 + $0xd0] sm:$0xff] }
 0x1a9   :  { %v1826_v27 = vadd.f32 %v1768_v63, %v1700_v52  ;;  %v1952_v13 = vadd.f32 %v1892_v48, %v1497_v50  ;;  %v1953_v36 = vadd.f32 %v1894_v56, %v1498_v16  ;;  %v2020_v25 = vsel %vm434_vm0, %v2018_v22, %v2019_v45  ;;  %v5832_v22 = vld [vmem:[#allocation2 + $0xd8] sm:$0xff] }
 0x1aa   :  { %v2707_v29 = vadd.f32 %v2646_v12, %v2581_v33  ;;  %v2079_v0 = vadd.f32 %v2019_v45, %v1556_v5  ;;  %v2146_v61 = vsel %vm434_vm0, %v2144_v1, %v2145_v3  ;;  %v2706_v46 = vadd.f32 %v2647_v40, %v2580_v21 }
 0x1ab   :  { %v2078_v35 = vadd.f32 %v2020_v25, %v1555_v30  ;;  %v2204_v60 = vadd.f32 %v2146_v61, %v1613_v34  ;;  %v2205_v2 = vadd.f32 %v2145_v3, %v1614_v57  ;;  %v2270_v55 = vrot.slane %v1952_v13, 2 }
 0x1ac   :  { %4061 = vst [vmem:[#allocation9 + $0x178] sm:$0x3f] %v2707_v29  ;;  %v2271_v7 = vrot.slane %v1953_v36, 2  ;;  %v2648_v15 = vrot.slane %v1671_v10, 2  ;;  %v2649_v38 = vrot.slane %v5788_v43, 2  ;;  %4060 = vst [vmem:[#allocation9 + $0x170] sm:$0xff] %v2706_v46  ;;  %v1440_v12 = vmul.f32 %v5664_v54, %v5148_v17 }
 0x1ad   :  { %v2396_v11 = vrot.slane %v2204_v60, 7  ;;  %v2397_v50 = vrot.slane %v2205_v2, 7  ;;  %v1441_v16 = vmul.f32 %v5716_v14, %v5148_v17  ;;  %v1470_v5 = vmul.f32 %v5716_v14, %v5151_v24 }
 0x1ae   :  { %v2272_v40 = vsel %vm940_vm2, %v2270_v55, %v2271_v7  ;;  %v2650_v30 = vsel %vm940_vm2, %v2648_v15, %v2649_v38  ;;  %v5808_v9 = vmul.f32 %v5720_v41, %v5151_v24  ;;  %v1701_v54 = vadd.f32 %v5229_v53, %v1440_v12 }
 0x1af   :  { %v2330_v34 = vadd.f32 %v2272_v40, %v1826_v27  ;;  %v2398_v20 = vsel %vm1067_vm3, %v2396_v11, %v2397_v50  ;;  %v2456_v18 = vadd.f32 %v2396_v11, %v2078_v35  ;;  %v1499_v57 = vmul.f32 %v5716_v14, %v5169_v32 }
 0x1b0   :  { %v2457_v26 = vadd.f32 %v2398_v20, %v2079_v0  ;;  %v1500_v31 = vmul.f32 %v5720_v41, %v5169_v32  ;;  %v1528_v23 = vmul.f32 %v5771_v62, %v5175_v59  ;;  %v1827_v10 = vadd.f32 %v1767_v44, %v1701_v54 }
 0x1b1   :  { %v2522_v47 = vrot.slane %v2456_v18, 1  ;;  %v1529_v37 = vmul.f32 %v5776_v28, %v5175_v59  ;;  %v1557_v43 = vmul.f32 %v5771_v62, %v5178_v6  ;;  %v1558_v58 = vmul.f32 %v5776_v28, %v5178_v6 }
 0x1b2   :  { %v2523_v52 = vrot.slane %v2457_v26, 1  ;;  %v1586_v14 = vmul.f32 %v5771_v62, %v5194_v19  ;;  %v1587_v8 = vmul.f32 %v5776_v28, %v5194_v19  ;;  %v2331_v48 = vadd.f32 %v2271_v7, %v1827_v10 }
 0x1b3   :  { %v1615_v44 = vmul.f32 %v5828_v39, %v5197_v42  ;;  %v1616_v45 = vmul.f32 %v5832_v22, %v5197_v42  ;;  %v1644_v1 = vmul.f32 %v5828_v39, %v5200_v49  ;;  %v1645_v4 = vmul.f32 %v5832_v22, %v5200_v49 }
 0x1b4   :  { %v2524_v3 = vsel %vm434_vm0, %v2522_v47, %v2523_v52  ;;  %v1673_v33 = vmul.f32 %v5828_v39, %v5219_v51  ;;  %v5845_v63 = vmul.f32 %v5832_v22, %v5219_v51  ;;  %v2583_v21 = vadd.f32 %v2523_v52, %v2331_v48 }
 0x1b5   :  { %v2582_v56 = vadd.f32 %v2524_v3, %v2330_v34  ;;  %v1702_v27 = vadd.f32 %v5229_v53, %v1441_v16  ;;  %v1769_v13 = vrot.slane %v1470_v5, 1  ;;  %v1770_v36 = vrot.slane %v5808_v9, 1 }
 0x1b6   :  { %v1895_v29 = vrot.slane %v1528_v23, 6  ;;  %v1896_v25 = vrot.slane %v1529_v37, 6  ;;  %v2021_v0 = vrot.slane %v1586_v14, 1  ;;  %v2709_v46 = vadd.f32 %v2649_v38, %v2583_v21 }
 0x1b7   :  { %v2708_v61 = vadd.f32 %v2650_v30, %v2582_v56  ;;  %v2022_v35 = vrot.slane %v1587_v8, 1  ;;  %v2147_v60 = vrot.slane %v1644_v1, 1  ;;  %v1771_v2 = vsel %vm434_vm0, %v1769_v13, %v1770_v36 }
 0x1b8   :  { %v1897_v55 = vsel %vm561_vm1, %v1895_v29, %v1896_v25  ;;  %v1954_v7 = vadd.f32 %v1895_v29, %v1499_v57  ;;  %v2148_v15 = vrot.slane %v1645_v4, 1  ;;  %4063 = vst [vmem:[#allocation9 + $0x188] sm:$0x3f] %v2709_v46  ;;  %v1828_v11 = vadd.f32 %v1771_v2, %v1702_v27  ;;  %v4179_v27 = vld [vmem:[#allocation2 + $0xe8] sm:$0xff] }
 0x1b9   :  { %4062 = vst [vmem:[#allocation9 + $0x180] sm:$0xff] %v2708_v61  ;;  %v1955_v50 = vadd.f32 %v1897_v55, %v1500_v31  ;;  %v2023_v12 = vsel %vm434_vm0, %v2021_v0, %v2022_v35  ;;  %v2651_v34 = vrot.slane %v1673_v33, 2  ;;  %v2652_v20 = vrot.slane %v5845_v63, 2 }
 0x1ba   :  { %v2080_v16 = vadd.f32 %v2023_v12, %v1557_v43  ;;  %v2149_v40 = vsel %vm434_vm0, %v2147_v60, %v2148_v15  ;;  %v2207_v5 = vadd.f32 %v2148_v15, %v1616_v45  ;;  %v2273_v30 = vrot.slane %v1954_v7, 2 }
 0x1bb   :  { %v2206_v38 = vadd.f32 %v2149_v40, %v1615_v44  ;;  %v2274_v9 = vrot.slane %v1955_v50, 2  ;;  %v2081_v18 = vadd.f32 %v2022_v35, %v1558_v58  ;;  %v1442_v26 = vmul.f32 %v5720_v41, %v5148_v17 }
 0x1bc   :  { %v2400_v54 = vrot.slane %v2207_v5, 7  ;;  %v1443_v57 = vmul.f32 %v5771_v62, %v5148_v17  ;;  %v2653_v47 = vsel %vm940_vm2, %v2651_v34, %v2652_v20  ;;  %v1472_v10 = vmul.f32 %v5771_v62, %v5151_v24 }
 0x1bd   :  { %v2275_v31 = vsel %vm940_vm2, %v2273_v30, %v2274_v9  ;;  %v2399_v23 = vrot.slane %v2206_v38, 7  ;;  %v1703_v43 = vadd.f32 %v5229_v53, %v1442_v26  ;;  %v5865_v52 = vmul.f32 %v5776_v28, %v5151_v24 }
 0x1be   :  { %v2332_v37 = vadd.f32 %v2275_v31, %v1828_v11  ;;  %v1501_v41 = vmul.f32 %v5771_v62, %v5169_v32  ;;  %v1502_v8 = vmul.f32 %v5776_v28, %v5169_v32  ;;  %v1530_v48 = vmul.f32 %v5828_v39, %v5175_v59 }
 0x1bf   :  { %v2401_v58 = vsel %vm1067_vm3, %v2399_v23, %v2400_v54  ;;  %v2458_v14 = vadd.f32 %v2399_v23, %v2080_v16  ;;  %v1829_v45 = vadd.f32 %v1770_v36, %v1703_v43  ;;  %v1531_v1 = vmul.f32 %v5832_v22, %v5175_v59  ;;  %v4180_v36 = vld [vmem:[#allocation2 + $0xe0] sm:$0xff] }
 0x1c0   :  { %v2459_v44 = vadd.f32 %v2401_v58, %v2081_v18  ;;  %v1559_v3 = vmul.f32 %v5828_v39, %v5178_v6  ;;  %v1560_v62 = vmul.f32 %v5832_v22, %v5178_v6  ;;  %v1588_v33 = vmul.f32 %v5828_v39, %v5194_v19 }
 0x1c1   :  { %v2525_v4 = vrot.slane %v2458_v14, 1  ;;  %v1589_v63 = vmul.f32 %v5832_v22, %v5194_v19  ;;  %v2333_v21 = vadd.f32 %v2274_v9, %v1829_v45  ;;  %v1618_v13 = vmul.f32 %v4179_v27, %v5197_v42 }
 0x1c2   :  { %v2526_v56 = vrot.slane %v2459_v44, 1  ;;  %v1646_v29 = vmul.f32 %v4180_v36, %v5200_v49  ;;  %v1647_v25 = vmul.f32 %v4179_v27, %v5200_v49  ;;  %v1675_v0 = vmul.f32 %v4180_v36, %v5219_v51 }
 0x1c3   :  { %v5889_v61 = vmul.f32 %v4179_v27, %v5219_v51  ;;  %v1704_v46 = vadd.f32 %v5229_v53, %v1443_v57  ;;  %v1772_v2 = vrot.slane %v1472_v10, 1  ;;  %v1773_v55 = vrot.slane %v5865_v52, 1 }
 0x1c4   :  { %v2527_v35 = vsel %vm434_vm0, %v2525_v4, %v2526_v56  ;;  %v2585_v60 = vadd.f32 %v2526_v56, %v2333_v21  ;;  %v1898_v15 = vrot.slane %v1530_v48, 6  ;;  %v1899_v11 = vrot.slane %v1531_v1, 6 }
 0x1c5   :  { %v2584_v7 = vadd.f32 %v2527_v35, %v2332_v37  ;;  %v2024_v50 = vrot.slane %v1588_v33, 1  ;;  %v1774_v16 = vsel %vm434_vm0, %v1772_v2, %v1773_v55  ;;  %v2025_v40 = vrot.slane %v1589_v63, 1 }
 0x1c6   :  { %v2711_v12 = vadd.f32 %v2652_v20, %v2585_v60  ;;  %v2150_v5 = vrot.slane %v1646_v29, 1  ;;  %v1617_v38 = vmul.f32 %v4180_v36, %v5197_v42  ;;  %v1900_v9 = vsel %vm561_vm1, %v1898_v15, %v1899_v11  ;;  %v4181_v60 = vld [vmem:[#allocation2 + $0xf0] sm:$0xff] }
 0x1c7   :  { %v2710_v30 = vadd.f32 %v2653_v47, %v2584_v7  ;;  %v1956_v34 = vadd.f32 %v1898_v15, %v1501_v41  ;;  %v1830_v18 = vadd.f32 %v1774_v16, %v1704_v46  ;;  %v1957_v54 = vadd.f32 %v1900_v9, %v1502_v8 }
 0x1c8   :  { %4065 = vst [vmem:[#allocation9 + $0x198] sm:$0x3f] %v2711_v12  ;;  %v2026_v26 = vsel %vm434_vm0, %v2024_v50, %v2025_v40  ;;  %v2151_v57 = vrot.slane %v1647_v25, 1  ;;  %v2083_v31 = vadd.f32 %v2025_v40, %v1560_v62  ;;  %v2654_v20 = vrot.slane %v1675_v0, 2 }
 0x1c9   :  { %4064 = vst [vmem:[#allocation9 + $0x190] sm:$0xff] %v2710_v30  ;;  %v2276_v23 = vrot.slane %v1956_v34, 2  ;;  %v2655_v10 = vrot.slane %v5889_v61, 2  ;;  %v2277_v43 = vrot.slane %v1957_v54, 2  ;;  %v1444_v52 = vmul.f32 %v5776_v28, %v5148_v17 }
 0x1ca   :  { %v2152_v37 = vsel %vm434_vm0, %v2150_v5, %v2151_v57  ;;  %v2209_v47 = vadd.f32 %v2151_v57, %v1618_v13  ;;  %v2082_v41 = vadd.f32 %v2026_v26, %v1559_v3  ;;  %v1445_v8 = vmul.f32 %v5828_v39, %v5148_v17 }
 0x1cb   :  { %v2208_v58 = vadd.f32 %v2152_v37, %v1617_v38  ;;  %v2656_v14 = vsel %vm940_vm2, %v2654_v20, %v2655_v10  ;;  %v2278_v48 = vsel %vm940_vm2, %v2276_v23, %v2277_v43  ;;  %v1705_v45 = vadd.f32 %v5229_v53, %v1444_v52 }
 0x1cc   :  { %v2403_v44 = vrot.slane %v2209_v47, 7  ;;  %v1474_v1 = vmul.f32 %v5828_v39, %v5151_v24  ;;  %v2334_v4 = vadd.f32 %v2278_v48, %v1830_v18  ;;  %v5911_v28 = vmul.f32 %v5832_v22, %v5151_v24 }
 0x1cd   :  { %v2402_v62 = vrot.slane %v2208_v58, 7  ;;  %v1503_v3 = vmul.f32 %v5828_v39, %v5169_v32  ;;  %v1831_v33 = vadd.f32 %v1773_v55, %v1705_v45  ;;  %v1504_v63 = vmul.f32 %v5832_v22, %v5169_v32 }
 0x1ce   :  { %v1532_v56 = vmul.f32 %v4180_v36, %v5175_v59  ;;  %v1533_v21 = vmul.f32 %v4179_v27, %v5175_v59  ;;  %v1561_v25 = vmul.f32 %v4180_v36, %v5178_v6  ;;  %v1562_v0 = vmul.f32 %v4179_v27, %v5178_v6  ;;  %v4182_v59 = vld [vmem:[#allocation2 + $0xf8] sm:$0xff] }
 0x1cf   :  { %v2404_v13 = vsel %vm1067_vm3, %v2402_v62, %v2403_v44  ;;  %v2460_v29 = vadd.f32 %v2402_v62, %v2082_v41  ;;  %v2335_v61 = vadd.f32 %v2277_v43, %v1831_v33  ;;  %v1590_v46 = vmul.f32 %v4180_v36, %v5194_v19 }
 0x1d0   :  { %v2461_v24 = vadd.f32 %v2404_v13, %v2083_v31  ;;  %v1591_v39 = vmul.f32 %v4179_v27, %v5194_v19  ;;  %v1619_v32 = vmul.f32 %v4181_v60, %v5197_v42  ;;  %v1648_v2 = vmul.f32 %v4181_v60, %v5200_v49 }
 0x1d1   :  { %v2528_v35 = vrot.slane %v2460_v29, 1  ;;  %v1649_v55 = vmul.f32 %v4182_v59, %v5200_v49  ;;  %v1677_v7 = vmul.f32 %v4181_v60, %v5219_v51  ;;  %v5933_v36 = vmul.f32 %v4182_v59, %v5219_v51  ;;  %v4185_v60 = vld [vmem:[#allocation2 + $0x10] sm:$0xff] }
 0x1d2   :  { %v2529_v6 = vrot.slane %v2461_v24, 1  ;;  %v1706_v19 = vadd.f32 %v5229_v53, %v1445_v8  ;;  %v1775_v27 = vrot.slane %v1474_v1, 1  ;;  %v1776_v15 = vrot.slane %v5911_v28, 1 }
 0x1d3   :  { %v1901_v11 = vrot.slane %v1532_v56, 6  ;;  %v1902_v50 = vrot.slane %v1533_v21, 6  ;;  %v2027_v16 = vrot.slane %v1590_v46, 1  ;;  %v2028_v40 = vrot.slane %v1591_v39, 1  ;;  %v4184_v56 = vld [vmem:[#allocation2 + $0x8] sm:$0xff] }
 0x1d4   :  { %v2530_v12 = vsel %vm434_vm0, %v2528_v35, %v2529_v6  ;;  %v2587_v49 = vadd.f32 %v2529_v6, %v2335_v61  ;;  %v1777_v30 = vsel %vm434_vm0, %v1775_v27, %v1776_v15  ;;  %v1620_v34 = vmul.f32 %v4182_v59, %v5197_v42 }
 0x1d5   :  { %v2586_v5 = vadd.f32 %v2530_v12, %v2334_v4  ;;  %v1903_v51 = vsel %vm561_vm1, %v1901_v11, %v1902_v50  ;;  %v1958_v38 = vadd.f32 %v1901_v11, %v1503_v3  ;;  %v2029_v54 = vsel %vm434_vm0, %v2027_v16, %v2028_v40 }
 0x1d6   :  { %v2713_v9 = vadd.f32 %v2655_v10, %v2587_v49  ;;  %v1959_v18 = vadd.f32 %v1903_v51, %v1504_v63  ;;  %v1832_v57 = vadd.f32 %v1777_v30, %v1706_v19  ;;  %v2084_v31 = vadd.f32 %v2029_v54, %v1561_v25  ;;  %v6015_v49 = vld [vmem:[#allocation2 + $0x20] sm:$0xff] }
 0x1d7   :  { %v2712_v26 = vadd.f32 %v2656_v14, %v2586_v5  ;;  %v2153_v23 = vrot.slane %v1648_v2, 1  ;;  %v2154_v20 = vrot.slane %v1649_v55, 1  ;;  %v2279_v10 = vrot.slane %v1958_v38, 2  ;;  %v5995_v2 = vld [vmem:[#allocation2 + $0x18] sm:$0xff] }
 0x1d8   :  { %4067 = vst [vmem:[#allocation9 + $0x1a8] sm:$0x3f] %v2713_v9  ;;  %v2280_v37 = vrot.slane %v1959_v18, 2  ;;  %v2657_v42 = vrot.slane %v1677_v7, 2  ;;  %v2658_v47 = vrot.slane %v5933_v36, 2  ;;  %v1446_v43 = vmul.f32 %v5832_v22, %v5148_v17  ;;  %v4183_v22 = vld [vmem:[#allocation2] sm:$0xff] }
 0x1d9   :  { %4066 = vst [vmem:[#allocation9 + $0x1a0] sm:$0xff] %v2712_v26  ;;  %v5956_v52 = vstv %s5927_s27  ;;  %v5959_v41 = vstv %s5929_s28  ;;  %v2085_v58 = vadd.f32 %v2028_v40, %v1562_v0  ;;  %v2155_v14 = vsel %vm434_vm0, %v2153_v23, %v2154_v20 }
 0x1da   :  { %v2211_v8 = vadd.f32 %v2154_v20, %v1620_v34  ;;  %v2281_v48 = vsel %vm940_vm2, %v2279_v10, %v2280_v37  ;;  %v2210_v44 = vadd.f32 %v2155_v14, %v1619_v32  ;;  %v1707_v17 = vadd.f32 %v5229_v53, %v1446_v43 }
 0x1db   :  { %v2336_v45 = vadd.f32 %v2281_v48, %v1832_v57  ;;  %v2717_v1 = vmul.f32 %v4183_v22, %v5956_v52  ;;  %v2659_v62 = vsel %vm940_vm2, %v2657_v42, %v2658_v47  ;;  %v2746_v28 = vmul.f32 %v4183_v22, %v5959_v41 }
 0x1dc   :  { %v2406_v4 = vrot.slane %v2211_v8, 7  ;;  %v5974_v3 = vstv %s5938_s29  ;;  %v2405_v33 = vrot.slane %v2210_v44, 7  ;;  %v1833_v63 = vadd.f32 %v1776_v15, %v1707_v17  ;;  %v6005_v15 = vld [vmem:[#allocation2 + $0x28] sm:$0xff] }
 0x1dd   :  { %v5977_v21 = vmul.f32 %v4184_v56, %v5959_v41  ;;  %v2775_v53 = vmul.f32 %v4183_v22, %v5974_v3  ;;  %v2776_v13 = vmul.f32 %v4184_v56, %v5974_v3  ;;  %v5982_v29 = vstv %s5942_s30 }
 0x1de   :  { %v5985_v25 = vstv %s5946_s4  ;;  %v5988_v0 = vstv %s5948_s5  ;;  %v2407_v24 = vsel %vm1067_vm3, %v2405_v33, %v2406_v4  ;;  %v2462_v61 = vadd.f32 %v2405_v33, %v2084_v31 }
 0x1df   :  { %v2337_v46 = vadd.f32 %v2280_v37, %v1833_v63  ;;  %v5992_v39 = vstv %s5950_s6  ;;  %v2463_v35 = vadd.f32 %v2407_v24, %v2085_v58  ;;  %v2804_v32 = vmul.f32 %v4185_v60, %v5982_v29 }
 0x1e0   :  { %v2805_v59 = vmul.f32 %v5995_v2, %v5982_v29  ;;  %v2833_v55 = vmul.f32 %v4185_v60, %v5985_v25  ;;  %v2531_v6 = vrot.slane %v2462_v61, 1  ;;  %v2834_v7 = vmul.f32 %v5995_v2, %v5985_v25 }
 0x1e1   :  { %v2862_v36 = vmul.f32 %v4185_v60, %v5988_v0  ;;  %v2863_v19 = vmul.f32 %v5995_v2, %v5988_v0  ;;  %v2532_v27 = vrot.slane %v2463_v35, 1  ;;  %v2892_v11 = vmul.f32 %v6005_v15, %v5992_v39 }
 0x1e2   :  { %v6010_v50 = vstv %s5963_s0  ;;  %v6013_v12 = vstv %s5965_s7  ;;  %v6029_v9 = vstv %s5970_s8  ;;  %v3034_v34 = vrot.slane %v2746_v28, 1 }
 0x1e3   :  { %v2920_v16 = vmul.f32 %v6015_v49, %v6010_v50  ;;  %v2921_v40 = vmul.f32 %v6005_v15, %v6010_v50  ;;  %v2949_v5 = vmul.f32 %v6015_v49, %v6013_v12  ;;  %v6025_v30 = vmul.f32 %v6005_v15, %v6013_v12 }
 0x1e4   :  { %v2533_v51 = vsel %vm434_vm0, %v2531_v6, %v2532_v27  ;;  %v2589_v38 = vadd.f32 %v2532_v27, %v2337_v46  ;;  %v2978_v54 = vadd.f32 %v6029_v9, %v2717_v1  ;;  %v3035_v26 = vrot.slane %v5977_v21, 1 }
 0x1e5   :  { %v2588_v18 = vadd.f32 %v2533_v51, %v2336_v45  ;;  %v3160_v57 = vrot.slane %v2804_v32, 6  ;;  %v3161_v23 = vrot.slane %v2805_v59, 6  ;;  %v3286_v20 = vrot.slane %v2862_v36, 1 }
 0x1e6   :  { %v2715_v31 = vadd.f32 %v2658_v47, %v2589_v38  ;;  %v3287_v10 = vrot.slane %v2863_v19, 1  ;;  %v3036_v42 = vsel %vm434_vm0, %v3034_v34, %v3035_v26  ;;  %v3412_v58 = vrot.slane %v2920_v16, 1  ;;  %v6066_v34 = vld [vmem:[#allocation2 + $0x38] sm:$0xff] }
 0x1e7   :  { %v2714_v37 = vadd.f32 %v2659_v62, %v2588_v18  ;;  %v3230_v43 = vadd.f32 %v3160_v57, %v2775_v53  ;;  %v2891_v14 = vmul.f32 %v6015_v49, %v5992_v39  ;;  %v3162_v8 = vsel %vm561_vm1, %v3160_v57, %v3161_v23 }
 0x1e8   :  { %4069 = vst [vmem:[#allocation9 + $0x1b8] sm:$0x3f] %v2715_v31  ;;  %v3288_v48 = vsel %vm434_vm0, %v3286_v20, %v3287_v10  ;;  %v3104_v44 = vadd.f32 %v3036_v42, %v2978_v54  ;;  %v3231_v45 = vadd.f32 %v3162_v8, %v2776_v13  ;;  %v3413_v47 = vrot.slane %v2921_v40, 1 }
 0x1e9   :  { %4068 = vst [vmem:[#allocation9 + $0x1b0] sm:$0xff] %v2714_v37  ;;  %v3538_v17 = vrot.slane %v3230_v43, 2  ;;  %v3357_v22 = vadd.f32 %v3287_v10, %v2834_v7  ;;  %v3916_v1 = vrot.slane %v2949_v5, 2  ;;  %v3917_v4 = vrot.slane %v6025_v30, 2 }
 0x1ea   :  { %v2718_v62 = vmul.f32 %v4184_v56, %v5956_v52  ;;  %v3356_v28 = vadd.f32 %v3288_v48, %v2833_v55  ;;  %v3414_v33 = vsel %vm434_vm0, %v3412_v58, %v3413_v47  ;;  %v3483_v63 = vadd.f32 %v3413_v47, %v2892_v11 }
 0x1eb   :  { %v3539_v21 = vrot.slane %v3231_v45, 2  ;;  %v3482_v53 = vadd.f32 %v3414_v33, %v2891_v14  ;;  %v2719_v61 = vmul.f32 %v4185_v60, %v5956_v52  ;;  %v2748_v13 = vmul.f32 %v4185_v60, %v5959_v41 }
 0x1ec   :  { %v2979_v24 = vadd.f32 %v6029_v9, %v2718_v62  ;;  %v3665_v35 = vrot.slane %v3483_v63, 7  ;;  %v3918_v32 = vsel %vm940_vm2, %v3916_v1, %v3917_v4  ;;  %v6048_v56 = vmul.f32 %v5995_v2, %v5959_v41 }
 0x1ed   :  { %v3540_v46 = vsel %vm940_vm2, %v3538_v17, %v3539_v21  ;;  %v3664_v59 = vrot.slane %v3482_v53, 7  ;;  %v2777_v6 = vmul.f32 %v4185_v60, %v5974_v3  ;;  %v2778_v7 = vmul.f32 %v5995_v2, %v5974_v3 }
 0x1ee   :  { %v3105_v55 = vadd.f32 %v3035_v26, %v2979_v24  ;;  %v3608_v36 = vadd.f32 %v3540_v46, %v3104_v44  ;;  %v2806_v19 = vmul.f32 %v6015_v49, %v5982_v29  ;;  %v2807_v27 = vmul.f32 %v6005_v15, %v5982_v29  ;;  %v6070_v26 = vld [vmem:[#allocation2 + $0x30] sm:$0xff] }
 0x1ef   :  { %v2835_v11 = vmul.f32 %v6015_v49, %v5985_v25  ;;  %v3666_v16 = vsel %vm1067_vm3, %v3664_v59, %v3665_v35  ;;  %v3734_v40 = vadd.f32 %v3664_v59, %v3356_v28  ;;  %v2864_v5 = vmul.f32 %v6015_v49, %v5988_v0 }
 0x1f0   :  { %v2865_v60 = vmul.f32 %v6005_v15, %v5988_v0  ;;  %v3735_v30 = vadd.f32 %v3666_v16, %v3357_v22  ;;  %v3609_v51 = vadd.f32 %v3539_v21, %v3105_v55  ;;  %v2836_v38 = vmul.f32 %v6005_v15, %v5985_v25 }
 0x1f1   :  { %v2894_v18 = vmul.f32 %v6066_v34, %v5992_v39  ;;  %v3790_v54 = vrot.slane %v3734_v40, 1  ;;  %v2922_v57 = vmul.f32 %v6070_v26, %v6010_v50  ;;  %v2923_v31 = vmul.f32 %v6066_v34, %v6010_v50 }
 0x1f2   :  { %v2951_v23 = vmul.f32 %v6070_v26, %v6013_v12  ;;  %v3791_v20 = vrot.slane %v3735_v30, 1  ;;  %v2980_v10 = vadd.f32 %v6029_v9, %v2719_v61  ;;  %v3037_v37 = vrot.slane %v2748_v13, 1 }
 0x1f3   :  { %v3038_v42 = vrot.slane %v6048_v56, 1  ;;  %v3163_v43 = vrot.slane %v2806_v19, 6  ;;  %v3164_v58 = vrot.slane %v2807_v27, 6  ;;  %v3289_v14 = vrot.slane %v2864_v5, 1 }
 0x1f4   :  { %v3290_v8 = vrot.slane %v2865_v60, 1  ;;  %v3792_v48 = vsel %vm434_vm0, %v3790_v54, %v3791_v20  ;;  %v3861_v44 = vadd.f32 %v3791_v20, %v3609_v51  ;;  %v6083_v45 = vmul.f32 %v6066_v34, %v6013_v12 }
 0x1f5   :  { %v3039_v47 = vsel %vm434_vm0, %v3037_v37, %v3038_v42  ;;  %v3860_v17 = vadd.f32 %v3792_v48, %v3608_v36  ;;  %v3165_v22 = vsel %vm561_vm1, %v3163_v43, %v3164_v58  ;;  %v3232_v1 = vadd.f32 %v3163_v43, %v2777_v6  ;;  %v6122_v43 = vld [vmem:[#allocation2 + $0x48] sm:$0xff] }
 0x1f6   :  { %v3415_v62 = vrot.slane %v2922_v57, 1  ;;  %v3987_v28 = vadd.f32 %v3917_v4, %v3861_v44  ;;  %v2893_v33 = vmul.f32 %v6070_v26, %v5992_v39  ;;  %v3233_v63 = vadd.f32 %v3165_v22, %v2778_v7 }
 0x1f7   :  { %v3291_v21 = vsel %vm434_vm0, %v3289_v14, %v3290_v8  ;;  %v3986_v53 = vadd.f32 %v3918_v32, %v3860_v17  ;;  %v3106_v24 = vadd.f32 %v3039_v47, %v2980_v10  ;;  %v3416_v61 = vrot.slane %v2923_v31, 1 }
 0x1f8   :  { %v3541_v13 = vrot.slane %v3232_v1, 2  ;;  %4071 = vst [vmem:[#allocation9 + $0x1c8] sm:$0x3f] %v3987_v28  ;;  %v3542_v46 = vrot.slane %v3233_v63, 2  ;;  %v3919_v35 = vrot.slane %v2951_v23, 2  ;;  %v3920_v56 = vrot.slane %v6083_v45, 2 }
 0x1f9   :  { %v2720_v59 = vmul.f32 %v5995_v2, %v5956_v52  ;;  %4070 = vst [vmem:[#allocation9 + $0x1c0] sm:$0xff] %v3986_v53  ;;  %v3358_v4 = vadd.f32 %v3291_v21, %v2835_v11  ;;  %v3359_v55 = vadd.f32 %v3290_v8, %v2836_v38  ;;  %v3417_v6 = vsel %vm434_vm0, %v3415_v62, %v3416_v61  ;;  %v6126_v8 = vld [vmem:[#allocation2 + $0x40] sm:$0xff] }
 0x1fa   :  { %v3485_v7 = vadd.f32 %v3416_v61, %v2894_v18  ;;  %v3484_v36 = vadd.f32 %v3417_v6, %v2893_v33  ;;  %v3543_v32 = vsel %vm940_vm2, %v3541_v13, %v3542_v46  ;;  %v2721_v27 = vmul.f32 %v6015_v49, %v5956_v52 }
 0x1fb   :  { %v2981_v19 = vadd.f32 %v6029_v9, %v2720_v59  ;;  %v3610_v16 = vadd.f32 %v3543_v32, %v3106_v24  ;;  %v3921_v5 = vsel %vm940_vm2, %v3919_v35, %v3920_v56  ;;  %v2750_v2 = vmul.f32 %v6015_v49, %v5959_v41 }
 0x1fc   :  { %v3668_v40 = vrot.slane %v3485_v7, 7  ;;  %v3667_v11 = vrot.slane %v3484_v36, 7  ;;  %v6103_v30 = vmul.f32 %v6005_v15, %v5959_v41  ;;  %v2779_v51 = vmul.f32 %v6015_v49, %v5974_v3 }
 0x1fd   :  { %v3107_v60 = vadd.f32 %v3038_v42, %v2981_v19  ;;  %v2780_v38 = vmul.f32 %v6005_v15, %v5974_v3  ;;  %v2808_v18 = vmul.f32 %v6070_v26, %v5982_v29  ;;  %v2809_v54 = vmul.f32 %v6066_v34, %v5982_v29 }
 0x1fe   :  { %v2837_v57 = vmul.f32 %v6070_v26, %v5985_v25  ;;  %v3669_v31 = vsel %vm1067_vm3, %v3667_v11, %v3668_v40  ;;  %v3736_v23 = vadd.f32 %v3667_v11, %v3358_v4  ;;  %v2866_v20 = vmul.f32 %v6070_v26, %v5988_v0 }
 0x1ff   :  { %v2867_v49 = vmul.f32 %v6066_v34, %v5988_v0  ;;  %v3737_v10 = vadd.f32 %v3669_v31, %v3359_v55  ;;  %v3611_v37 = vadd.f32 %v3542_v46, %v3107_v60  ;;  %v2838_v42 = vmul.f32 %v6066_v34, %v5985_v25 }
 0x200   :  { %v2896_v58 = vmul.f32 %v6122_v43, %v5992_v39  ;;  %v3793_v14 = vrot.slane %v3736_v23, 1  ;;  %v2924_v48 = vmul.f32 %v6126_v8, %v6010_v50  ;;  %v2925_v44 = vmul.f32 %v6122_v43, %v6010_v50 }
 0x201   :  { %v2953_v45 = vmul.f32 %v6126_v8, %v6013_v12  ;;  %v3794_v47 = vrot.slane %v3737_v10, 1  ;;  %v2982_v17 = vadd.f32 %v6029_v9, %v2721_v27  ;;  %v3040_v22 = vrot.slane %v2750_v2, 1 }
 0x202   :  { %v3041_v1 = vrot.slane %v6103_v30, 1  ;;  %v3166_v62 = vrot.slane %v2808_v18, 6  ;;  %v3167_v28 = vrot.slane %v2809_v54, 6  ;;  %v3292_v33 = vrot.slane %v2866_v20, 1 }
 0x203   :  { %v3293_v63 = vrot.slane %v2867_v49, 1  ;;  %v3795_v21 = vsel %vm434_vm0, %v3793_v14, %v3794_v47  ;;  %v3863_v53 = vadd.f32 %v3794_v47, %v3611_v37  ;;  %v6139_v24 = vmul.f32 %v6122_v43, %v6013_v12 }
 0x204   :  { %v3042_v61 = vsel %vm434_vm0, %v3040_v22, %v3041_v1  ;;  %v3862_v13 = vadd.f32 %v3795_v21, %v3610_v16  ;;  %v3168_v46 = vsel %vm561_vm1, %v3166_v62, %v3167_v28  ;;  %v3234_v35 = vadd.f32 %v3166_v62, %v2779_v51  ;;  %v6178_v62 = vld [vmem:[#allocation2 + $0x58] sm:$0xff] }
 0x205   :  { %v3418_v59 = vrot.slane %v2924_v48, 1  ;;  %v3989_v4 = vadd.f32 %v3920_v56, %v3863_v53  ;;  %v2895_v55 = vmul.f32 %v6126_v8, %v5992_v39  ;;  %v3235_v6 = vadd.f32 %v3168_v46, %v2780_v38 }
 0x206   :  { %v3294_v7 = vsel %vm434_vm0, %v3292_v33, %v3293_v63  ;;  %v3988_v36 = vadd.f32 %v3921_v5, %v3862_v13  ;;  %v3108_v32 = vadd.f32 %v3042_v61, %v2982_v17  ;;  %v3419_v19 = vrot.slane %v2925_v44, 1 }
 0x207   :  { %v3544_v27 = vrot.slane %v3234_v35, 2  ;;  %4073 = vst [vmem:[#allocation9 + $0x1d8] sm:$0x3f] %v3989_v4  ;;  %v3545_v40 = vrot.slane %v3235_v6, 2  ;;  %v3922_v2 = vrot.slane %v2953_v45, 2  ;;  %v3923_v16 = vrot.slane %v6139_v24, 2 }
 0x208   :  { %v2722_v11 = vmul.f32 %v6005_v15, %v5956_v52  ;;  %4072 = vst [vmem:[#allocation9 + $0x1d0] sm:$0xff] %v3988_v36  ;;  %v3360_v56 = vadd.f32 %v3294_v7, %v2837_v57  ;;  %v3361_v60 = vadd.f32 %v3293_v63, %v2838_v42  ;;  %v3420_v30 = vsel %vm434_vm0, %v3418_v59, %v3419_v19  ;;  %v6182_v63 = vld [vmem:[#allocation2 + $0x50] sm:$0xff] }
 0x209   :  { %v3487_v51 = vadd.f32 %v3419_v19, %v2896_v58  ;;  %v3486_v38 = vadd.f32 %v3420_v30, %v2895_v55  ;;  %v3546_v5 = vsel %vm940_vm2, %v3544_v27, %v3545_v40  ;;  %v2723_v54 = vmul.f32 %v6070_v26, %v5956_v52 }
 0x20a   :  { %v2983_v18 = vadd.f32 %v6029_v9, %v2722_v11  ;;  %v3612_v31 = vadd.f32 %v3546_v5, %v3108_v32  ;;  %v3924_v20 = vsel %vm940_vm2, %v3922_v2, %v3923_v16  ;;  %v2752_v15 = vmul.f32 %v6070_v26, %v5959_v41 }
 0x20b   :  { %v3671_v23 = vrot.slane %v3487_v51, 7  ;;  %v3670_v57 = vrot.slane %v3486_v38, 7  ;;  %v6159_v10 = vmul.f32 %v6066_v34, %v5959_v41  ;;  %v2781_v37 = vmul.f32 %v6070_v26, %v5974_v3 }
 0x20c   :  { %v3109_v49 = vadd.f32 %v3041_v1, %v2983_v18  ;;  %v2782_v42 = vmul.f32 %v6066_v34, %v5974_v3  ;;  %v2810_v58 = vmul.f32 %v6126_v8, %v5982_v29  ;;  %v2811_v14 = vmul.f32 %v6122_v43, %v5982_v29 }
 0x20d   :  { %v2839_v48 = vmul.f32 %v6126_v8, %v5985_v25  ;;  %v3672_v44 = vsel %vm1067_vm3, %v3670_v57, %v3671_v23  ;;  %v3738_v45 = vadd.f32 %v3670_v57, %v3360_v56  ;;  %v2868_v47 = vmul.f32 %v6126_v8, %v5988_v0 }
 0x20e   :  { %v2869_v26 = vmul.f32 %v6122_v43, %v5988_v0  ;;  %v3739_v17 = vadd.f32 %v3672_v44, %v3361_v60  ;;  %v3613_v22 = vadd.f32 %v3545_v40, %v3109_v49  ;;  %v2840_v1 = vmul.f32 %v6122_v43, %v5985_v25 }
 0x20f   :  { %v2898_v28 = vmul.f32 %v6178_v62, %v5992_v39  ;;  %v3796_v33 = vrot.slane %v3738_v45, 1  ;;  %v2926_v21 = vmul.f32 %v6182_v63, %v6010_v50  ;;  %v2927_v53 = vmul.f32 %v6178_v62, %v6010_v50 }
 0x210   :  { %v2955_v24 = vmul.f32 %v6182_v63, %v6013_v12  ;;  %v3797_v61 = vrot.slane %v3739_v17, 1  ;;  %v2984_v13 = vadd.f32 %v6029_v9, %v2723_v54  ;;  %v3043_v46 = vrot.slane %v2752_v15, 1 }
 0x211   :  { %v3044_v35 = vrot.slane %v6159_v10, 1  ;;  %v3169_v59 = vrot.slane %v2810_v58, 6  ;;  %v3170_v4 = vrot.slane %v2811_v14, 6  ;;  %v3295_v55 = vrot.slane %v2868_v47, 1 }
 0x212   :  { %v3296_v6 = vrot.slane %v2869_v26, 1  ;;  %v3798_v7 = vsel %vm434_vm0, %v3796_v33, %v3797_v61  ;;  %v3865_v36 = vadd.f32 %v3797_v61, %v3613_v22  ;;  %v6195_v32 = vmul.f32 %v6178_v62, %v6013_v12 }
 0x213   :  { %v3045_v19 = vsel %vm434_vm0, %v3043_v46, %v3044_v35  ;;  %v3864_v27 = vadd.f32 %v3798_v7, %v3612_v31  ;;  %v3171_v40 = vsel %vm561_vm1, %v3169_v59, %v3170_v4  ;;  %v3236_v2 = vadd.f32 %v3169_v59, %v2781_v37  ;;  %v6234_v59 = vld [vmem:[#allocation2 + $0x68] sm:$0xff] }
 0x214   :  { %v3421_v11 = vrot.slane %v2926_v21, 1  ;;  %v3991_v56 = vadd.f32 %v3923_v16, %v3865_v36  ;;  %v2897_v60 = vmul.f32 %v6182_v63, %v5992_v39  ;;  %v3237_v30 = vadd.f32 %v3171_v40, %v2782_v42 }
 0x215   :  { %v3297_v51 = vsel %vm434_vm0, %v3295_v55, %v3296_v6  ;;  %v3990_v38 = vadd.f32 %v3924_v20, %v3864_v27  ;;  %v3110_v5 = vadd.f32 %v3045_v19, %v2984_v13  ;;  %v3422_v18 = vrot.slane %v2927_v53, 1 }
 0x216   :  { %v3547_v54 = vrot.slane %v3236_v2, 2  ;;  %4075 = vst [vmem:[#allocation9 + $0x1e8] sm:$0x3f] %v3991_v56  ;;  %v3548_v23 = vrot.slane %v3237_v30, 2  ;;  %v3925_v15 = vrot.slane %v2955_v24, 2  ;;  %v3926_v31 = vrot.slane %v6195_v32, 2 }
 0x217   :  { %v2724_v57 = vmul.f32 %v6066_v34, %v5956_v52  ;;  %4074 = vst [vmem:[#allocation9 + $0x1e0] sm:$0xff] %v3990_v38  ;;  %v3362_v16 = vadd.f32 %v3297_v51, %v2839_v48  ;;  %v3363_v49 = vadd.f32 %v3296_v6, %v2840_v1  ;;  %v3423_v10 = vsel %vm434_vm0, %v3421_v11, %v3422_v18  ;;  %v6238_v6 = vld [vmem:[#allocation2 + $0x60] sm:$0xff] }
 0x218   :  { %v3489_v37 = vadd.f32 %v3422_v18, %v2898_v28  ;;  %v3488_v42 = vadd.f32 %v3423_v10, %v2897_v60  ;;  %v3549_v20 = vsel %vm940_vm2, %v3547_v54, %v3548_v23  ;;  %v2725_v14 = vmul.f32 %v6126_v8, %v5956_v52 }
 0x219   :  { %v2985_v58 = vadd.f32 %v6029_v9, %v2724_v57  ;;  %v3614_v44 = vadd.f32 %v3549_v20, %v3110_v5  ;;  %v3927_v47 = vsel %vm940_vm2, %v3925_v15, %v3926_v31  ;;  %v2754_v34 = vmul.f32 %v6126_v8, %v5959_v41 }
 0x21a   :  { %v3674_v45 = vrot.slane %v3489_v37, 7  ;;  %v3673_v48 = vrot.slane %v3488_v42, 7  ;;  %v6215_v17 = vmul.f32 %v6122_v43, %v5959_v41  ;;  %v2783_v22 = vmul.f32 %v6126_v8, %v5974_v3 }
 0x21b   :  { %v3111_v26 = vadd.f32 %v3044_v35, %v2985_v58  ;;  %v2784_v1 = vmul.f32 %v6122_v43, %v5974_v3  ;;  %v2812_v28 = vmul.f32 %v6182_v63, %v5982_v29  ;;  %v2813_v33 = vmul.f32 %v6178_v62, %v5982_v29 }
 0x21c   :  { %v2841_v21 = vmul.f32 %v6182_v63, %v5985_v25  ;;  %v3675_v53 = vsel %vm1067_vm3, %v3673_v48, %v3674_v45  ;;  %v3740_v24 = vadd.f32 %v3673_v48, %v3362_v16  ;;  %v2870_v61 = vmul.f32 %v6182_v63, %v5988_v0 }
 0x21d   :  { %v2871_v8 = vmul.f32 %v6178_v62, %v5988_v0  ;;  %v3741_v13 = vadd.f32 %v3675_v53, %v3363_v49  ;;  %v3615_v46 = vadd.f32 %v3548_v23, %v3111_v26  ;;  %v2842_v35 = vmul.f32 %v6178_v62, %v5985_v25 }
 0x21e   :  { %v2900_v4 = vmul.f32 %v6234_v59, %v5992_v39  ;;  %v3799_v55 = vrot.slane %v3740_v24, 1  ;;  %v2928_v7 = vmul.f32 %v6238_v6, %v6010_v50  ;;  %v2929_v36 = vmul.f32 %v6234_v59, %v6010_v50 }
 0x21f   :  { %v2957_v32 = vmul.f32 %v6238_v6, %v6013_v12  ;;  %v3800_v19 = vrot.slane %v3741_v13, 1  ;;  %v2986_v27 = vadd.f32 %v6029_v9, %v2725_v14  ;;  %v3046_v40 = vrot.slane %v2754_v34, 1 }
 0x220   :  { %v3047_v2 = vrot.slane %v6215_v17, 1  ;;  %v3172_v11 = vrot.slane %v2812_v28, 6  ;;  %v3173_v56 = vrot.slane %v2813_v33, 6  ;;  %v3298_v60 = vrot.slane %v2870_v61, 1 }
 0x221   :  { %v3299_v30 = vrot.slane %v2871_v8, 1  ;;  %v3801_v51 = vsel %vm434_vm0, %v3799_v55, %v3800_v19  ;;  %v3867_v38 = vadd.f32 %v3800_v19, %v3615_v46  ;;  %v6251_v5 = vmul.f32 %v6234_v59, %v6013_v12 }
 0x222   :  { %v3048_v18 = vsel %vm434_vm0, %v3046_v40, %v3047_v2  ;;  %v3866_v54 = vadd.f32 %v3801_v51, %v3614_v44  ;;  %v3174_v23 = vsel %vm561_vm1, %v3172_v11, %v3173_v56  ;;  %v3238_v15 = vadd.f32 %v3172_v11, %v2783_v22  ;;  %v6290_v11 = vld [vmem:[#allocation2 + $0x78] sm:$0xff] }
 0x223   :  { %v3424_v57 = vrot.slane %v2928_v7, 1  ;;  %v3993_v16 = vadd.f32 %v3926_v31, %v3867_v38  ;;  %v2899_v49 = vmul.f32 %v6238_v6, %v5992_v39  ;;  %v3239_v10 = vadd.f32 %v3174_v23, %v2784_v1 }
 0x224   :  { %v3300_v37 = vsel %vm434_vm0, %v3298_v60, %v3299_v30  ;;  %v3992_v42 = vadd.f32 %v3927_v47, %v3866_v54  ;;  %v3112_v20 = vadd.f32 %v3048_v18, %v2986_v27  ;;  %v3425_v58 = vrot.slane %v2929_v36, 1 }
 0x225   :  { %v3550_v14 = vrot.slane %v3238_v15, 2  ;;  %4077 = vst [vmem:[#allocation9 + $0x1f8] sm:$0x3f] %v3993_v16  ;;  %v3551_v45 = vrot.slane %v3239_v10, 2  ;;  %v3928_v34 = vrot.slane %v2957_v32, 2  ;;  %v3929_v44 = vrot.slane %v6251_v5, 2 }
 0x226   :  { %v2726_v48 = vmul.f32 %v6122_v43, %v5956_v52  ;;  %4076 = vst [vmem:[#allocation9 + $0x1f0] sm:$0xff] %v3992_v42  ;;  %v3364_v31 = vadd.f32 %v3300_v37, %v2841_v21  ;;  %v3365_v26 = vadd.f32 %v3299_v30, %v2842_v35  ;;  %v3426_v17 = vsel %vm434_vm0, %v3424_v57, %v3425_v58  ;;  %v6294_v30 = vld [vmem:[#allocation2 + $0x70] sm:$0xff] }
 0x227   :  { %v3491_v22 = vadd.f32 %v3425_v58, %v2900_v4  ;;  %v3490_v1 = vadd.f32 %v3426_v17, %v2899_v49  ;;  %v3552_v47 = vsel %vm940_vm2, %v3550_v14, %v3551_v45  ;;  %v2727_v33 = vmul.f32 %v6182_v63, %v5956_v52 }
 0x228   :  { %v2987_v28 = vadd.f32 %v6029_v9, %v2726_v48  ;;  %v3616_v53 = vadd.f32 %v3552_v47, %v3112_v20  ;;  %v3930_v61 = vsel %vm940_vm2, %v3928_v34, %v3929_v44  ;;  %v2756_v43 = vmul.f32 %v6182_v63, %v5959_v41 }
 0x229   :  { %v3677_v24 = vrot.slane %v3491_v22, 7  ;;  %v3676_v21 = vrot.slane %v3490_v1, 7  ;;  %v6271_v13 = vmul.f32 %v6178_v62, %v5959_v41  ;;  %v2785_v46 = vmul.f32 %v6182_v63, %v5974_v3 }
 0x22a   :  { %v3113_v8 = vadd.f32 %v3047_v2, %v2987_v28  ;;  %v2786_v35 = vmul.f32 %v6178_v62, %v5974_v3  ;;  %v2814_v4 = vmul.f32 %v6238_v6, %v5982_v29  ;;  %v2815_v55 = vmul.f32 %v6234_v59, %v5982_v29 }
 0x22b   :  { %v2843_v7 = vmul.f32 %v6238_v6, %v5985_v25  ;;  %v3678_v36 = vsel %vm1067_vm3, %v3676_v21, %v3677_v24  ;;  %v3742_v32 = vadd.f32 %v3676_v21, %v3364_v31  ;;  %v2872_v19 = vmul.f32 %v6238_v6, %v5988_v0 }
 0x22c   :  { %v2873_v63 = vmul.f32 %v6234_v59, %v5988_v0  ;;  %v3743_v27 = vadd.f32 %v3678_v36, %v3365_v26  ;;  %v3617_v40 = vadd.f32 %v3551_v45, %v3113_v8  ;;  %v2844_v2 = vmul.f32 %v6234_v59, %v5985_v25 }
 0x22d   :  { %v2902_v56 = vmul.f32 %v6290_v11, %v5992_v39  ;;  %v3802_v60 = vrot.slane %v3742_v32, 1  ;;  %v2930_v51 = vmul.f32 %v6294_v30, %v6010_v50  ;;  %v2931_v38 = vmul.f32 %v6290_v11, %v6010_v50 }
 0x22e   :  { %v2959_v5 = vmul.f32 %v6294_v30, %v6013_v12  ;;  %v3803_v18 = vrot.slane %v3743_v27, 1  ;;  %v2988_v54 = vadd.f32 %v6029_v9, %v2727_v33  ;;  %v3049_v23 = vrot.slane %v2756_v43, 1 }
 0x22f   :  { %v3050_v15 = vrot.slane %v6271_v13, 1  ;;  %v3175_v57 = vrot.slane %v2814_v4, 6  ;;  %v3176_v16 = vrot.slane %v2815_v55, 6  ;;  %v3301_v49 = vrot.slane %v2872_v19, 1 }
 0x230   :  { %v3302_v10 = vrot.slane %v2873_v63, 1  ;;  %v3804_v37 = vsel %vm434_vm0, %v3802_v60, %v3803_v18  ;;  %v3869_v42 = vadd.f32 %v3803_v18, %v3617_v40  ;;  %v6307_v20 = vmul.f32 %v6290_v11, %v6013_v12 }
 0x231   :  { %v3051_v58 = vsel %vm434_vm0, %v3049_v23, %v3050_v15  ;;  %v3868_v14 = vadd.f32 %v3804_v37, %v3616_v53  ;;  %v3177_v45 = vsel %vm561_vm1, %v3175_v57, %v3176_v16  ;;  %v3240_v34 = vadd.f32 %v3175_v57, %v2785_v46  ;;  %v6346_v57 = vld [vmem:[#allocation2 + $0x88] sm:$0xff] }
 0x232   :  { %v3427_v48 = vrot.slane %v2930_v51, 1  ;;  %v3995_v31 = vadd.f32 %v3929_v44, %v3869_v42  ;;  %v2901_v26 = vmul.f32 %v6294_v30, %v5992_v39  ;;  %v3241_v17 = vadd.f32 %v3177_v45, %v2786_v35 }
 0x233   :  { %v3303_v22 = vsel %vm434_vm0, %v3301_v49, %v3302_v10  ;;  %v3994_v1 = vadd.f32 %v3930_v61, %v3868_v14  ;;  %v3114_v47 = vadd.f32 %v3051_v58, %v2988_v54  ;;  %v3428_v28 = vrot.slane %v2931_v38, 1 }
 0x234   :  { %v3553_v33 = vrot.slane %v3240_v34, 2  ;;  %4079 = vst [vmem:[#allocation9 + $0x208] sm:$0x3f] %v3995_v31  ;;  %v3554_v24 = vrot.slane %v3241_v17, 2  ;;  %v3931_v43 = vrot.slane %v2959_v5, 2  ;;  %v3932_v53 = vrot.slane %v6307_v20, 2 }
 0x235   :  { %v2728_v21 = vmul.f32 %v6178_v62, %v5956_v52  ;;  %4078 = vst [vmem:[#allocation9 + $0x200] sm:$0xff] %v3994_v1  ;;  %v3366_v44 = vadd.f32 %v3303_v22, %v2843_v7  ;;  %v3367_v8 = vadd.f32 %v3302_v10, %v2844_v2  ;;  %v3429_v13 = vsel %vm434_vm0, %v3427_v48, %v3428_v28  ;;  %v6350_v10 = vld [vmem:[#allocation2 + $0x80] sm:$0xff] }
 0x236   :  { %v3493_v46 = vadd.f32 %v3428_v28, %v2902_v56  ;;  %v3492_v35 = vadd.f32 %v3429_v13, %v2901_v26  ;;  %v3555_v61 = vsel %vm940_vm2, %v3553_v33, %v3554_v24  ;;  %v2729_v55 = vmul.f32 %v6238_v6, %v5956_v52 }
 0x237   :  { %v2989_v4 = vadd.f32 %v6029_v9, %v2728_v21  ;;  %v3618_v36 = vadd.f32 %v3555_v61, %v3114_v47  ;;  %v3933_v19 = vsel %vm940_vm2, %v3931_v43, %v3932_v53  ;;  %v2758_v62 = vmul.f32 %v6238_v6, %v5959_v41 }
 0x238   :  { %v3680_v32 = vrot.slane %v3493_v46, 7  ;;  %v3679_v7 = vrot.slane %v3492_v35, 7  ;;  %v6327_v27 = vmul.f32 %v6234_v59, %v5959_v41  ;;  %v2787_v40 = vmul.f32 %v6238_v6, %v5974_v3 }
 0x239   :  { %v3115_v63 = vadd.f32 %v3050_v15, %v2989_v4  ;;  %v2788_v2 = vmul.f32 %v6234_v59, %v5974_v3  ;;  %v2816_v56 = vmul.f32 %v6294_v30, %v5982_v29  ;;  %v2817_v60 = vmul.f32 %v6290_v11, %v5982_v29 }
 0x23a   :  { %v2845_v51 = vmul.f32 %v6294_v30, %v5985_v25  ;;  %v3681_v38 = vsel %vm1067_vm3, %v3679_v7, %v3680_v32  ;;  %v3744_v5 = vadd.f32 %v3679_v7, %v3366_v44  ;;  %v2874_v18 = vmul.f32 %v6294_v30, %v5988_v0 }
 0x23b   :  { %v2875_v6 = vmul.f32 %v6290_v11, %v5988_v0  ;;  %v3745_v54 = vadd.f32 %v3681_v38, %v3367_v8  ;;  %v3619_v23 = vadd.f32 %v3554_v24, %v3115_v63  ;;  %v2846_v15 = vmul.f32 %v6290_v11, %v5985_v25 }
 0x23c   :  { %v2904_v16 = vmul.f32 %v6346_v57, %v5992_v39  ;;  %v3805_v49 = vrot.slane %v3744_v5, 1  ;;  %v2932_v37 = vmul.f32 %v6350_v10, %v6010_v50  ;;  %v2933_v42 = vmul.f32 %v6346_v57, %v6010_v50 }
 0x23d   :  { %v2961_v20 = vmul.f32 %v6350_v10, %v6013_v12  ;;  %v3806_v58 = vrot.slane %v3745_v54, 1  ;;  %v2990_v14 = vadd.f32 %v6029_v9, %v2729_v55  ;;  %v3052_v45 = vrot.slane %v2758_v62, 1 }
 0x23e   :  { %v3053_v34 = vrot.slane %v6327_v27, 1  ;;  %v3178_v48 = vrot.slane %v2816_v56, 6  ;;  %v3179_v31 = vrot.slane %v2817_v60, 6  ;;  %v3304_v26 = vrot.slane %v2874_v18, 1 }
 0x23f   :  { %v3305_v17 = vrot.slane %v2875_v6, 1  ;;  %v3807_v22 = vsel %vm434_vm0, %v3805_v49, %v3806_v58  ;;  %v3871_v1 = vadd.f32 %v3806_v58, %v3619_v23  ;;  %v6363_v47 = vmul.f32 %v6346_v57, %v6013_v12 }
 0x240   :  { %v3054_v28 = vsel %vm434_vm0, %v3052_v45, %v3053_v34  ;;  %v3870_v33 = vadd.f32 %v3807_v22, %v3618_v36  ;;  %v3180_v24 = vsel %vm561_vm1, %v3178_v48, %v3179_v31  ;;  %v3242_v43 = vadd.f32 %v3178_v48, %v2787_v40  ;;  %v6402_v48 = vld [vmem:[#allocation2 + $0x98] sm:$0xff] }
 0x241   :  { %v3430_v21 = vrot.slane %v2932_v37, 1  ;;  %v3997_v44 = vadd.f32 %v3932_v53, %v3871_v1  ;;  %v2903_v8 = vmul.f32 %v6350_v10, %v5992_v39  ;;  %v3243_v13 = vadd.f32 %v3180_v24, %v2788_v2 }
 0x242   :  { %v3306_v46 = vsel %vm434_vm0, %v3304_v26, %v3305_v17  ;;  %v3996_v35 = vadd.f32 %v3933_v19, %v3870_v33  ;;  %v3116_v61 = vadd.f32 %v3054_v28, %v2990_v14  ;;  %v3431_v4 = vrot.slane %v2933_v42, 1 }
 0x243   :  { %v3556_v55 = vrot.slane %v3242_v43, 2  ;;  %4081 = vst [vmem:[#allocation9 + $0x218] sm:$0x3f] %v3997_v44  ;;  %v3557_v32 = vrot.slane %v3243_v13, 2  ;;  %v3934_v62 = vrot.slane %v2961_v20, 2  ;;  %v3935_v36 = vrot.slane %v6363_v47, 2 }
 0x244   :  { %v2730_v7 = vmul.f32 %v6234_v59, %v5956_v52  ;;  %4080 = vst [vmem:[#allocation9 + $0x210] sm:$0xff] %v3996_v35  ;;  %v3368_v53 = vadd.f32 %v3306_v46, %v2845_v51  ;;  %v3369_v63 = vadd.f32 %v3305_v17, %v2846_v15  ;;  %v3432_v27 = vsel %vm434_vm0, %v3430_v21, %v3431_v4  ;;  %v6406_v17 = vld [vmem:[#allocation2 + $0x90] sm:$0xff] }
 0x245   :  { %v3495_v40 = vadd.f32 %v3431_v4, %v2904_v16  ;;  %v3494_v2 = vadd.f32 %v3432_v27, %v2903_v8  ;;  %v3558_v19 = vsel %vm940_vm2, %v3556_v55, %v3557_v32  ;;  %v2731_v60 = vmul.f32 %v6294_v30, %v5956_v52 }
 0x246   :  { %v2991_v56 = vadd.f32 %v6029_v9, %v2730_v7  ;;  %v3620_v38 = vadd.f32 %v3558_v19, %v3116_v61  ;;  %v3936_v18 = vsel %vm940_vm2, %v3934_v62, %v3935_v36  ;;  %v2760_v59 = vmul.f32 %v6294_v30, %v5959_v41 }
 0x247   :  { %v3683_v5 = vrot.slane %v3495_v40, 7  ;;  %v3682_v51 = vrot.slane %v3494_v2, 7  ;;  %v6383_v54 = vmul.f32 %v6290_v11, %v5959_v41  ;;  %v2789_v23 = vmul.f32 %v6294_v30, %v5974_v3 }
 0x248   :  { %v3117_v6 = vadd.f32 %v3053_v34, %v2991_v56  ;;  %v2790_v15 = vmul.f32 %v6290_v11, %v5974_v3  ;;  %v2818_v16 = vmul.f32 %v6350_v10, %v5982_v29  ;;  %v2819_v49 = vmul.f32 %v6346_v57, %v5982_v29 }
 0x249   :  { %v2847_v37 = vmul.f32 %v6350_v10, %v5985_v25  ;;  %v3684_v42 = vsel %vm1067_vm3, %v3682_v51, %v3683_v5  ;;  %v3746_v20 = vadd.f32 %v3682_v51, %v3368_v53  ;;  %v2876_v58 = vmul.f32 %v6350_v10, %v5988_v0 }
 0x24a   :  { %v2877_v30 = vmul.f32 %v6346_v57, %v5988_v0  ;;  %v3747_v14 = vadd.f32 %v3684_v42, %v3369_v63  ;;  %v3621_v45 = vadd.f32 %v3557_v32, %v3117_v6  ;;  %v2848_v34 = vmul.f32 %v6346_v57, %v5985_v25 }
 0x24b   :  { %v2906_v31 = vmul.f32 %v6402_v48, %v5992_v39  ;;  %v3808_v26 = vrot.slane %v3746_v20, 1  ;;  %v2934_v22 = vmul.f32 %v6406_v17, %v6010_v50  ;;  %v2935_v1 = vmul.f32 %v6402_v48, %v6010_v50 }
 0x24c   :  { %v2963_v47 = vmul.f32 %v6406_v17, %v6013_v12  ;;  %v3809_v28 = vrot.slane %v3747_v14, 1  ;;  %v2992_v33 = vadd.f32 %v6029_v9, %v2731_v60  ;;  %v3055_v24 = vrot.slane %v2760_v59, 1 }
 0x24d   :  { %v3056_v43 = vrot.slane %v6383_v54, 1  ;;  %v3181_v21 = vrot.slane %v2818_v16, 6  ;;  %v3182_v44 = vrot.slane %v2819_v49, 6  ;;  %v3307_v8 = vrot.slane %v2876_v58, 1 }
 0x24e   :  { %v3308_v13 = vrot.slane %v2877_v30, 1  ;;  %v3810_v46 = vsel %vm434_vm0, %v3808_v26, %v3809_v28  ;;  %v3873_v35 = vadd.f32 %v3809_v28, %v3621_v45  ;;  %v6419_v61 = vmul.f32 %v6402_v48, %v6013_v12 }
 0x24f   :  { %v3057_v4 = vsel %vm434_vm0, %v3055_v24, %v3056_v43  ;;  %v3872_v55 = vadd.f32 %v3810_v46, %v3620_v38  ;;  %v3183_v32 = vsel %vm561_vm1, %v3181_v21, %v3182_v44  ;;  %v3244_v62 = vadd.f32 %v3181_v21, %v2789_v23  ;;  %v6458_v21 = vld [vmem:[#allocation2 + $0xa8] sm:$0xff] }
 0x250   :  { %v3433_v7 = vrot.slane %v2934_v22, 1  ;;  %v3999_v53 = vadd.f32 %v3935_v36, %v3873_v35  ;;  %v2905_v63 = vmul.f32 %v6406_v17, %v5992_v39  ;;  %v3245_v27 = vadd.f32 %v3183_v32, %v2790_v15 }
 0x251   :  { %v3309_v40 = vsel %vm434_vm0, %v3307_v8, %v3308_v13  ;;  %v3998_v2 = vadd.f32 %v3936_v18, %v3872_v55  ;;  %v3118_v19 = vadd.f32 %v3057_v4, %v2992_v33  ;;  %v3434_v56 = vrot.slane %v2935_v1, 1 }
 0x252   :  { %v3559_v60 = vrot.slane %v3244_v62, 2  ;;  %4083 = vst [vmem:[#allocation9 + $0x228] sm:$0x3f] %v3999_v53  ;;  %v3560_v5 = vrot.slane %v3245_v27, 2  ;;  %v3937_v59 = vrot.slane %v2963_v47, 2  ;;  %v3938_v38 = vrot.slane %v6419_v61, 2 }
 0x253   :  { %v2732_v51 = vmul.f32 %v6290_v11, %v5956_v52  ;;  %4082 = vst [vmem:[#allocation9 + $0x220] sm:$0xff] %v3998_v2  ;;  %v3370_v36 = vadd.f32 %v3309_v40, %v2847_v37  ;;  %v3371_v6 = vadd.f32 %v3308_v13, %v2848_v34  ;;  %v3435_v54 = vsel %vm434_vm0, %v3433_v7, %v3434_v56  ;;  %v6462_v13 = vld [vmem:[#allocation2 + $0xa0] sm:$0xff] }
 0x254   :  { %v3497_v23 = vadd.f32 %v3434_v56, %v2906_v31  ;;  %v3496_v15 = vadd.f32 %v3435_v54, %v2905_v63  ;;  %v3561_v18 = vsel %vm940_vm2, %v3559_v60, %v3560_v5  ;;  %v2733_v49 = vmul.f32 %v6350_v10, %v5956_v52 }
 0x255   :  { %v2993_v16 = vadd.f32 %v6029_v9, %v2732_v51  ;;  %v3622_v42 = vadd.f32 %v3561_v18, %v3118_v19  ;;  %v3939_v58 = vsel %vm940_vm2, %v3937_v59, %v3938_v38  ;;  %v2762_v11 = vmul.f32 %v6350_v10, %v5959_v41 }
 0x256   :  { %v3686_v20 = vrot.slane %v3497_v23, 7  ;;  %v3685_v37 = vrot.slane %v3496_v15, 7  ;;  %v6439_v14 = vmul.f32 %v6346_v57, %v5959_v41  ;;  %v2791_v45 = vmul.f32 %v6350_v10, %v5974_v3 }
 0x257   :  { %v3119_v30 = vadd.f32 %v3056_v43, %v2993_v16  ;;  %v2792_v34 = vmul.f32 %v6346_v57, %v5974_v3  ;;  %v2820_v31 = vmul.f32 %v6406_v17, %v5982_v29  ;;  %v2821_v26 = vmul.f32 %v6402_v48, %v5982_v29 }
 0x258   :  { %v2849_v22 = vmul.f32 %v6406_v17, %v5985_v25  ;;  %v3687_v1 = vsel %vm1067_vm3, %v3685_v37, %v3686_v20  ;;  %v3748_v47 = vadd.f32 %v3685_v37, %v3370_v36  ;;  %v2878_v28 = vmul.f32 %v6406_v17, %v5988_v0 }
 0x259   :  { %v2879_v10 = vmul.f32 %v6402_v48, %v5988_v0  ;;  %v3749_v33 = vadd.f32 %v3687_v1, %v3371_v6  ;;  %v3623_v24 = vadd.f32 %v3560_v5, %v3119_v30  ;;  %v2850_v43 = vmul.f32 %v6402_v48, %v5985_v25 }
 0x25a   :  { %v2908_v44 = vmul.f32 %v6458_v21, %v5992_v39  ;;  %v3811_v8 = vrot.slane %v3748_v47, 1  ;;  %v2936_v46 = vmul.f32 %v6462_v13, %v6010_v50  ;;  %v2937_v35 = vmul.f32 %v6458_v21, %v6010_v50 }
 0x25b   :  { %v2965_v61 = vmul.f32 %v6462_v13, %v6013_v12  ;;  %v3812_v4 = vrot.slane %v3749_v33, 1  ;;  %v2994_v55 = vadd.f32 %v6029_v9, %v2733_v49  ;;  %v3058_v32 = vrot.slane %v2762_v11, 1 }
 0x25c   :  { %v3059_v62 = vrot.slane %v6439_v14, 1  ;;  %v3184_v7 = vrot.slane %v2820_v31, 6  ;;  %v3185_v53 = vrot.slane %v2821_v26, 6  ;;  %v3310_v63 = vrot.slane %v2878_v28, 1 }
 0x25d   :  { %v3311_v27 = vrot.slane %v2879_v10, 1  ;;  %v3813_v40 = vsel %vm434_vm0, %v3811_v8, %v3812_v4  ;;  %v3875_v2 = vadd.f32 %v3812_v4, %v3623_v24  ;;  %v6475_v19 = vmul.f32 %v6458_v21, %v6013_v12 }
 0x25e   :  { %v3060_v56 = vsel %vm434_vm0, %v3058_v32, %v3059_v62  ;;  %v3874_v60 = vadd.f32 %v3813_v40, %v3622_v42  ;;  %v3186_v5 = vsel %vm561_vm1, %v3184_v7, %v3185_v53  ;;  %v3246_v59 = vadd.f32 %v3184_v7, %v2791_v45  ;;  %v6514_v7 = vld [vmem:[#allocation2 + $0xb8] sm:$0xff] }
 0x25f   :  { %v3436_v51 = vrot.slane %v2936_v46, 1  ;;  %v4001_v36 = vadd.f32 %v3938_v38, %v3875_v2  ;;  %v2907_v6 = vmul.f32 %v6462_v13, %v5992_v39  ;;  %v3247_v54 = vadd.f32 %v3186_v5, %v2792_v34 }
 0x260   :  { %v3312_v23 = vsel %vm434_vm0, %v3310_v63, %v3311_v27  ;;  %v4000_v15 = vadd.f32 %v3939_v58, %v3874_v60  ;;  %v3120_v18 = vadd.f32 %v3060_v56, %v2994_v55  ;;  %v3437_v16 = vrot.slane %v2937_v35, 1 }
 0x261   :  { %v3562_v49 = vrot.slane %v3246_v59, 2  ;;  %4085 = vst [vmem:[#allocation9 + $0x238] sm:$0x3f] %v4001_v36  ;;  %v3563_v20 = vrot.slane %v3247_v54, 2  ;;  %v3940_v11 = vrot.slane %v2965_v61, 2  ;;  %v3941_v42 = vrot.slane %v6475_v19, 2 }
 0x262   :  { %v2734_v37 = vmul.f32 %v6346_v57, %v5956_v52  ;;  %4084 = vst [vmem:[#allocation9 + $0x230] sm:$0xff] %v4000_v15  ;;  %v3372_v38 = vadd.f32 %v3312_v23, %v2849_v22  ;;  %v3373_v30 = vadd.f32 %v3311_v27, %v2850_v43  ;;  %v3438_v14 = vsel %vm434_vm0, %v3436_v51, %v3437_v16  ;;  %v6518_v27 = vld [vmem:[#allocation2 + $0xb0] sm:$0xff] }
 0x263   :  { %v3499_v45 = vadd.f32 %v3437_v16, %v2908_v44  ;;  %v3498_v34 = vadd.f32 %v3438_v14, %v2907_v6  ;;  %v3564_v58 = vsel %vm940_vm2, %v3562_v49, %v3563_v20  ;;  %v2735_v26 = vmul.f32 %v6406_v17, %v5956_v52 }
 0x264   :  { %v2995_v31 = vadd.f32 %v6029_v9, %v2734_v37  ;;  %v3624_v1 = vadd.f32 %v3564_v58, %v3120_v18  ;;  %v3942_v28 = vsel %vm940_vm2, %v3940_v11, %v3941_v42  ;;  %v2764_v57 = vmul.f32 %v6406_v17, %v5959_v41 }
 0x265   :  { %v3689_v47 = vrot.slane %v3499_v45, 7  ;;  %v3688_v22 = vrot.slane %v3498_v34, 7  ;;  %v6495_v33 = vmul.f32 %v6402_v48, %v5959_v41  ;;  %v2793_v24 = vmul.f32 %v6406_v17, %v5974_v3 }
 0x266   :  { %v3121_v10 = vadd.f32 %v3059_v62, %v2995_v31  ;;  %v2794_v43 = vmul.f32 %v6402_v48, %v5974_v3  ;;  %v2822_v44 = vmul.f32 %v6462_v13, %v5982_v29  ;;  %v2823_v8 = vmul.f32 %v6458_v21, %v5982_v29 }
 0x267   :  { %v2851_v46 = vmul.f32 %v6462_v13, %v5985_v25  ;;  %v3690_v35 = vsel %vm1067_vm3, %v3688_v22, %v3689_v47  ;;  %v3750_v61 = vadd.f32 %v3688_v22, %v3372_v38  ;;  %v2880_v4 = vmul.f32 %v6462_v13, %v5988_v0 }
 0x268   :  { %v2881_v17 = vmul.f32 %v6458_v21, %v5988_v0  ;;  %v3751_v55 = vadd.f32 %v3690_v35, %v3373_v30  ;;  %v3625_v32 = vadd.f32 %v3563_v20, %v3121_v10  ;;  %v2852_v62 = vmul.f32 %v6458_v21, %v5985_v25 }
 0x269   :  { %v2910_v53 = vmul.f32 %v6514_v7, %v5992_v39  ;;  %v3814_v63 = vrot.slane %v3750_v61, 1  ;;  %v2938_v40 = vmul.f32 %v6518_v27, %v6010_v50  ;;  %v2939_v2 = vmul.f32 %v6514_v7, %v6010_v50 }
 0x26a   :  { %v2967_v19 = vmul.f32 %v6518_v27, %v6013_v12  ;;  %v3815_v56 = vrot.slane %v3751_v55, 1  ;;  %v2996_v60 = vadd.f32 %v6029_v9, %v2735_v26  ;;  %v3061_v5 = vrot.slane %v2764_v57, 1 }
 0x26b   :  { %v3062_v59 = vrot.slane %v6495_v33, 1  ;;  %v3187_v51 = vrot.slane %v2822_v44, 6  ;;  %v3188_v36 = vrot.slane %v2823_v8, 6  ;;  %v3313_v6 = vrot.slane %v2880_v4, 1 }
 0x26c   :  { %v3314_v54 = vrot.slane %v2881_v17, 1  ;;  %v3816_v23 = vsel %vm434_vm0, %v3814_v63, %v3815_v56  ;;  %v3877_v15 = vadd.f32 %v3815_v56, %v3625_v32  ;;  %v6531_v18 = vmul.f32 %v6514_v7, %v6013_v12 }
 0x26d   :  { %v3063_v16 = vsel %vm434_vm0, %v3061_v5, %v3062_v59  ;;  %v3876_v49 = vadd.f32 %v3816_v23, %v3624_v1  ;;  %v3189_v20 = vsel %vm561_vm1, %v3187_v51, %v3188_v36  ;;  %v3248_v11 = vadd.f32 %v3187_v51, %v2793_v24  ;;  %v6570_v51 = vld [vmem:[#allocation2 + $0xc8] sm:$0xff] }
 0x26e   :  { %v3439_v37 = vrot.slane %v2938_v40, 1  ;;  %v4003_v38 = vadd.f32 %v3941_v42, %v3877_v15  ;;  %v2909_v30 = vmul.f32 %v6518_v27, %v5992_v39  ;;  %v3249_v14 = vadd.f32 %v3189_v20, %v2794_v43 }
 0x26f   :  { %v3315_v45 = vsel %vm434_vm0, %v3313_v6, %v3314_v54  ;;  %v4002_v34 = vadd.f32 %v3942_v28, %v3876_v49  ;;  %v3122_v58 = vadd.f32 %v3063_v16, %v2996_v60  ;;  %v3440_v31 = vrot.slane %v2939_v2, 1 }
 0x270   :  { %v3565_v26 = vrot.slane %v3248_v11, 2  ;;  %4087 = vst [vmem:[#allocation9 + $0x248] sm:$0x3f] %v4003_v38  ;;  %v3566_v47 = vrot.slane %v3249_v14, 2  ;;  %v3943_v57 = vrot.slane %v2967_v19, 2  ;;  %v3944_v1 = vrot.slane %v6531_v18, 2 }
 0x271   :  { %v2736_v22 = vmul.f32 %v6402_v48, %v5956_v52  ;;  %4086 = vst [vmem:[#allocation9 + $0x240] sm:$0xff] %v4002_v34  ;;  %v3374_v42 = vadd.f32 %v3315_v45, %v2851_v46  ;;  %v3375_v10 = vadd.f32 %v3314_v54, %v2852_v62  ;;  %v3441_v33 = vsel %vm434_vm0, %v3439_v37, %v3440_v31  ;;  %v6574_v54 = vld [vmem:[#allocation2 + $0xc0] sm:$0xff] }
 0x272   :  { %v3501_v24 = vadd.f32 %v3440_v31, %v2910_v53  ;;  %v3500_v43 = vadd.f32 %v3441_v33, %v2909_v30  ;;  %v3567_v28 = vsel %vm940_vm2, %v3565_v26, %v3566_v47  ;;  %v2737_v8 = vmul.f32 %v6462_v13, %v5956_v52 }
 0x273   :  { %v2997_v44 = vadd.f32 %v6029_v9, %v2736_v22  ;;  %v3626_v35 = vadd.f32 %v3567_v28, %v3122_v58  ;;  %v3945_v4 = vsel %vm940_vm2, %v3943_v57, %v3944_v1  ;;  %v2766_v48 = vmul.f32 %v6462_v13, %v5959_v41 }
 0x274   :  { %v3692_v61 = vrot.slane %v3501_v24, 7  ;;  %v3691_v46 = vrot.slane %v3500_v43, 7  ;;  %v6551_v55 = vmul.f32 %v6458_v21, %v5959_v41  ;;  %v2795_v32 = vmul.f32 %v6462_v13, %v5974_v3 }
 0x275   :  { %v3123_v17 = vadd.f32 %v3062_v59, %v2997_v44  ;;  %v2796_v62 = vmul.f32 %v6458_v21, %v5974_v3  ;;  %v2824_v53 = vmul.f32 %v6518_v27, %v5982_v29  ;;  %v2825_v63 = vmul.f32 %v6514_v7, %v5982_v29 }
 0x276   :  { %v2853_v40 = vmul.f32 %v6518_v27, %v5985_v25  ;;  %v3693_v2 = vsel %vm1067_vm3, %v3691_v46, %v3692_v61  ;;  %v3752_v19 = vadd.f32 %v3691_v46, %v3374_v42  ;;  %v2882_v56 = vmul.f32 %v6518_v27, %v5988_v0 }
 0x277   :  { %v2883_v13 = vmul.f32 %v6514_v7, %v5988_v0  ;;  %v3753_v60 = vadd.f32 %v3693_v2, %v3375_v10  ;;  %v3627_v5 = vadd.f32 %v3566_v47, %v3123_v17  ;;  %v2854_v59 = vmul.f32 %v6514_v7, %v5985_v25 }
 0x278   :  { %v2912_v36 = vmul.f32 %v6570_v51, %v5992_v39  ;;  %v3817_v6 = vrot.slane %v3752_v19, 1  ;;  %v2940_v23 = vmul.f32 %v6574_v54, %v6010_v50  ;;  %v2941_v15 = vmul.f32 %v6570_v51, %v6010_v50 }
 0x279   :  { %v2969_v18 = vmul.f32 %v6574_v54, %v6013_v12  ;;  %v3818_v16 = vrot.slane %v3753_v60, 1  ;;  %v2998_v49 = vadd.f32 %v6029_v9, %v2737_v8  ;;  %v3064_v20 = vrot.slane %v2766_v48, 1 }
 0x27a   :  { %v3065_v11 = vrot.slane %v6551_v55, 1  ;;  %v3190_v37 = vrot.slane %v2824_v53, 6  ;;  %v3191_v38 = vrot.slane %v2825_v63, 6  ;;  %v3316_v30 = vrot.slane %v2882_v56, 1 }
 0x27b   :  { %v3317_v14 = vrot.slane %v2883_v13, 1  ;;  %v3819_v45 = vsel %vm434_vm0, %v3817_v6, %v3818_v16  ;;  %v3879_v34 = vadd.f32 %v3818_v16, %v3627_v5  ;;  %v6587_v58 = vmul.f32 %v6570_v51, %v6013_v12 }
 0x27c   :  { %v3066_v31 = vsel %vm434_vm0, %v3064_v20, %v3065_v11  ;;  %v3878_v26 = vadd.f32 %v3819_v45, %v3626_v35  ;;  %v3192_v47 = vsel %vm561_vm1, %v3190_v37, %v3191_v38  ;;  %v3250_v57 = vadd.f32 %v3190_v37, %v2795_v32 }
 0x27d   :  { %v3442_v22 = vrot.slane %v2940_v23, 1  ;;  %v4005_v42 = vadd.f32 %v3944_v1, %v3879_v34  ;;  %v2911_v10 = vmul.f32 %v6574_v54, %v5992_v39  ;;  %v3124_v33 = vadd.f32 %v3066_v31, %v2998_v49 }
 0x27e   :  { %v3251_v24 = vadd.f32 %v3192_v47, %v2796_v62  ;;  %v4004_v43 = vadd.f32 %v3945_v4, %v3878_v26  ;;  %v3318_v28 = vsel %vm434_vm0, %v3316_v30, %v3317_v14  ;;  %v3443_v44 = vrot.slane %v2941_v15, 1  ;;  %v6626_v30 = vld [vmem:[#allocation2 + $0xd0] sm:$0xff] }
 0x27f   :  { %v3568_v8 = vrot.slane %v3250_v57, 2  ;;  %4089 = vst [vmem:[#allocation9 + $0x258] sm:$0x3f] %v4005_v42  ;;  %v3946_v48 = vrot.slane %v2969_v18, 2  ;;  %v3947_v35 = vrot.slane %v6587_v58, 2  ;;  %v2738_v46 = vmul.f32 %v6458_v21, %v5956_v52 }
 0x280   :  { %v3569_v61 = vrot.slane %v3251_v24, 2  ;;  %4088 = vst [vmem:[#allocation9 + $0x250] sm:$0xff] %v4004_v43  ;;  %v3377_v1 = vadd.f32 %v3317_v14, %v2854_v59  ;;  %v3444_v17 = vsel %vm434_vm0, %v3442_v22, %v3443_v44  ;;  %v3503_v55 = vadd.f32 %v3443_v44, %v2912_v36 }
 0x281   :  { %v3376_v32 = vadd.f32 %v3318_v28, %v2853_v40  ;;  %v3502_v62 = vadd.f32 %v3444_v17, %v2911_v10  ;;  %v2999_v53 = vadd.f32 %v6029_v9, %v2738_v46  ;;  %v3948_v2 = vsel %vm940_vm2, %v3946_v48, %v3947_v35 }
 0x282   :  { %v3570_v4 = vsel %vm940_vm2, %v3568_v8, %v3569_v61  ;;  %v3695_v63 = vrot.slane %v3503_v55, 7  ;;  %v2739_v19 = vmul.f32 %v6518_v27, %v5956_v52  ;;  %v2768_v21 = vmul.f32 %v6518_v27, %v5959_v41 }
 0x283   :  { %v3628_v56 = vadd.f32 %v3570_v4, %v3124_v33  ;;  %v3694_v13 = vrot.slane %v3502_v62, 7  ;;  %v3125_v60 = vadd.f32 %v3065_v11, %v2999_v53  ;;  %v2769_v40 = vmul.f32 %v6514_v7, %v5959_v41  ;;  %v6622_v11 = vld [vmem:[#allocation2 + $0xd8] sm:$0xff] }
 0x284   :  { %v2797_v5 = vmul.f32 %v6518_v27, %v5974_v3  ;;  %v2798_v59 = vmul.f32 %v6514_v7, %v5974_v3  ;;  %v2826_v36 = vmul.f32 %v6574_v54, %v5982_v29  ;;  %v2827_v6 = vmul.f32 %v6570_v51, %v5982_v29 }
 0x285   :  { %v3696_v23 = vsel %vm1067_vm3, %v3694_v13, %v3695_v63  ;;  %v3754_v15 = vadd.f32 %v3694_v13, %v3376_v32  ;;  %v2884_v18 = vmul.f32 %v6574_v54, %v5988_v0  ;;  %v2885_v16 = vmul.f32 %v6570_v51, %v5988_v0 }
 0x286   :  { %v3755_v49 = vadd.f32 %v3696_v23, %v3377_v1  ;;  %v3629_v27 = vadd.f32 %v3569_v61, %v3125_v60  ;;  %v2855_v20 = vmul.f32 %v6574_v54, %v5985_v25  ;;  %v2914_v37 = vmul.f32 %v6622_v11, %v5992_v39 }
 0x287   :  { %v3820_v38 = vrot.slane %v3754_v15, 1  ;;  %v2942_v14 = vmul.f32 %v6626_v30, %v6010_v50  ;;  %v2943_v45 = vmul.f32 %v6622_v11, %v6010_v50  ;;  %v2971_v34 = vmul.f32 %v6626_v30, %v6013_v12 }
 0x288   :  { %v3821_v58 = vrot.slane %v3755_v49, 1  ;;  %v6636_v31 = vmul.f32 %v6622_v11, %v6013_v12  ;;  %v3067_v26 = vrot.slane %v2768_v21, 1  ;;  %v3068_v47 = vrot.slane %v2769_v40, 1 }
 0x289   :  { %v3193_v57 = vrot.slane %v2826_v36, 6  ;;  %v3194_v22 = vrot.slane %v2827_v6, 6  ;;  %v3319_v42 = vrot.slane %v2884_v18, 1  ;;  %v3320_v10 = vrot.slane %v2885_v16, 1 }
 0x28a   :  { %v3822_v33 = vsel %vm434_vm0, %v3820_v38, %v3821_v58  ;;  %v3881_v24 = vadd.f32 %v3821_v58, %v3629_v27  ;;  %v3000_v43 = vadd.f32 %v6029_v9, %v2739_v19  ;;  %v3069_v28 = vsel %vm434_vm0, %v3067_v26, %v3068_v47 }
 0x28b   :  { %v3880_v44 = vadd.f32 %v3822_v33, %v3628_v56  ;;  %v3195_v8 = vsel %vm561_vm1, %v3193_v57, %v3194_v22  ;;  %v3252_v61 = vadd.f32 %v3193_v57, %v2797_v5  ;;  %v3445_v48 = vrot.slane %v2942_v14, 1 }
 0x28c   :  { %v4007_v46 = vadd.f32 %v3947_v35, %v3881_v24  ;;  %v2856_v1 = vmul.f32 %v6570_v51, %v5985_v25  ;;  %v2913_v17 = vmul.f32 %v6626_v30, %v5992_v39  ;;  %v3253_v55 = vadd.f32 %v3195_v8, %v2798_v59 }
 0x28d   :  { %v4006_v32 = vadd.f32 %v3948_v2, %v3880_v44  ;;  %v3321_v62 = vsel %vm434_vm0, %v3319_v42, %v3320_v10  ;;  %v3446_v4 = vrot.slane %v2943_v45, 1  ;;  %v3571_v53 = vrot.slane %v3252_v61, 2  ;;  %v6675_v42 = vld [vmem:[#allocation2 + $0xe0] sm:$0xff] }
 0x28e   :  { %4091 = vst [vmem:[#allocation9 + $0x268] sm:$0x3f] %v4007_v46  ;;  %v3126_v63 = vadd.f32 %v3069_v28, %v3000_v43  ;;  %v3572_v19 = vrot.slane %v3253_v55, 2  ;;  %v2740_v21 = vmul.f32 %v6514_v7, %v5956_v52  ;;  %v3949_v13 = vrot.slane %v2971_v34, 2  ;;  %v6681_v43 = vld [vmem:[#allocation2 + $0xe8] sm:$0xff] }
 0x28f   :  { %4090 = vst [vmem:[#allocation9 + $0x260] sm:$0xff] %v4006_v32  ;;  %v3447_v35 = vsel %vm434_vm0, %v3445_v48, %v3446_v4  ;;  %v3505_v56 = vadd.f32 %v3446_v4, %v2914_v37  ;;  %v3950_v60 = vrot.slane %v6636_v31, 2  ;;  %v3378_v40 = vadd.f32 %v3321_v62, %v2855_v20 }
 0x290   :  { %v3504_v5 = vadd.f32 %v3447_v35, %v2913_v17  ;;  %v3573_v2 = vsel %vm940_vm2, %v3571_v53, %v3572_v19  ;;  %v3001_v59 = vadd.f32 %v6029_v9, %v2740_v21  ;;  %v3379_v36 = vadd.f32 %v3320_v10, %v2856_v1 }
 0x291   :  { %v3698_v6 = vrot.slane %v3505_v56, 7  ;;  %v2741_v7 = vmul.f32 %v6574_v54, %v5956_v52  ;;  %v2770_v18 = vmul.f32 %v6574_v54, %v5959_v41  ;;  %v3630_v16 = vadd.f32 %v3573_v2, %v3126_v63 }
 0x292   :  { %v3697_v23 = vrot.slane %v3504_v5, 7  ;;  %v3127_v15 = vadd.f32 %v3068_v47, %v3001_v59  ;;  %v3951_v49 = vsel %vm940_vm2, %v3949_v13, %v3950_v60  ;;  %v2828_v27 = vmul.f32 %v6626_v30, %v5982_v29 }
 0x293   :  { %v2829_v20 = vmul.f32 %v6622_v11, %v5982_v29  ;;  %v2886_v14 = vmul.f32 %v6626_v30, %v5988_v0  ;;  %v2887_v45 = vmul.f32 %v6622_v11, %v5988_v0  ;;  %v2771_v31 = vmul.f32 %v6570_v51, %v5959_v41 }
 0x294   :  { %v3699_v37 = vsel %vm1067_vm3, %v3697_v23, %v3698_v6  ;;  %v3756_v38 = vadd.f32 %v3697_v23, %v3378_v40  ;;  %v3631_v58 = vadd.f32 %v3572_v19, %v3127_v15  ;;  %v2799_v26 = vmul.f32 %v6574_v54, %v5974_v3 }
 0x295   :  { %v3757_v34 = vadd.f32 %v3699_v37, %v3379_v36  ;;  %v2800_v57 = vmul.f32 %v6570_v51, %v5974_v3  ;;  %v2857_v22 = vmul.f32 %v6626_v30, %v5985_v25  ;;  %v2944_v10 = vmul.f32 %v6675_v42, %v6010_v50 }
 0x296   :  { %v3823_v47 = vrot.slane %v3756_v38, 1  ;;  %v2858_v24 = vmul.f32 %v6622_v11, %v5985_v25  ;;  %v2916_v54 = vmul.f32 %v6681_v43, %v5992_v39  ;;  %v2945_v28 = vmul.f32 %v6681_v43, %v6010_v50 }
 0x297   :  { %v3824_v33 = vrot.slane %v3757_v34, 1  ;;  %v3196_v44 = vrot.slane %v2828_v27, 6  ;;  %v3197_v8 = vrot.slane %v2829_v20, 6  ;;  %v3322_v61 = vrot.slane %v2886_v14, 1 }
 0x298   :  { %v3323_v48 = vrot.slane %v2887_v45, 1  ;;  %v3070_v17 = vrot.slane %v2770_v18, 1  ;;  %v3071_v55 = vrot.slane %v2771_v31, 1  ;;  %v3448_v53 = vrot.slane %v2944_v10, 1 }
 0x299   :  { %v3825_v46 = vsel %vm434_vm0, %v3823_v47, %v3824_v33  ;;  %v3883_v1 = vadd.f32 %v3824_v33, %v3631_v58  ;;  %v3198_v62 = vsel %vm561_vm1, %v3196_v44, %v3197_v8  ;;  %v3254_v4 = vadd.f32 %v3196_v44, %v2799_v26 }
 0x29a   :  { %v3882_v32 = vadd.f32 %v3825_v46, %v3630_v16  ;;  %v2915_v19 = vmul.f32 %v6675_v42, %v5992_v39  ;;  %v2973_v21 = vmul.f32 %v6675_v42, %v6013_v12  ;;  %v3255_v35 = vadd.f32 %v3198_v62, %v2800_v57 }
 0x29b   :  { %v4009_v63 = vadd.f32 %v3950_v60, %v3883_v1  ;;  %v2974_v13 = vmul.f32 %v6681_v43, %v6013_v12  ;;  %v3324_v40 = vsel %vm434_vm0, %v3322_v61, %v3323_v48  ;;  %v3449_v5 = vrot.slane %v2945_v28, 1  ;;  %v4213_v61 = vld [vmem:[#allocation2 + $0xf0] sm:$0xff] }
 0x29c   :  { %v4008_v56 = vadd.f32 %v3951_v49, %v3882_v32  ;;  %v3002_v2 = vadd.f32 %v6029_v9, %v2741_v7  ;;  %v3072_v59 = vsel %vm434_vm0, %v3070_v17, %v3071_v55  ;;  %v2742_v60 = vmul.f32 %v6570_v51, %v5956_v52 }
 0x29d   :  { %4093 = vst [vmem:[#allocation9 + $0x278] sm:$0x3f] %v4009_v63  ;;  %v3450_v36 = vsel %vm434_vm0, %v3448_v53, %v3449_v5  ;;  %v3507_v6 = vadd.f32 %v3449_v5, %v2916_v54  ;;  %v3574_v23 = vrot.slane %v3254_v4, 2  ;;  %v3575_v15 = vrot.slane %v3255_v35, 2 }
 0x29e   :  { %4092 = vst [vmem:[#allocation9 + $0x270] sm:$0xff] %v4008_v56  ;;  %v3380_v18 = vadd.f32 %v3324_v40, %v2857_v22  ;;  %v3506_v16 = vadd.f32 %v3450_v36, %v2915_v19  ;;  %v3003_v49 = vadd.f32 %v6029_v9, %v2742_v60  ;;  %v3381_v27 = vadd.f32 %v3323_v48, %v2858_v24 }
 0x29f   :  { %v3701_v20 = vrot.slane %v3507_v6, 7  ;;  %v3952_v37 = vrot.slane %v2973_v21, 2  ;;  %v3953_v38 = vrot.slane %v2974_v13, 2  ;;  %v3128_v7 = vadd.f32 %v3072_v59, %v3002_v2 }
 0x2a0   :  { %v3700_v14 = vrot.slane %v3506_v16, 7  ;;  %v3129_v45 = vadd.f32 %v3071_v55, %v3003_v49  ;;  %v2743_v51 = vmul.f32 %v6626_v30, %v5956_v52  ;;  %v3576_v34 = vsel %vm940_vm2, %v3574_v23, %v3575_v15 }
 0x2a1   :  { %v2772_v58 = vmul.f32 %v6626_v30, %v5959_v41  ;;  %v2830_v31 = vmul.f32 %v6675_v42, %v5982_v29  ;;  %v2831_v26 = vmul.f32 %v6681_v43, %v5982_v29  ;;  %v2888_v22 = vmul.f32 %v6675_v42, %v5988_v0 }
 0x2a2   :  { %v3702_v47 = vsel %vm1067_vm3, %v3700_v14, %v3701_v20  ;;  %v3758_v57 = vadd.f32 %v3700_v14, %v3380_v18  ;;  %v2889_v10 = vmul.f32 %v6681_v43, %v5988_v0  ;;  %v3954_v24 = vsel %vm940_vm2, %v3952_v37, %v3953_v38  ;;  %v4214_v0 = vld [vmem:[#allocation2 + $0xf8] sm:$0xff] }
 0x2a3   :  { %v3759_v33 = vadd.f32 %v3702_v47, %v3381_v27  ;;  %v3633_v54 = vadd.f32 %v3575_v15, %v3129_v45  ;;  %v2773_v28 = vmul.f32 %v6622_v11, %v5959_v41  ;;  %v3632_v44 = vadd.f32 %v3576_v34, %v3128_v7 }
 0x2a4   :  { %v3826_v8 = vrot.slane %v3758_v57, 1  ;;  %v2801_v29 = vmul.f32 %v6626_v30, %v5974_v3  ;;  %v2946_v48 = vmul.f32 %v4213_v61, %v6010_v50  ;;  %v2802_v1 = vmul.f32 %v6622_v11, %v5974_v3 }
 0x2a5   :  { %v3827_v46 = vrot.slane %v3759_v33, 1  ;;  %v2918_v17 = vmul.f32 %v4214_v0, %v5992_v39  ;;  %v2947_v55 = vmul.f32 %v4214_v0, %v6010_v50  ;;  %v3199_v32 = vrot.slane %v2830_v31, 6 }
 0x2a6   :  { %v3200_v62 = vrot.slane %v2831_v26, 6  ;;  %v3325_v41 = vrot.slane %v2888_v22, 1  ;;  %v3326_v4 = vrot.slane %v2889_v10, 1  ;;  %v3073_v30 = vrot.slane %v2772_v58, 1 }
 0x2a7   :  { %v3828_v53 = vsel %vm434_vm0, %v3826_v8, %v3827_v46  ;;  %v3885_v63 = vadd.f32 %v3827_v46, %v3633_v54  ;;  %v3074_v19 = vrot.slane %v2773_v28, 1  ;;  %v3256_v56 = vadd.f32 %v3199_v32, %v2801_v29 }
 0x2a8   :  { %v3884_v21 = vadd.f32 %v3828_v53, %v3632_v44  ;;  %v3201_v35 = vsel %vm561_vm1, %v3199_v32, %v3200_v62  ;;  %v3451_v13 = vrot.slane %v2946_v48, 1  ;;  %v2859_v40 = vmul.f32 %v6675_v42, %v5985_v25 }
 0x2a9   :  { %v4011_v3 = vadd.f32 %v3953_v38, %v3885_v63  ;;  %v2917_v50 = vmul.f32 %v4213_v61, %v5992_v39  ;;  %v3257_v5 = vadd.f32 %v3201_v35, %v2802_v1  ;;  %v2860_v59 = vmul.f32 %v6681_v43, %v5985_v25 }
 0x2aa   :  { %v4010_v2 = vadd.f32 %v3954_v24, %v3884_v21  ;;  %v3327_v60 = vsel %vm434_vm0, %v3325_v41, %v3326_v4  ;;  %v3452_v36 = vrot.slane %v2947_v55, 1  ;;  %v3004_v6 = vadd.f32 %v6029_v9, %v2743_v51 }
 0x2ab   :  { %4095 = vst [vmem:[#allocation9 + $0x288] sm:$0x3f] %v4011_v3  ;;  %v3075_v23 = vsel %vm434_vm0, %v3073_v30, %v3074_v19  ;;  %v2744_v15 = vmul.f32 %v6622_v11, %v5956_v52  ;;  %v3577_v18 = vrot.slane %v3256_v56, 2  ;;  %v3578_v16 = vrot.slane %v3257_v5, 2 }
 0x2ac   :  { %4094 = vst [vmem:[#allocation9 + $0x280] sm:$0xff] %v4010_v2  ;;  %v3453_v42 = vsel %vm434_vm0, %v3451_v13, %v3452_v36  ;;  %v3509_v39 = vadd.f32 %v3452_v36, %v2918_v17  ;;  %v3382_v49 = vadd.f32 %v3327_v60, %v2859_v40  ;;  %v2975_v43 = vmul.f32 %v4213_v61, %v6013_v12 }
 0x2ad   :  { %v3508_v27 = vadd.f32 %v3453_v42, %v2917_v50  ;;  %v3005_v25 = vadd.f32 %v6029_v9, %v2744_v15  ;;  %v2976_v20 = vmul.f32 %v4214_v0, %v6013_v12  ;;  %v3383_v37 = vadd.f32 %v3326_v4, %v2860_v59 }
 0x2ae   :  { %v3704_v38 = vrot.slane %v3509_v39, 7  ;;  %v3130_v7 = vadd.f32 %v3075_v23, %v3004_v6  ;;  %v3579_v52 = vsel %vm940_vm2, %v3577_v18, %v3578_v16  ;;  %v3955_v58 = vrot.slane %v2975_v43, 2 }
 0x2af   :  { %v3703_v14 = vrot.slane %v3508_v27, 7  ;;  %v3131_v45 = vadd.f32 %v3074_v19, %v3005_v25  ;;  %v3956_v31 = vrot.slane %v2976_v20, 2 }
 0x2b0   :  { %v3634_v47 = vadd.f32 %v3579_v52, %v3130_v7 }
 0x2b1   :  { %v3705_v11 = vsel %vm1067_vm3, %v3703_v14, %v3704_v38  ;;  %v3760_v51 = vadd.f32 %v3703_v14, %v3382_v49  ;;  %v3635_v26 = vadd.f32 %v3578_v16, %v3131_v45  ;;  %v3957_v12 = vsel %vm940_vm2, %v3955_v58, %v3956_v31 }
 0x2b2   :  { %v3761_v34 = vadd.f32 %v3705_v11, %v3383_v37 }
 0x2b3   :  { %v3829_v9 = vrot.slane %v3760_v51, 1 }
 0x2b4   :  { %v3830_v57 = vrot.slane %v3761_v34, 1 }
 0x2b6   :  { %v3831_v22 = vsel %vm434_vm0, %v3829_v9, %v3830_v57  ;;  %v3887_v10 = vadd.f32 %v3830_v57, %v3635_v26 }
 0x2b7   :  { %v3886_v33 = vadd.f32 %v3831_v22, %v3634_v47 }
 0x2b8   :  { %v4013_v24 = vadd.f32 %v3956_v31, %v3887_v10 }
 0x2b9   :  { %v4012_v54 = vadd.f32 %v3957_v12, %v3886_v33 }
 0x2ba   :  { %4097 = vst [vmem:[#allocation9 + $0x298] sm:$0x3f] %v4013_v24 }
 0x2bb   :  { %4096 = vst [vmem:[#allocation9 + $0x290] sm:$0xff] %v4012_v54 }
 0x2bc   :  { %4272 = shalt.err (!%p4269_p8)
}
 0x2bd   :  { %s4273_s13 = scalar_lea.hbm %s6764_s3, 10752 }
 0x2be   :  { %p4274_p9 = scmp.ne.s32.totalorder %s6764_s3, %s4273_s13  ;;  %p4277_p10 = scmp.lt.u32.totalorder %s4273_s13, %s6764_s3 }
 0x2c0   :  { %p4279_p11 = pnand %p4277_p10, %p4274_p9 }
 0x2c2   :  { %4282 = shalt.err (!%p4279_p11)
}
 0x2c3   :  { %4109 = dma.vmem_to_hbm [thread:$0]  %s4104_s9, 10752, %s6764_s3, [#allocation4], %s4292_s1, %s4292_s1, %s4293_s25  }
 0x2c4   :  { %4289 = dma.done.wait [#allocation4], 10752  }
 0x2c5   :  { %4290 = vsyncadd [#allocation4], 4294956544 }
 0x2c6   :  { %4113 = vsyncpa [#allocation3], 1 }
 0x2c7   :  { %4114 = vsyncpa [#allocation4], 1 }
 0x2c8   :  { %4115 = vsyncpa [#allocation5], 1 }
 0x2c9   :  { %4116 = vsyncpa [#allocation8], 1 }

</bundles_post_ra>
